<compile_context>
chip_gen: v7x
topology: tpu7x:2x2x1
jax: 0.10.0
libtpu: 0.0.40
codegen_flags: <defaults>
</compile_context>

<pallas_src>
import numpy as np
import jax
import jax.numpy as jnp
from jax.experimental import pallas as pl
from jax.experimental.pallas import tpu as pltpu

EPS = 1e-5
POOL_K = 7          # MaxPool1d(kernel_size=7, stride=1) after block1
PACK_COLS = 32      # every layer has Cout <= 32; pack weights into 32 lanes


# --------------------------- static geometry / folding ----------------------

def _layer_geometry(params, T):
    """Static per-layer geometry for input time length T."""
    cfgs, L, woff = [], T, 0
    for i, p in enumerate(params):
        k, s = p['k'], p['stride']
        pad = (k - 1) // 2
        cout, cin, _ = p['w'].shape
        lf = L + 2 * pad - k + 1              # stride-1 conv output length
        lout = (L + 2 * pad - k) // s + 1     # actual (strided) output length
        pool = (i == 0)                       # MaxPool1d(7,1) follows block1
        cfgs.append(dict(k=k, stride=s, pad=pad, lin=L, lf=lf, lout=lout,
                         cin=cin, cout=cout, pool=pool, woff=woff))
        woff += k * cin
        L = lout - (POOL_K - 1) if pool else lout
    return cfgs


def _fold_layer(p):
    """Fold conv bias + eval BN (+ shortcut conv/BN) into W:(k*Cin,Cout), shift:(Cout,)."""
    k = p['k']
    cout, cin, _ = p['w'].shape
    a = p['gamma'] / jnp.sqrt(p['var'] + EPS)                  # (Cout,)
    w = p['w'] * a[:, None, None]                              # BN scale into W
    shift = (p['bias'] - p['mean']) * a + p['beta']            # (Cout,)
    if p['shortcut']:
        # Conv1d(k=1, stride=s, pad=0) reads x[:, :, s*t]; the main conv's
        # center tap (j == pad) reads xp[:, :, s*t + pad] == x[:, :, s*t], so
        # the shortcut folds exactly into that tap (scales folded FIRST).
        a_s = p['sc_gamma'] / jnp.sqrt(p['sc_var'] + EPS)
        w = w.at[:, :, (k - 1) // 2].add(p['sc_w'][:, :, 0] * a_s[:, None])
        shift = shift + (p['sc_beta'] - p['sc_mean'] * a_s)
    # rows ordered (tap j, cin) to match the in-kernel tap slicing
    w_rows = jnp.transpose(w, (2, 1, 0)).reshape(k * cin, cout)
    return w_rows.astype(jnp.float32), shift.astype(jnp.float32)


def _pack_params(params):
    """Pack all folded layer weights / shifts into two lane-padded arrays."""
    wrows, shifts = [], []
    for p in params:
        w, s = _fold_layer(p)
        cout = w.shape[1]
        wrows.append(jnp.pad(w, ((0, 0), (0, PACK_COLS - cout))))
        shifts.append(jnp.pad(s, (0, PACK_COLS - cout)))
    w_all = jnp.concatenate(wrows, axis=0)        # (sum_l k_l*cin_l, 32)
    s_all = jnp.stack(shifts, axis=0)             # (n_layers, 32)
    return w_all, s_all


# ------------------------------ fused Pallas kernel --------------------------

def _make_fused_kernel(cfgs, B):
    n = len(cfgs)

    def kernel(x_ref, w_ref, s_ref, o_ref, *bufs):
        # bufs[l]: zero-padded NTC activation buffer feeding layer l,
        #          shape (B, lin_l + 2*pad_l, cin_l), VMEM scratch.
        for buf in bufs:
            buf[...] = jnp.zeros(buf.shape, jnp.float32)

        c0 = cfgs[0]
        bufs[0][:, c0['pad']:c0['pad'] + c0['lin'], :] = x_ref[...]

        for li, c in enumerate(cfgs):
            k, stride = c['k'], c['stride']
            lf, lout = c['lf'], c['lout']
            cin, cout, woff = c['cin'], c['cout'], c['woff']
            shift = s_ref[li:li + 1, 0:cout]                      # (1, cout)

            sel = None
            if stride == 2:
                # stride-2 conv == stride-1 conv sampled at even positions;
                # select rows with a tiny constant 0/1 matmul (exact).
                r = jax.lax.broadcasted_iota(jnp.int32, (lout, lf), 0)
                u = jax.lax.broadcasted_iota(jnp.int32, (lout, lf), 1)
                sel = (u == 2 * r).astype(jnp.float32)            # (lout, lf)

            for b in range(B):                                    # B=2, unrolled
                # Conv1d at stride 1: sum over taps of (lf,cin)@(cin,cout).
                acc = None
                for j in range(k):
                    xj = bufs[li][b, j:j + lf, :]                 # (lf, cin)
                    wj = w_ref[woff + j * cin:woff + (j + 1) * cin, 0:cout]
                    t = jnp.dot(xj, wj, preferred_element_type=jnp.float32)
                    acc = t if acc is None else acc + t
                # folded conv-bias + BN (+ folded shortcut) + ReLU
                y = jnp.maximum(acc + shift, 0.0)                 # (lf, cout)
                if sel is not None:                               # stride 2
                    y = jnp.dot(sel, y, preferred_element_type=jnp.float32)
                if c['pool']:                                     # MaxPool1d(7,1)
                    lp = y.shape[0] - POOL_K + 1
                    m = y[0:lp, :]
                    for q in range(1, POOL_K):
                        m = jnp.maximum(m, y[q:q + lp, :])
                    y = m
                if li == n - 1:
                    # AdaptiveAvgPool1d(1) + view(B, C): mean over time
                    o_ref[b:b + 1, :] = jnp.mean(y, axis=0, keepdims=True)
                else:
                    nc = cfgs[li + 1]
                    bufs[li + 1][b, nc['pad']:nc['pad'] + y.shape[0], :] = y

    return kernel


def cnn_feature_extractor(x_nct, params):
    """x_nct: (B, in_channels, T) as in PyTorch; returns (B, 32)."""
    x = jnp.transpose(x_nct, (0, 2, 1)).astype(jnp.float32)      # NCT -> NTC glue
    B, T, _ = x.shape
    cfgs = _layer_geometry(params, T)
    w_all, s_all = _pack_params(params)

    def full_spec(a):
        return pl.BlockSpec(a.shape, lambda i, nd=a.ndim: (0,) * nd)

    cout_last = cfgs[-1]['cout']
    scratch = [pltpu.VMEM((B, c['lin'] + 2 * c['pad'], c['cin']), jnp.float32)
               for c in cfgs]

    return pl.pallas_call(
        _make_fused_kernel(cfgs, B),
        out_shape=jax.ShapeDtypeStruct((B, cout_last), jnp.float32),
        grid=(1,),
        in_specs=[full_spec(x), full_spec(w_all), full_spec(s_all)],
        out_specs=pl.BlockSpec((B, cout_last), lambda i: (0, 0)),
        scratch_shapes=scratch,
        compiler_params=pltpu.CompilerParams(
            dimension_semantics=("arbitrary",)),
    )(x, w_all, s_all)


# ------------------------- deterministic parameters -------------------------

def init_params(key, in_channels=3):
    cfg = [
        # (cin, cout, k, stride, use_shortcut)
        (in_channels, 4, 7, 2, False),
        (4, 8, 3, 1, False),
        (8, 8, 3, 2, True),
        (8, 16, 3, 1, False),
        (16, 16, 3, 2, True),
        (16, 32, 3, 1, False),
        (32, 32, 3, 2, True),
    ]
    params = []
    for (cin, cout, k, s, sc) in cfg:
        key, *ks = jax.random.split(key, 8)
        w_std = (2.0 / (cin * k)) ** 0.5
        p = {
            'w': w_std * jax.random.normal(ks[0], (cout, cin, k), jnp.float32),
            'bias': 0.05 * jax.random.normal(ks[1], (cout,), jnp.float32),
            'gamma': 1.0 + 0.1 * jax.random.normal(ks[2], (cout,), jnp.float32),
            'beta': 0.05 * jax.random.normal(ks[3], (cout,), jnp.float32),
            'mean': 0.02 * jax.random.normal(ks[4], (cout,), jnp.float32),
            'var': 1.0 + 0.1 * jax.random.uniform(ks[5], (cout,), jnp.float32),
            'k': k, 'stride': s, 'shortcut': sc,
        }
        if sc:  # shortcut exists (stride != 1): Conv1d(k=1, stride, bias=False)+BN
            key, k1, k2, k3, k4, k5 = jax.random.split(key, 6)
            p.update({
                'sc_w': (2.0 / cin) ** 0.5 * jax.random.normal(k1, (cout, cin, 1), jnp.float32),
                'sc_gamma': 1.0 + 0.1 * jax.random.normal(k2, (cout,), jnp.float32),
                'sc_beta': 0.05 * jax.random.normal(k3, (cout,), jnp.float32),
                'sc_mean': 0.02 * jax.random.normal(k4, (cout,), jnp.float32),
                'sc_var': 1.0 + 0.1 * jax.random.uniform(k5, (cout,), jnp.float32),
            })
        params.append(p)
    return params


# --------------------------- pure-JAX reference -----------------------------

def _ref_bn(x, gamma, beta, mean, var):
    return ((x - mean[None, :, None]) / jnp.sqrt(var[None, :, None] + EPS)
            * gamma[None, :, None] + beta[None, :, None])


def _ref_block(x, p):  # x: NCT
    pad = (p['k'] - 1) // 2
    y = jax.lax.conv_general_dilated(
        x, p['w'], window_strides=(p['stride'],), padding=[(pad, pad)],
        dimension_numbers=('NCH', 'OIH', 'NCH')) + p['bias'][None, :, None]
    y = _ref_bn(y, p['gamma'], p['beta'], p['mean'], p['var'])
    if p['shortcut']:
        s = jax.lax.conv_general_dilated(
            x, p['sc_w'], window_strides=(p['stride'],), padding=[(0, 0)],
            dimension_numbers=('NCH', 'OIH', 'NCH'))
        s = _ref_bn(s, p['sc_gamma'], p['sc_beta'], p['sc_mean'], p['sc_var'])
        y = y + s
    return jnp.maximum(y, 0.0)


def ref_forward(x, params):
    x = _ref_block(x, params[0])
    x = jax.lax.reduce_window(x, -jnp.inf, jax.lax.max,
                              (1, 1, POOL_K), (1, 1, 1), 'VALID')
    for p in params[1:]:
        x = _ref_block(x, p)
    return jnp.mean(x, axis=-1)


# ---------------------------------- main ------------------------------------

if __name__ == "__main__":
    B, C_IN, T = 2, 3, 128
    x = jax.random.normal(jax.random.PRNGKey(0), (B, C_IN, T), jnp.float32)
    params = init_params(jax.random.PRNGKey(1), in_channels=C_IN)

    fwd = jax.jit(lambda xx: cnn_feature_extractor(xx, params))
    out = jax.block_until_ready(fwd(x))

    assert out.shape == (B, 32), out.shape

    ref = jax.block_until_ready(ref_forward(x, params))
    np.testing.assert_allclose(np.asarray(out), np.asarray(ref),
                               rtol=5e-4, atol=5e-4)

    print("KERNEL_OK")
</pallas_src>

<mosaic_0001>
module attributes {stable_mosaic.version = 11 : i64} {
  func.func @kernel(%arg0: i32, %arg1: memref<2x128x3xf32, #tpu.memory_space<vmem>>, %arg2: memref<273x32xf32, #tpu.memory_space<vmem>>, %arg3: memref<7x32xf32, #tpu.memory_space<vmem>>, %arg4: memref<2x32xf32, #tpu.memory_space<vmem>>, %arg5: memref<2x134x3xf32, #tpu.memory_space<vmem>>, %arg6: memref<2x60x4xf32, #tpu.memory_space<vmem>>, %arg7: memref<2x60x8xf32, #tpu.memory_space<vmem>>, %arg8: memref<2x31x8xf32, #tpu.memory_space<vmem>>, %arg9: memref<2x31x16xf32, #tpu.memory_space<vmem>>, %arg10: memref<2x17x16xf32, #tpu.memory_space<vmem>>, %arg11: memref<2x17x32xf32, #tpu.memory_space<vmem>>) attributes {dimension_semantics = [#tpu.dimension_semantics<arbitrary>], iteration_bounds = array<i64: 1>, scalar_prefetch = 0 : i64, scratch_operands = 7 : i64, tpu.core_type = #tpu.core_type<tc>, window_params = [{pipeline_mode = #tpu.pipeline_mode<synchronous>, transform_indices = @transform_0, window_bounds = array<i64: 2, 128, 3>}, {pipeline_mode = #tpu.pipeline_mode<synchronous>, transform_indices = @transform_1, window_bounds = array<i64: 273, 32>}, {pipeline_mode = #tpu.pipeline_mode<synchronous>, transform_indices = @transform_2, window_bounds = array<i64: 7, 32>}, {pipeline_mode = #tpu.pipeline_mode<synchronous>, transform_indices = @transform_3, window_bounds = array<i64: 2, 32>}]} {
    %cst = arith.constant 0.000000e+00 : f32
    %0 = vector.broadcast %cst : f32 to vector<2x134x3xf32>
    %c0 = arith.constant 0 : index
    %c0_0 = arith.constant 0 : index
    %c0_1 = arith.constant 0 : index
    %1 = vector.load %arg5[%c0, %c0_0, %c0_1] : memref<2x134x3xf32, #tpu.memory_space<vmem>>, vector<2x134x3xf32>
    tpu.vector_store %arg5[%c0, %c0_0, %c0_1], %0 {strides = array<i32>} : memref<2x134x3xf32, #tpu.memory_space<vmem>>, vector<2x134x3xf32>,
    %cst_2 = arith.constant 0.000000e+00 : f32
    %2 = vector.broadcast %cst_2 : f32 to vector<2x60x4xf32>
    %c0_3 = arith.constant 0 : index
    %c0_4 = arith.constant 0 : index
    %c0_5 = arith.constant 0 : index
    %3 = vector.load %arg6[%c0_3, %c0_4, %c0_5] : memref<2x60x4xf32, #tpu.memory_space<vmem>>, vector<2x60x4xf32>
    tpu.vector_store %arg6[%c0_3, %c0_4, %c0_5], %2 {strides = array<i32>} : memref<2x60x4xf32, #tpu.memory_space<vmem>>, vector<2x60x4xf32>,
    %cst_6 = arith.constant 0.000000e+00 : f32
    %4 = vector.broadcast %cst_6 : f32 to vector<2x60x8xf32>
    %c0_7 = arith.constant 0 : index
    %c0_8 = arith.constant 0 : index
    %c0_9 = arith.constant 0 : index
    %5 = vector.load %arg7[%c0_7, %c0_8, %c0_9] : memref<2x60x8xf32, #tpu.memory_space<vmem>>, vector<2x60x8xf32>
    tpu.vector_store %arg7[%c0_7, %c0_8, %c0_9], %4 {strides = array<i32>} : memref<2x60x8xf32, #tpu.memory_space<vmem>>, vector<2x60x8xf32>,
    %cst_10 = arith.constant 0.000000e+00 : f32
    %6 = vector.broadcast %cst_10 : f32 to vector<2x31x8xf32>
    %c0_11 = arith.constant 0 : index
    %c0_12 = arith.constant 0 : index
    %c0_13 = arith.constant 0 : index
    %7 = vector.load %arg8[%c0_11, %c0_12, %c0_13] : memref<2x31x8xf32, #tpu.memory_space<vmem>>, vector<2x31x8xf32>
    tpu.vector_store %arg8[%c0_11, %c0_12, %c0_13], %6 {strides = array<i32>} : memref<2x31x8xf32, #tpu.memory_space<vmem>>, vector<2x31x8xf32>,
    %cst_14 = arith.constant 0.000000e+00 : f32
    %8 = vector.broadcast %cst_14 : f32 to vector<2x31x16xf32>
    %c0_15 = arith.constant 0 : index
    %c0_16 = arith.constant 0 : index
    %c0_17 = arith.constant 0 : index
    %9 = vector.load %arg9[%c0_15, %c0_16, %c0_17] : memref<2x31x16xf32, #tpu.memory_space<vmem>>, vector<2x31x16xf32>
    tpu.vector_store %arg9[%c0_15, %c0_16, %c0_17], %8 {strides = array<i32>} : memref<2x31x16xf32, #tpu.memory_space<vmem>>, vector<2x31x16xf32>,
    %cst_18 = arith.constant 0.000000e+00 : f32
    %10 = vector.broadcast %cst_18 : f32 to vector<2x17x16xf32>
    %c0_19 = arith.constant 0 : index
    %c0_20 = arith.constant 0 : index
    %c0_21 = arith.constant 0 : index
    %11 = vector.load %arg10[%c0_19, %c0_20, %c0_21] : memref<2x17x16xf32, #tpu.memory_space<vmem>>, vector<2x17x16xf32>
    tpu.vector_store %arg10[%c0_19, %c0_20, %c0_21], %10 {strides = array<i32>} : memref<2x17x16xf32, #tpu.memory_space<vmem>>, vector<2x17x16xf32>,
    %cst_22 = arith.constant 0.000000e+00 : f32
    %12 = vector.broadcast %cst_22 : f32 to vector<2x17x32xf32>
    %c0_23 = arith.constant 0 : index
    %c0_24 = arith.constant 0 : index
    %c0_25 = arith.constant 0 : index
    %13 = vector.load %arg11[%c0_23, %c0_24, %c0_25] : memref<2x17x32xf32, #tpu.memory_space<vmem>>, vector<2x17x32xf32>
    tpu.vector_store %arg11[%c0_23, %c0_24, %c0_25], %12 {strides = array<i32>} : memref<2x17x32xf32, #tpu.memory_space<vmem>>, vector<2x17x32xf32>,
    %c0_26 = arith.constant 0 : index
    %c0_27 = arith.constant 0 : index
    %c0_28 = arith.constant 0 : index
    %14 = vector.load %arg1[%c0_26, %c0_27, %c0_28] : memref<2x128x3xf32, #tpu.memory_space<vmem>>, vector<2x128x3xf32>
    %c0_29 = arith.constant 0 : index
    %c3 = arith.constant 3 : index
    %c0_30 = arith.constant 0 : index
    %15 = vector.load %arg5[%c0_29, %c3, %c0_30] : memref<2x134x3xf32, #tpu.memory_space<vmem>>, vector<2x128x3xf32>
    tpu.vector_store %arg5[%c0_29, %c3, %c0_30], %14 {strides = array<i32>} : memref<2x134x3xf32, #tpu.memory_space<vmem>>, vector<2x128x3xf32>,
    %c0_31 = arith.constant 0 : index
    %c0_32 = arith.constant 0 : index
    %16 = vector.load %arg3[%c0_31, %c0_32] : memref<7x32xf32, #tpu.memory_space<vmem>>, vector<1x4xf32>
    %17 = tpu.iota {dimensions = array<i32: 0>} : vector<64x128xi32>
    %18 = tpu.iota {dimensions = array<i32: 1>} : vector<64x128xi32>
    %c2_i32 = arith.constant 2 : i32
    %19 = vector.broadcast %c2_i32 : i32 to vector<64x128xi32>
    %20 = arith.muli %19, %17 : vector<64x128xi32>
    %21 = arith.cmpi eq, %18, %20 : vector<64x128xi32>
    %22 = arith.extui %21 : vector<64x128xi1> to vector<64x128xi32>
    %23 = arith.sitofp %22 : vector<64x128xi32> to vector<64x128xf32>
    %c0_33 = arith.constant 0 : index
    %c0_34 = arith.constant 0 : index
    %c0_35 = arith.constant 0 : index
    %24 = vector.load %arg5[%c0_33, %c0_34, %c0_35] : memref<2x134x3xf32, #tpu.memory_space<vmem>>, vector<1x128x3xf32>
    %25 = vector.shape_cast %24 : vector<1x128x3xf32> to vector<128x3xf32>
    %c0_36 = arith.constant 0 : index
    %c0_37 = arith.constant 0 : index
    %26 = vector.load %arg2[%c0_36, %c0_37] : memref<273x32xf32, #tpu.memory_space<vmem>>, vector<3x4xf32>
    %cst_38 = arith.constant dense<0.000000e+00> : vector<128x4xf32>
    %27 = tpu.matmul %25, %26, %cst_38 {dimension_numbers = #tpu.dot_dimension_numbers<[1], [0], [0], [1], [0, 0, 1, 1], [], []>} : vector<128x3xf32>, vector<3x4xf32>, vector<128x4xf32> -> vector<128x4xf32>
    %c0_39 = arith.constant 0 : index
    %c1 = arith.constant 1 : index
    %c0_40 = arith.constant 0 : index
    %28 = vector.load %arg5[%c0_39, %c1, %c0_40] : memref<2x134x3xf32, #tpu.memory_space<vmem>>, vector<1x128x3xf32>
    %29 = vector.shape_cast %28 : vector<1x128x3xf32> to vector<128x3xf32>
    %c3_41 = arith.constant 3 : index
    %c0_42 = arith.constant 0 : index
    %30 = vector.load %arg2[%c3_41, %c0_42] : memref<273x32xf32, #tpu.memory_space<vmem>>, vector<3x4xf32>
    %cst_43 = arith.constant dense<0.000000e+00> : vector<128x4xf32>
    %31 = tpu.matmul %29, %30, %cst_43 {dimension_numbers = #tpu.dot_dimension_numbers<[1], [0], [0], [1], [0, 0, 1, 1], [], []>} : vector<128x3xf32>, vector<3x4xf32>, vector<128x4xf32> -> vector<128x4xf32>
    %32 = arith.addf %27, %31 : vector<128x4xf32>
    %c0_44 = arith.constant 0 : index
    %c2 = arith.constant 2 : index
    %c0_45 = arith.constant 0 : index
    %33 = vector.load %arg5[%c0_44, %c2, %c0_45] : memref<2x134x3xf32, #tpu.memory_space<vmem>>, vector<1x128x3xf32>
    %34 = vector.shape_cast %33 : vector<1x128x3xf32> to vector<128x3xf32>
    %c6 = arith.constant 6 : index
    %c0_46 = arith.constant 0 : index
    %35 = vector.load %arg2[%c6, %c0_46] : memref<273x32xf32, #tpu.memory_space<vmem>>, vector<3x4xf32>
    %cst_47 = arith.constant dense<0.000000e+00> : vector<128x4xf32>
    %36 = tpu.matmul %34, %35, %cst_47 {dimension_numbers = #tpu.dot_dimension_numbers<[1], [0], [0], [1], [0, 0, 1, 1], [], []>} : vector<128x3xf32>, vector<3x4xf32>, vector<128x4xf32> -> vector<128x4xf32>
    %37 = arith.addf %32, %36 : vector<128x4xf32>
    %c0_48 = arith.constant 0 : index
    %c3_49 = arith.constant 3 : index
    %c0_50 = arith.constant 0 : index
    %38 = vector.load %arg5[%c0_48, %c3_49, %c0_50] : memref<2x134x3xf32, #tpu.memory_space<vmem>>, vector<1x128x3xf32>
    %39 = vector.shape_cast %38 : vector<1x128x3xf32> to vector<128x3xf32>
    %c9 = arith.constant 9 : index
    %c0_51 = arith.constant 0 : index
    %40 = vector.load %arg2[%c9, %c0_51] : memref<273x32xf32, #tpu.memory_space<vmem>>, vector<3x4xf32>
    %cst_52 = arith.constant dense<0.000000e+00> : vector<128x4xf32>
    %41 = tpu.matmul %39, %40, %cst_52 {dimension_numbers = #tpu.dot_dimension_numbers<[1], [0], [0], [1], [0, 0, 1, 1], [], []>} : vector<128x3xf32>, vector<3x4xf32>, vector<128x4xf32> -> vector<128x4xf32>
    %42 = arith.addf %37, %41 : vector<128x4xf32>
    %c0_53 = arith.constant 0 : index
    %c4 = arith.constant 4 : index
    %c0_54 = arith.constant 0 : index
    %43 = vector.load %arg5[%c0_53, %c4, %c0_54] : memref<2x134x3xf32, #tpu.memory_space<vmem>>, vector<1x128x3xf32>
    %44 = vector.shape_cast %43 : vector<1x128x3xf32> to vector<128x3xf32>
    %c12 = arith.constant 12 : index
    %c0_55 = arith.constant 0 : index
    %45 = vector.load %arg2[%c12, %c0_55] : memref<273x32xf32, #tpu.memory_space<vmem>>, vector<3x4xf32>
    %cst_56 = arith.constant dense<0.000000e+00> : vector<128x4xf32>
    %46 = tpu.matmul %44, %45, %cst_56 {dimension_numbers = #tpu.dot_dimension_numbers<[1], [0], [0], [1], [0, 0, 1, 1], [], []>} : vector<128x3xf32>, vector<3x4xf32>, vector<128x4xf32> -> vector<128x4xf32>
    %47 = arith.addf %42, %46 : vector<128x4xf32>
    %c0_57 = arith.constant 0 : index
    %c5 = arith.constant 5 : index
    %c0_58 = arith.constant 0 : index
    %48 = vector.load %arg5[%c0_57, %c5, %c0_58] : memref<2x134x3xf32, #tpu.memory_space<vmem>>, vector<1x128x3xf32>
    %49 = vector.shape_cast %48 : vector<1x128x3xf32> to vector<128x3xf32>
    %c15 = arith.constant 15 : index
    %c0_59 = arith.constant 0 : index
    %50 = vector.load %arg2[%c15, %c0_59] : memref<273x32xf32, #tpu.memory_space<vmem>>, vector<3x4xf32>
    %cst_60 = arith.constant dense<0.000000e+00> : vector<128x4xf32>
    %51 = tpu.matmul %49, %50, %cst_60 {dimension_numbers = #tpu.dot_dimension_numbers<[1], [0], [0], [1], [0, 0, 1, 1], [], []>} : vector<128x3xf32>, vector<3x4xf32>, vector<128x4xf32> -> vector<128x4xf32>
    %52 = arith.addf %47, %51 : vector<128x4xf32>
    %c0_61 = arith.constant 0 : index
    %c6_62 = arith.constant 6 : index
    %c0_63 = arith.constant 0 : index
    %53 = vector.load %arg5[%c0_61, %c6_62, %c0_63] : memref<2x134x3xf32, #tpu.memory_space<vmem>>, vector<1x128x3xf32>
    %54 = vector.shape_cast %53 : vector<1x128x3xf32> to vector<128x3xf32>
    %c18 = arith.constant 18 : index
    %c0_64 = arith.constant 0 : index
    %55 = vector.load %arg2[%c18, %c0_64] : memref<273x32xf32, #tpu.memory_space<vmem>>, vector<3x4xf32>
    %cst_65 = arith.constant dense<0.000000e+00> : vector<128x4xf32>
    %56 = tpu.matmul %54, %55, %cst_65 {dimension_numbers = #tpu.dot_dimension_numbers<[1], [0], [0], [1], [0, 0, 1, 1], [], []>} : vector<128x3xf32>, vector<3x4xf32>, vector<128x4xf32> -> vector<128x4xf32>
    %57 = arith.addf %52, %56 : vector<128x4xf32>
    %58 = vector.broadcast %16 : vector<1x4xf32> to vector<128x4xf32>
    %59 = arith.addf %57, %58 : vector<128x4xf32>
    %cst_66 = arith.constant 0.000000e+00 : f32
    %60 = vector.broadcast %cst_66 : f32 to vector<128x4xf32>
    %61 = arith.maximumf %59, %60 : vector<128x4xf32>
    %cst_67 = arith.constant dense<0.000000e+00> : vector<64x4xf32>
    %62 = tpu.matmul %23, %61, %cst_67 {dimension_numbers = #tpu.dot_dimension_numbers<[1], [0], [0], [1], [0, 0, 1, 1], [], []>} : vector<64x128xf32>, vector<128x4xf32>, vector<64x4xf32> -> vector<64x4xf32>
    %63 = vector.extract_strided_slice %62 {offsets = [0, 0], sizes = [58, 4], strides = [1, 1]} : vector<64x4xf32> to vector<58x4xf32>
    %64 = vector.extract_strided_slice %62 {offsets = [1, 0], sizes = [58, 4], strides = [1, 1]} : vector<64x4xf32> to vector<58x4xf32>
    %65 = arith.maximumf %63, %64 : vector<58x4xf32>
    %66 = vector.extract_strided_slice %62 {offsets = [2, 0], sizes = [58, 4], strides = [1, 1]} : vector<64x4xf32> to vector<58x4xf32>
    %67 = arith.maximumf %65, %66 : vector<58x4xf32>
    %68 = vector.extract_strided_slice %62 {offsets = [3, 0], sizes = [58, 4], strides = [1, 1]} : vector<64x4xf32> to vector<58x4xf32>
    %69 = arith.maximumf %67, %68 : vector<58x4xf32>
    %70 = vector.extract_strided_slice %62 {offsets = [4, 0], sizes = [58, 4], strides = [1, 1]} : vector<64x4xf32> to vector<58x4xf32>
    %71 = arith.maximumf %69, %70 : vector<58x4xf32>
    %72 = vector.extract_strided_slice %62 {offsets = [5, 0], sizes = [58, 4], strides = [1, 1]} : vector<64x4xf32> to vector<58x4xf32>
    %73 = arith.maximumf %71, %72 : vector<58x4xf32>
    %74 = vector.extract_strided_slice %62 {offsets = [6, 0], sizes = [58, 4], strides = [1, 1]} : vector<64x4xf32> to vector<58x4xf32>
    %75 = arith.maximumf %73, %74 : vector<58x4xf32>
    %c0_68 = arith.constant 0 : index
    %c1_69 = arith.constant 1 : index
    %c0_70 = arith.constant 0 : index
    %76 = vector.load %arg6[%c0_68, %c1_69, %c0_70] : memref<2x60x4xf32, #tpu.memory_space<vmem>>, vector<1x58x4xf32>
    %77 = vector.shape_cast %76 : vector<1x58x4xf32> to vector<58x4xf32>
    %78 = vector.shape_cast %75 : vector<58x4xf32> to vector<1x58x4xf32>
    tpu.vector_store %arg6[%c0_68, %c1_69, %c0_70], %78 {strides = array<i32>} : memref<2x60x4xf32, #tpu.memory_space<vmem>>, vector<1x58x4xf32>,
    %c1_71 = arith.constant 1 : index
    %c0_72 = arith.constant 0 : index
    %c0_73 = arith.constant 0 : index
    %79 = vector.load %arg5[%c1_71, %c0_72, %c0_73] : memref<2x134x3xf32, #tpu.memory_space<vmem>>, vector<1x128x3xf32>
    %80 = vector.shape_cast %79 : vector<1x128x3xf32> to vector<128x3xf32>
    %c0_74 = arith.constant 0 : index
    %c0_75 = arith.constant 0 : index
    %81 = vector.load %arg2[%c0_74, %c0_75] : memref<273x32xf32, #tpu.memory_space<vmem>>, vector<3x4xf32>
    %cst_76 = arith.constant dense<0.000000e+00> : vector<128x4xf32>
    %82 = tpu.matmul %80, %81, %cst_76 {dimension_numbers = #tpu.dot_dimension_numbers<[1], [0], [0], [1], [0, 0, 1, 1], [], []>} : vector<128x3xf32>, vector<3x4xf32>, vector<128x4xf32> -> vector<128x4xf32>
    %c1_77 = arith.constant 1 : index
    %c1_78 = arith.constant 1 : index
    %c0_79 = arith.constant 0 : index
    %83 = vector.load %arg5[%c1_77, %c1_78, %c0_79] : memref<2x134x3xf32, #tpu.memory_space<vmem>>, vector<1x128x3xf32>
    %84 = vector.shape_cast %83 : vector<1x128x3xf32> to vector<128x3xf32>
    %c3_80 = arith.constant 3 : index
    %c0_81 = arith.constant 0 : index
    %85 = vector.load %arg2[%c3_80, %c0_81] : memref<273x32xf32, #tpu.memory_space<vmem>>, vector<3x4xf32>
    %cst_82 = arith.constant dense<0.000000e+00> : vector<128x4xf32>
    %86 = tpu.matmul %84, %85, %cst_82 {dimension_numbers = #tpu.dot_dimension_numbers<[1], [0], [0], [1], [0, 0, 1, 1], [], []>} : vector<128x3xf32>, vector<3x4xf32>, vector<128x4xf32> -> vector<128x4xf32>
    %87 = arith.addf %82, %86 : vector<128x4xf32>
    %c1_83 = arith.constant 1 : index
    %c2_84 = arith.constant 2 : index
    %c0_85 = arith.constant 0 : index
    %88 = vector.load %arg5[%c1_83, %c2_84, %c0_85] : memref<2x134x3xf32, #tpu.memory_space<vmem>>, vector<1x128x3xf32>
    %89 = vector.shape_cast %88 : vector<1x128x3xf32> to vector<128x3xf32>
    %c6_86 = arith.constant 6 : index
    %c0_87 = arith.constant 0 : index
    %90 = vector.load %arg2[%c6_86, %c0_87] : memref<273x32xf32, #tpu.memory_space<vmem>>, vector<3x4xf32>
    %cst_88 = arith.constant dense<0.000000e+00> : vector<128x4xf32>
    %91 = tpu.matmul %89, %90, %cst_88 {dimension_numbers = #tpu.dot_dimension_numbers<[1], [0], [0], [1], [0, 0, 1, 1], [], []>} : vector<128x3xf32>, vector<3x4xf32>, vector<128x4xf32> -> vector<128x4xf32>
    %92 = arith.addf %87, %91 : vector<128x4xf32>
    %c1_89 = arith.constant 1 : index
    %c3_90 = arith.constant 3 : index
    %c0_91 = arith.constant 0 : index
    %93 = vector.load %arg5[%c1_89, %c3_90, %c0_91] : memref<2x134x3xf32, #tpu.memory_space<vmem>>, vector<1x128x3xf32>
    %94 = vector.shape_cast %93 : vector<1x128x3xf32> to vector<128x3xf32>
    %c9_92 = arith.constant 9 : index
    %c0_93 = arith.constant 0 : index
    %95 = vector.load %arg2[%c9_92, %c0_93] : memref<273x32xf32, #tpu.memory_space<vmem>>, vector<3x4xf32>
    %cst_94 = arith.constant dense<0.000000e+00> : vector<128x4xf32>
    %96 = tpu.matmul %94, %95, %cst_94 {dimension_numbers = #tpu.dot_dimension_numbers<[1], [0], [0], [1], [0, 0, 1, 1], [], []>} : vector<128x3xf32>, vector<3x4xf32>, vector<128x4xf32> -> vector<128x4xf32>
    %97 = arith.addf %92, %96 : vector<128x4xf32>
    %c1_95 = arith.constant 1 : index
    %c4_96 = arith.constant 4 : index
    %c0_97 = arith.constant 0 : index
    %98 = vector.load %arg5[%c1_95, %c4_96, %c0_97] : memref<2x134x3xf32, #tpu.memory_space<vmem>>, vector<1x128x3xf32>
    %99 = vector.shape_cast %98 : vector<1x128x3xf32> to vector<128x3xf32>
    %c12_98 = arith.constant 12 : index
    %c0_99 = arith.constant 0 : index
    %100 = vector.load %arg2[%c12_98, %c0_99] : memref<273x32xf32, #tpu.memory_space<vmem>>, vector<3x4xf32>
    %cst_100 = arith.constant dense<0.000000e+00> : vector<128x4xf32>
    %101 = tpu.matmul %99, %100, %cst_100 {dimension_numbers = #tpu.dot_dimension_numbers<[1], [0], [0], [1], [0, 0, 1, 1], [], []>} : vector<128x3xf32>, vector<3x4xf32>, vector<128x4xf32> -> vector<128x4xf32>
    %102 = arith.addf %97, %101 : vector<128x4xf32>
    %c1_101 = arith.constant 1 : index
    %c5_102 = arith.constant 5 : index
    %c0_103 = arith.constant 0 : index
    %103 = vector.load %arg5[%c1_101, %c5_102, %c0_103] : memref<2x134x3xf32, #tpu.memory_space<vmem>>, vector<1x128x3xf32>
    %104 = vector.shape_cast %103 : vector<1x128x3xf32> to vector<128x3xf32>
    %c15_104 = arith.constant 15 : index
    %c0_105 = arith.constant 0 : index
    %105 = vector.load %arg2[%c15_104, %c0_105] : memref<273x32xf32, #tpu.memory_space<vmem>>, vector<3x4xf32>
    %cst_106 = arith.constant dense<0.000000e+00> : vector<128x4xf32>
    %106 = tpu.matmul %104, %105, %cst_106 {dimension_numbers = #tpu.dot_dimension_numbers<[1], [0], [0], [1], [0, 0, 1, 1], [], []>} : vector<128x3xf32>, vector<3x4xf32>, vector<128x4xf32> -> vector<128x4xf32>
    %107 = arith.addf %102, %106 : vector<128x4xf32>
    %c1_107 = arith.constant 1 : index
    %c6_108 = arith.constant 6 : index
    %c0_109 = arith.constant 0 : index
    %108 = vector.load %arg5[%c1_107, %c6_108, %c0_109] : memref<2x134x3xf32, #tpu.memory_space<vmem>>, vector<1x128x3xf32>
    %109 = vector.shape_cast %108 : vector<1x128x3xf32> to vector<128x3xf32>
    %c18_110 = arith.constant 18 : index
    %c0_111 = arith.constant 0 : index
    %110 = vector.load %arg2[%c18_110, %c0_111] : memref<273x32xf32, #tpu.memory_space<vmem>>, vector<3x4xf32>
    %cst_112 = arith.constant dense<0.000000e+00> : vector<128x4xf32>
    %111 = tpu.matmul %109, %110, %cst_112 {dimension_numbers = #tpu.dot_dimension_numbers<[1], [0], [0], [1], [0, 0, 1, 1], [], []>} : vector<128x3xf32>, vector<3x4xf32>, vector<128x4xf32> -> vector<128x4xf32>
    %112 = arith.addf %107, %111 : vector<128x4xf32>
    %113 = vector.broadcast %16 : vector<1x4xf32> to vector<128x4xf32>
    %114 = arith.addf %112, %113 : vector<128x4xf32>
    %cst_113 = arith.constant 0.000000e+00 : f32
    %115 = vector.broadcast %cst_113 : f32 to vector<128x4xf32>
    %116 = arith.maximumf %114, %115 : vector<128x4xf32>
    %cst_114 = arith.constant dense<0.000000e+00> : vector<64x4xf32>
    %117 = tpu.matmul %23, %116, %cst_114 {dimension_numbers = #tpu.dot_dimension_numbers<[1], [0], [0], [1], [0, 0, 1, 1], [], []>} : vector<64x128xf32>, vector<128x4xf32>, vector<64x4xf32> -> vector<64x4xf32>
    %118 = vector.extract_strided_slice %117 {offsets = [0, 0], sizes = [58, 4], strides = [1, 1]} : vector<64x4xf32> to vector<58x4xf32>
    %119 = vector.extract_strided_slice %117 {offsets = [1, 0], sizes = [58, 4], strides = [1, 1]} : vector<64x4xf32> to vector<58x4xf32>
    %120 = arith.maximumf %118, %119 : vector<58x4xf32>
    %121 = vector.extract_strided_slice %117 {offsets = [2, 0], sizes = [58, 4], strides = [1, 1]} : vector<64x4xf32> to vector<58x4xf32>
    %122 = arith.maximumf %120, %121 : vector<58x4xf32>
    %123 = vector.extract_strided_slice %117 {offsets = [3, 0], sizes = [58, 4], strides = [1, 1]} : vector<64x4xf32> to vector<58x4xf32>
    %124 = arith.maximumf %122, %123 : vector<58x4xf32>
    %125 = vector.extract_strided_slice %117 {offsets = [4, 0], sizes = [58, 4], strides = [1, 1]} : vector<64x4xf32> to vector<58x4xf32>
    %126 = arith.maximumf %124, %125 : vector<58x4xf32>
    %127 = vector.extract_strided_slice %117 {offsets = [5, 0], sizes = [58, 4], strides = [1, 1]} : vector<64x4xf32> to vector<58x4xf32>
    %128 = arith.maximumf %126, %127 : vector<58x4xf32>
    %129 = vector.extract_strided_slice %117 {offsets = [6, 0], sizes = [58, 4], strides = [1, 1]} : vector<64x4xf32> to vector<58x4xf32>
    %130 = arith.maximumf %128, %129 : vector<58x4xf32>
    %c1_115 = arith.constant 1 : index
    %c1_116 = arith.constant 1 : index
    %c0_117 = arith.constant 0 : index
    %131 = vector.load %arg6[%c1_115, %c1_116, %c0_117] : memref<2x60x4xf32, #tpu.memory_space<vmem>>, vector<1x58x4xf32>
    %132 = vector.shape_cast %131 : vector<1x58x4xf32> to vector<58x4xf32>
    %133 = vector.shape_cast %130 : vector<58x4xf32> to vector<1x58x4xf32>
    tpu.vector_store %arg6[%c1_115, %c1_116, %c0_117], %133 {strides = array<i32>} : memref<2x60x4xf32, #tpu.memory_space<vmem>>, vector<1x58x4xf32>,
    %c1_118 = arith.constant 1 : index
    %c0_119 = arith.constant 0 : index
    %134 = vector.load %arg3[%c1_118, %c0_119] : memref<7x32xf32, #tpu.memory_space<vmem>>, vector<1x8xf32>
    %c0_120 = arith.constant 0 : index
    %c0_121 = arith.constant 0 : index
    %c0_122 = arith.constant 0 : index
    %135 = vector.load %arg6[%c0_120, %c0_121, %c0_122] : memref<2x60x4xf32, #tpu.memory_space<vmem>>, vector<1x58x4xf32>
    %136 = vector.shape_cast %135 : vector<1x58x4xf32> to vector<58x4xf32>
    %c21 = arith.constant 21 : index
    %c0_123 = arith.constant 0 : index
    %137 = vector.load %arg2[%c21, %c0_123] : memref<273x32xf32, #tpu.memory_space<vmem>>, vector<4x8xf32>
    %cst_124 = arith.constant dense<0.000000e+00> : vector<58x8xf32>
    %138 = tpu.matmul %136, %137, %cst_124 {dimension_numbers = #tpu.dot_dimension_numbers<[1], [0], [0], [1], [0, 0, 1, 1], [], []>} : vector<58x4xf32>, vector<4x8xf32>, vector<58x8xf32> -> vector<58x8xf32>
    %c0_125 = arith.constant 0 : index
    %c1_126 = arith.constant 1 : index
    %c0_127 = arith.constant 0 : index
    %139 = vector.load %arg6[%c0_125, %c1_126, %c0_127] : memref<2x60x4xf32, #tpu.memory_space<vmem>>, vector<1x58x4xf32>
    %140 = vector.shape_cast %139 : vector<1x58x4xf32> to vector<58x4xf32>
    %c25 = arith.constant 25 : index
    %c0_128 = arith.constant 0 : index
    %141 = vector.load %arg2[%c25, %c0_128] : memref<273x32xf32, #tpu.memory_space<vmem>>, vector<4x8xf32>
    %cst_129 = arith.constant dense<0.000000e+00> : vector<58x8xf32>
    %142 = tpu.matmul %140, %141, %cst_129 {dimension_numbers = #tpu.dot_dimension_numbers<[1], [0], [0], [1], [0, 0, 1, 1], [], []>} : vector<58x4xf32>, vector<4x8xf32>, vector<58x8xf32> -> vector<58x8xf32>
    %143 = arith.addf %138, %142 : vector<58x8xf32>
    %c0_130 = arith.constant 0 : index
    %c2_131 = arith.constant 2 : index
    %c0_132 = arith.constant 0 : index
    %144 = vector.load %arg6[%c0_130, %c2_131, %c0_132] : memref<2x60x4xf32, #tpu.memory_space<vmem>>, vector<1x58x4xf32>
    %145 = vector.shape_cast %144 : vector<1x58x4xf32> to vector<58x4xf32>
    %c29 = arith.constant 29 : index
    %c0_133 = arith.constant 0 : index
    %146 = vector.load %arg2[%c29, %c0_133] : memref<273x32xf32, #tpu.memory_space<vmem>>, vector<4x8xf32>
    %cst_134 = arith.constant dense<0.000000e+00> : vector<58x8xf32>
    %147 = tpu.matmul %145, %146, %cst_134 {dimension_numbers = #tpu.dot_dimension_numbers<[1], [0], [0], [1], [0, 0, 1, 1], [], []>} : vector<58x4xf32>, vector<4x8xf32>, vector<58x8xf32> -> vector<58x8xf32>
    %148 = arith.addf %143, %147 : vector<58x8xf32>
    %149 = vector.broadcast %134 : vector<1x8xf32> to vector<58x8xf32>
    %150 = arith.addf %148, %149 : vector<58x8xf32>
    %cst_135 = arith.constant 0.000000e+00 : f32
    %151 = vector.broadcast %cst_135 : f32 to vector<58x8xf32>
    %152 = arith.maximumf %150, %151 : vector<58x8xf32>
    %c0_136 = arith.constant 0 : index
    %c1_137 = arith.constant 1 : index
    %c0_138 = arith.constant 0 : index
    %153 = vector.load %arg7[%c0_136, %c1_137, %c0_138] : memref<2x60x8xf32, #tpu.memory_space<vmem>>, vector<1x58x8xf32>
    %154 = vector.shape_cast %153 : vector<1x58x8xf32> to vector<58x8xf32>
    %155 = vector.shape_cast %152 : vector<58x8xf32> to vector<1x58x8xf32>
    tpu.vector_store %arg7[%c0_136, %c1_137, %c0_138], %155 {strides = array<i32>} : memref<2x60x8xf32, #tpu.memory_space<vmem>>, vector<1x58x8xf32>,
    %c1_139 = arith.constant 1 : index
    %c0_140 = arith.constant 0 : index
    %c0_141 = arith.constant 0 : index
    %156 = vector.load %arg6[%c1_139, %c0_140, %c0_141] : memref<2x60x4xf32, #tpu.memory_space<vmem>>, vector<1x58x4xf32>
    %157 = vector.shape_cast %156 : vector<1x58x4xf32> to vector<58x4xf32>
    %c21_142 = arith.constant 21 : index
    %c0_143 = arith.constant 0 : index
    %158 = vector.load %arg2[%c21_142, %c0_143] : memref<273x32xf32, #tpu.memory_space<vmem>>, vector<4x8xf32>
    %cst_144 = arith.constant dense<0.000000e+00> : vector<58x8xf32>
    %159 = tpu.matmul %157, %158, %cst_144 {dimension_numbers = #tpu.dot_dimension_numbers<[1], [0], [0], [1], [0, 0, 1, 1], [], []>} : vector<58x4xf32>, vector<4x8xf32>, vector<58x8xf32> -> vector<58x8xf32>
    %c1_145 = arith.constant 1 : index
    %c1_146 = arith.constant 1 : index
    %c0_147 = arith.constant 0 : index
    %160 = vector.load %arg6[%c1_145, %c1_146, %c0_147] : memref<2x60x4xf32, #tpu.memory_space<vmem>>, vector<1x58x4xf32>
    %161 = vector.shape_cast %160 : vector<1x58x4xf32> to vector<58x4xf32>
    %c25_148 = arith.constant 25 : index
    %c0_149 = arith.constant 0 : index
    %162 = vector.load %arg2[%c25_148, %c0_149] : memref<273x32xf32, #tpu.memory_space<vmem>>, vector<4x8xf32>
    %cst_150 = arith.constant dense<0.000000e+00> : vector<58x8xf32>
    %163 = tpu.matmul %161, %162, %cst_150 {dimension_numbers = #tpu.dot_dimension_numbers<[1], [0], [0], [1], [0, 0, 1, 1], [], []>} : vector<58x4xf32>, vector<4x8xf32>, vector<58x8xf32> -> vector<58x8xf32>
    %164 = arith.addf %159, %163 : vector<58x8xf32>
    %c1_151 = arith.constant 1 : index
    %c2_152 = arith.constant 2 : index
    %c0_153 = arith.constant 0 : index
    %165 = vector.load %arg6[%c1_151, %c2_152, %c0_153] : memref<2x60x4xf32, #tpu.memory_space<vmem>>, vector<1x58x4xf32>
    %166 = vector.shape_cast %165 : vector<1x58x4xf32> to vector<58x4xf32>
    %c29_154 = arith.constant 29 : index
    %c0_155 = arith.constant 0 : index
    %167 = vector.load %arg2[%c29_154, %c0_155] : memref<273x32xf32, #tpu.memory_space<vmem>>, vector<4x8xf32>
    %cst_156 = arith.constant dense<0.000000e+00> : vector<58x8xf32>
    %168 = tpu.matmul %166, %167, %cst_156 {dimension_numbers = #tpu.dot_dimension_numbers<[1], [0], [0], [1], [0, 0, 1, 1], [], []>} : vector<58x4xf32>, vector<4x8xf32>, vector<58x8xf32> -> vector<58x8xf32>
    %169 = arith.addf %164, %168 : vector<58x8xf32>
    %170 = vector.broadcast %134 : vector<1x8xf32> to vector<58x8xf32>
    %171 = arith.addf %169, %170 : vector<58x8xf32>
    %cst_157 = arith.constant 0.000000e+00 : f32
    %172 = vector.broadcast %cst_157 : f32 to vector<58x8xf32>
    %173 = arith.maximumf %171, %172 : vector<58x8xf32>
    %c1_158 = arith.constant 1 : index
    %c1_159 = arith.constant 1 : index
    %c0_160 = arith.constant 0 : index
    %174 = vector.load %arg7[%c1_158, %c1_159, %c0_160] : memref<2x60x8xf32, #tpu.memory_space<vmem>>, vector<1x58x8xf32>
    %175 = vector.shape_cast %174 : vector<1x58x8xf32> to vector<58x8xf32>
    %176 = vector.shape_cast %173 : vector<58x8xf32> to vector<1x58x8xf32>
    tpu.vector_store %arg7[%c1_158, %c1_159, %c0_160], %176 {strides = array<i32>} : memref<2x60x8xf32, #tpu.memory_space<vmem>>, vector<1x58x8xf32>,
    %c2_161 = arith.constant 2 : index
    %c0_162 = arith.constant 0 : index
    %177 = vector.load %arg3[%c2_161, %c0_162] : memref<7x32xf32, #tpu.memory_space<vmem>>, vector<1x8xf32>
    %178 = tpu.iota {dimensions = array<i32: 0>} : vector<29x58xi32>
    %179 = tpu.iota {dimensions = array<i32: 1>} : vector<29x58xi32>
    %c2_i32_163 = arith.constant 2 : i32
    %180 = vector.broadcast %c2_i32_163 : i32 to vector<29x58xi32>
    %181 = arith.muli %180, %178 : vector<29x58xi32>
    %182 = arith.cmpi eq, %179, %181 : vector<29x58xi32>
    %183 = arith.extui %182 : vector<29x58xi1> to vector<29x58xi32>
    %184 = arith.sitofp %183 : vector<29x58xi32> to vector<29x58xf32>
    %c0_164 = arith.constant 0 : index
    %c0_165 = arith.constant 0 : index
    %c0_166 = arith.constant 0 : index
    %185 = vector.load %arg7[%c0_164, %c0_165, %c0_166] : memref<2x60x8xf32, #tpu.memory_space<vmem>>, vector<1x58x8xf32>
    %186 = vector.shape_cast %185 : vector<1x58x8xf32> to vector<58x8xf32>
    %c33 = arith.constant 33 : index
    %c0_167 = arith.constant 0 : index
    %187 = vector.load %arg2[%c33, %c0_167] : memref<273x32xf32, #tpu.memory_space<vmem>>, vector<8x8xf32>
    %cst_168 = arith.constant dense<0.000000e+00> : vector<58x8xf32>
    %188 = tpu.matmul %186, %187, %cst_168 {dimension_numbers = #tpu.dot_dimension_numbers<[1], [0], [0], [1], [0, 0, 1, 1], [], []>} : vector<58x8xf32>, vector<8x8xf32>, vector<58x8xf32> -> vector<58x8xf32>
    %c0_169 = arith.constant 0 : index
    %c1_170 = arith.constant 1 : index
    %c0_171 = arith.constant 0 : index
    %189 = vector.load %arg7[%c0_169, %c1_170, %c0_171] : memref<2x60x8xf32, #tpu.memory_space<vmem>>, vector<1x58x8xf32>
    %190 = vector.shape_cast %189 : vector<1x58x8xf32> to vector<58x8xf32>
    %c41 = arith.constant 41 : index
    %c0_172 = arith.constant 0 : index
    %191 = vector.load %arg2[%c41, %c0_172] : memref<273x32xf32, #tpu.memory_space<vmem>>, vector<8x8xf32>
    %cst_173 = arith.constant dense<0.000000e+00> : vector<58x8xf32>
    %192 = tpu.matmul %190, %191, %cst_173 {dimension_numbers = #tpu.dot_dimension_numbers<[1], [0], [0], [1], [0, 0, 1, 1], [], []>} : vector<58x8xf32>, vector<8x8xf32>, vector<58x8xf32> -> vector<58x8xf32>
    %193 = arith.addf %188, %192 : vector<58x8xf32>
    %c0_174 = arith.constant 0 : index
    %c2_175 = arith.constant 2 : index
    %c0_176 = arith.constant 0 : index
    %194 = vector.load %arg7[%c0_174, %c2_175, %c0_176] : memref<2x60x8xf32, #tpu.memory_space<vmem>>, vector<1x58x8xf32>
    %195 = vector.shape_cast %194 : vector<1x58x8xf32> to vector<58x8xf32>
    %c49 = arith.constant 49 : index
    %c0_177 = arith.constant 0 : index
    %196 = vector.load %arg2[%c49, %c0_177] : memref<273x32xf32, #tpu.memory_space<vmem>>, vector<8x8xf32>
    %cst_178 = arith.constant dense<0.000000e+00> : vector<58x8xf32>
    %197 = tpu.matmul %195, %196, %cst_178 {dimension_numbers = #tpu.dot_dimension_numbers<[1], [0], [0], [1], [0, 0, 1, 1], [], []>} : vector<58x8xf32>, vector<8x8xf32>, vector<58x8xf32> -> vector<58x8xf32>
    %198 = arith.addf %193, %197 : vector<58x8xf32>
    %199 = vector.broadcast %177 : vector<1x8xf32> to vector<58x8xf32>
    %200 = arith.addf %198, %199 : vector<58x8xf32>
    %cst_179 = arith.constant 0.000000e+00 : f32
    %201 = vector.broadcast %cst_179 : f32 to vector<58x8xf32>
    %202 = arith.maximumf %200, %201 : vector<58x8xf32>
    %cst_180 = arith.constant dense<0.000000e+00> : vector<29x8xf32>
    %203 = tpu.matmul %184, %202, %cst_180 {dimension_numbers = #tpu.dot_dimension_numbers<[1], [0], [0], [1], [0, 0, 1, 1], [], []>} : vector<29x58xf32>, vector<58x8xf32>, vector<29x8xf32> -> vector<29x8xf32>
    %c0_181 = arith.constant 0 : index
    %c1_182 = arith.constant 1 : index
    %c0_183 = arith.constant 0 : index
    %204 = vector.load %arg8[%c0_181, %c1_182, %c0_183] : memref<2x31x8xf32, #tpu.memory_space<vmem>>, vector<1x29x8xf32>
    %205 = vector.shape_cast %204 : vector<1x29x8xf32> to vector<29x8xf32>
    %206 = vector.shape_cast %203 : vector<29x8xf32> to vector<1x29x8xf32>
    tpu.vector_store %arg8[%c0_181, %c1_182, %c0_183], %206 {strides = array<i32>} : memref<2x31x8xf32, #tpu.memory_space<vmem>>, vector<1x29x8xf32>,
    %c1_184 = arith.constant 1 : index
    %c0_185 = arith.constant 0 : index
    %c0_186 = arith.constant 0 : index
    %207 = vector.load %arg7[%c1_184, %c0_185, %c0_186] : memref<2x60x8xf32, #tpu.memory_space<vmem>>, vector<1x58x8xf32>
    %208 = vector.shape_cast %207 : vector<1x58x8xf32> to vector<58x8xf32>
    %c33_187 = arith.constant 33 : index
    %c0_188 = arith.constant 0 : index
    %209 = vector.load %arg2[%c33_187, %c0_188] : memref<273x32xf32, #tpu.memory_space<vmem>>, vector<8x8xf32>
    %cst_189 = arith.constant dense<0.000000e+00> : vector<58x8xf32>
    %210 = tpu.matmul %208, %209, %cst_189 {dimension_numbers = #tpu.dot_dimension_numbers<[1], [0], [0], [1], [0, 0, 1, 1], [], []>} : vector<58x8xf32>, vector<8x8xf32>, vector<58x8xf32> -> vector<58x8xf32>
    %c1_190 = arith.constant 1 : index
    %c1_191 = arith.constant 1 : index
    %c0_192 = arith.constant 0 : index
    %211 = vector.load %arg7[%c1_190, %c1_191, %c0_192] : memref<2x60x8xf32, #tpu.memory_space<vmem>>, vector<1x58x8xf32>
    %212 = vector.shape_cast %211 : vector<1x58x8xf32> to vector<58x8xf32>
    %c41_193 = arith.constant 41 : index
    %c0_194 = arith.constant 0 : index
    %213 = vector.load %arg2[%c41_193, %c0_194] : memref<273x32xf32, #tpu.memory_space<vmem>>, vector<8x8xf32>
    %cst_195 = arith.constant dense<0.000000e+00> : vector<58x8xf32>
    %214 = tpu.matmul %212, %213, %cst_195 {dimension_numbers = #tpu.dot_dimension_numbers<[1], [0], [0], [1], [0, 0, 1, 1], [], []>} : vector<58x8xf32>, vector<8x8xf32>, vector<58x8xf32> -> vector<58x8xf32>
    %215 = arith.addf %210, %214 : vector<58x8xf32>
    %c1_196 = arith.constant 1 : index
    %c2_197 = arith.constant 2 : index
    %c0_198 = arith.constant 0 : index
    %216 = vector.load %arg7[%c1_196, %c2_197, %c0_198] : memref<2x60x8xf32, #tpu.memory_space<vmem>>, vector<1x58x8xf32>
    %217 = vector.shape_cast %216 : vector<1x58x8xf32> to vector<58x8xf32>
    %c49_199 = arith.constant 49 : index
    %c0_200 = arith.constant 0 : index
    %218 = vector.load %arg2[%c49_199, %c0_200] : memref<273x32xf32, #tpu.memory_space<vmem>>, vector<8x8xf32>
    %cst_201 = arith.constant dense<0.000000e+00> : vector<58x8xf32>
    %219 = tpu.matmul %217, %218, %cst_201 {dimension_numbers = #tpu.dot_dimension_numbers<[1], [0], [0], [1], [0, 0, 1, 1], [], []>} : vector<58x8xf32>, vector<8x8xf32>, vector<58x8xf32> -> vector<58x8xf32>
    %220 = arith.addf %215, %219 : vector<58x8xf32>
    %221 = vector.broadcast %177 : vector<1x8xf32> to vector<58x8xf32>
    %222 = arith.addf %220, %221 : vector<58x8xf32>
    %cst_202 = arith.constant 0.000000e+00 : f32
    %223 = vector.broadcast %cst_202 : f32 to vector<58x8xf32>
    %224 = arith.maximumf %222, %223 : vector<58x8xf32>
    %cst_203 = arith.constant dense<0.000000e+00> : vector<29x8xf32>
    %225 = tpu.matmul %184, %224, %cst_203 {dimension_numbers = #tpu.dot_dimension_numbers<[1], [0], [0], [1], [0, 0, 1, 1], [], []>} : vector<29x58xf32>, vector<58x8xf32>, vector<29x8xf32> -> vector<29x8xf32>
    %c1_204 = arith.constant 1 : index
    %c1_205 = arith.constant 1 : index
    %c0_206 = arith.constant 0 : index
    %226 = vector.load %arg8[%c1_204, %c1_205, %c0_206] : memref<2x31x8xf32, #tpu.memory_space<vmem>>, vector<1x29x8xf32>
    %227 = vector.shape_cast %226 : vector<1x29x8xf32> to vector<29x8xf32>
    %228 = vector.shape_cast %225 : vector<29x8xf32> to vector<1x29x8xf32>
    tpu.vector_store %arg8[%c1_204, %c1_205, %c0_206], %228 {strides = array<i32>} : memref<2x31x8xf32, #tpu.memory_space<vmem>>, vector<1x29x8xf32>,
    %c3_207 = arith.constant 3 : index
    %c0_208 = arith.constant 0 : index
    %229 = vector.load %arg3[%c3_207, %c0_208] : memref<7x32xf32, #tpu.memory_space<vmem>>, vector<1x16xf32>
    %c0_209 = arith.constant 0 : index
    %c0_210 = arith.constant 0 : index
    %c0_211 = arith.constant 0 : index
    %230 = vector.load %arg8[%c0_209, %c0_210, %c0_211] : memref<2x31x8xf32, #tpu.memory_space<vmem>>, vector<1x29x8xf32>
    %231 = vector.shape_cast %230 : vector<1x29x8xf32> to vector<29x8xf32>
    %c57 = arith.constant 57 : index
    %c0_212 = arith.constant 0 : index
    %232 = vector.load %arg2[%c57, %c0_212] : memref<273x32xf32, #tpu.memory_space<vmem>>, vector<8x16xf32>
    %cst_213 = arith.constant dense<0.000000e+00> : vector<29x16xf32>
    %233 = tpu.matmul %231, %232, %cst_213 {dimension_numbers = #tpu.dot_dimension_numbers<[1], [0], [0], [1], [0, 0, 1, 1], [], []>} : vector<29x8xf32>, vector<8x16xf32>, vector<29x16xf32> -> vector<29x16xf32>
    %c0_214 = arith.constant 0 : index
    %c1_215 = arith.constant 1 : index
    %c0_216 = arith.constant 0 : index
    %234 = vector.load %arg8[%c0_214, %c1_215, %c0_216] : memref<2x31x8xf32, #tpu.memory_space<vmem>>, vector<1x29x8xf32>
    %235 = vector.shape_cast %234 : vector<1x29x8xf32> to vector<29x8xf32>
    %c65 = arith.constant 65 : index
    %c0_217 = arith.constant 0 : index
    %236 = vector.load %arg2[%c65, %c0_217] : memref<273x32xf32, #tpu.memory_space<vmem>>, vector<8x16xf32>
    %cst_218 = arith.constant dense<0.000000e+00> : vector<29x16xf32>
    %237 = tpu.matmul %235, %236, %cst_218 {dimension_numbers = #tpu.dot_dimension_numbers<[1], [0], [0], [1], [0, 0, 1, 1], [], []>} : vector<29x8xf32>, vector<8x16xf32>, vector<29x16xf32> -> vector<29x16xf32>
    %238 = arith.addf %233, %237 : vector<29x16xf32>
    %c0_219 = arith.constant 0 : index
    %c2_220 = arith.constant 2 : index
    %c0_221 = arith.constant 0 : index
    %239 = vector.load %arg8[%c0_219, %c2_220, %c0_221] : memref<2x31x8xf32, #tpu.memory_space<vmem>>, vector<1x29x8xf32>
    %240 = vector.shape_cast %239 : vector<1x29x8xf32> to vector<29x8xf32>
    %c73 = arith.constant 73 : index
    %c0_222 = arith.constant 0 : index
    %241 = vector.load %arg2[%c73, %c0_222] : memref<273x32xf32, #tpu.memory_space<vmem>>, vector<8x16xf32>
    %cst_223 = arith.constant dense<0.000000e+00> : vector<29x16xf32>
    %242 = tpu.matmul %240, %241, %cst_223 {dimension_numbers = #tpu.dot_dimension_numbers<[1], [0], [0], [1], [0, 0, 1, 1], [], []>} : vector<29x8xf32>, vector<8x16xf32>, vector<29x16xf32> -> vector<29x16xf32>
    %243 = arith.addf %238, %242 : vector<29x16xf32>
    %244 = vector.broadcast %229 : vector<1x16xf32> to vector<29x16xf32>
    %245 = arith.addf %243, %244 : vector<29x16xf32>
    %cst_224 = arith.constant 0.000000e+00 : f32
    %246 = vector.broadcast %cst_224 : f32 to vector<29x16xf32>
    %247 = arith.maximumf %245, %246 : vector<29x16xf32>
    %c0_225 = arith.constant 0 : index
    %c1_226 = arith.constant 1 : index
    %c0_227 = arith.constant 0 : index
    %248 = vector.load %arg9[%c0_225, %c1_226, %c0_227] : memref<2x31x16xf32, #tpu.memory_space<vmem>>, vector<1x29x16xf32>
    %249 = vector.shape_cast %248 : vector<1x29x16xf32> to vector<29x16xf32>
    %250 = vector.shape_cast %247 : vector<29x16xf32> to vector<1x29x16xf32>
    tpu.vector_store %arg9[%c0_225, %c1_226, %c0_227], %250 {strides = array<i32>} : memref<2x31x16xf32, #tpu.memory_space<vmem>>, vector<1x29x16xf32>,
    %c1_228 = arith.constant 1 : index
    %c0_229 = arith.constant 0 : index
    %c0_230 = arith.constant 0 : index
    %251 = vector.load %arg8[%c1_228, %c0_229, %c0_230] : memref<2x31x8xf32, #tpu.memory_space<vmem>>, vector<1x29x8xf32>
    %252 = vector.shape_cast %251 : vector<1x29x8xf32> to vector<29x8xf32>
    %c57_231 = arith.constant 57 : index
    %c0_232 = arith.constant 0 : index
    %253 = vector.load %arg2[%c57_231, %c0_232] : memref<273x32xf32, #tpu.memory_space<vmem>>, vector<8x16xf32>
    %cst_233 = arith.constant dense<0.000000e+00> : vector<29x16xf32>
    %254 = tpu.matmul %252, %253, %cst_233 {dimension_numbers = #tpu.dot_dimension_numbers<[1], [0], [0], [1], [0, 0, 1, 1], [], []>} : vector<29x8xf32>, vector<8x16xf32>, vector<29x16xf32> -> vector<29x16xf32>
    %c1_234 = arith.constant 1 : index
    %c1_235 = arith.constant 1 : index
    %c0_236 = arith.constant 0 : index
    %255 = vector.load %arg8[%c1_234, %c1_235, %c0_236] : memref<2x31x8xf32, #tpu.memory_space<vmem>>, vector<1x29x8xf32>
    %256 = vector.shape_cast %255 : vector<1x29x8xf32> to vector<29x8xf32>
    %c65_237 = arith.constant 65 : index
    %c0_238 = arith.constant 0 : index
    %257 = vector.load %arg2[%c65_237, %c0_238] : memref<273x32xf32, #tpu.memory_space<vmem>>, vector<8x16xf32>
    %cst_239 = arith.constant dense<0.000000e+00> : vector<29x16xf32>
    %258 = tpu.matmul %256, %257, %cst_239 {dimension_numbers = #tpu.dot_dimension_numbers<[1], [0], [0], [1], [0, 0, 1, 1], [], []>} : vector<29x8xf32>, vector<8x16xf32>, vector<29x16xf32> -> vector<29x16xf32>
    %259 = arith.addf %254, %258 : vector<29x16xf32>
    %c1_240 = arith.constant 1 : index
    %c2_241 = arith.constant 2 : index
    %c0_242 = arith.constant 0 : index
    %260 = vector.load %arg8[%c1_240, %c2_241, %c0_242] : memref<2x31x8xf32, #tpu.memory_space<vmem>>, vector<1x29x8xf32>
    %261 = vector.shape_cast %260 : vector<1x29x8xf32> to vector<29x8xf32>
    %c73_243 = arith.constant 73 : index
    %c0_244 = arith.constant 0 : index
    %262 = vector.load %arg2[%c73_243, %c0_244] : memref<273x32xf32, #tpu.memory_space<vmem>>, vector<8x16xf32>
    %cst_245 = arith.constant dense<0.000000e+00> : vector<29x16xf32>
    %263 = tpu.matmul %261, %262, %cst_245 {dimension_numbers = #tpu.dot_dimension_numbers<[1], [0], [0], [1], [0, 0, 1, 1], [], []>} : vector<29x8xf32>, vector<8x16xf32>, vector<29x16xf32> -> vector<29x16xf32>
    %264 = arith.addf %259, %263 : vector<29x16xf32>
    %265 = vector.broadcast %229 : vector<1x16xf32> to vector<29x16xf32>
    %266 = arith.addf %264, %265 : vector<29x16xf32>
    %cst_246 = arith.constant 0.000000e+00 : f32
    %267 = vector.broadcast %cst_246 : f32 to vector<29x16xf32>
    %268 = arith.maximumf %266, %267 : vector<29x16xf32>
    %c1_247 = arith.constant 1 : index
    %c1_248 = arith.constant 1 : index
    %c0_249 = arith.constant 0 : index
    %269 = vector.load %arg9[%c1_247, %c1_248, %c0_249] : memref<2x31x16xf32, #tpu.memory_space<vmem>>, vector<1x29x16xf32>
    %270 = vector.shape_cast %269 : vector<1x29x16xf32> to vector<29x16xf32>
    %271 = vector.shape_cast %268 : vector<29x16xf32> to vector<1x29x16xf32>
    tpu.vector_store %arg9[%c1_247, %c1_248, %c0_249], %271 {strides = array<i32>} : memref<2x31x16xf32, #tpu.memory_space<vmem>>, vector<1x29x16xf32>,
    %c4_250 = arith.constant 4 : index
    %c0_251 = arith.constant 0 : index
    %272 = vector.load %arg3[%c4_250, %c0_251] : memref<7x32xf32, #tpu.memory_space<vmem>>, vector<1x16xf32>
    %273 = tpu.iota {dimensions = array<i32: 0>} : vector<15x29xi32>
    %274 = tpu.iota {dimensions = array<i32: 1>} : vector<15x29xi32>
    %c2_i32_252 = arith.constant 2 : i32
    %275 = vector.broadcast %c2_i32_252 : i32 to vector<15x29xi32>
    %276 = arith.muli %275, %273 : vector<15x29xi32>
    %277 = arith.cmpi eq, %274, %276 : vector<15x29xi32>
    %278 = arith.extui %277 : vector<15x29xi1> to vector<15x29xi32>
    %279 = arith.sitofp %278 : vector<15x29xi32> to vector<15x29xf32>
    %c0_253 = arith.constant 0 : index
    %c0_254 = arith.constant 0 : index
    %c0_255 = arith.constant 0 : index
    %280 = vector.load %arg9[%c0_253, %c0_254, %c0_255] : memref<2x31x16xf32, #tpu.memory_space<vmem>>, vector<1x29x16xf32>
    %281 = vector.shape_cast %280 : vector<1x29x16xf32> to vector<29x16xf32>
    %c81 = arith.constant 81 : index
    %c0_256 = arith.constant 0 : index
    %282 = vector.load %arg2[%c81, %c0_256] : memref<273x32xf32, #tpu.memory_space<vmem>>, vector<16x16xf32>
    %cst_257 = arith.constant dense<0.000000e+00> : vector<29x16xf32>
    %283 = tpu.matmul %281, %282, %cst_257 {dimension_numbers = #tpu.dot_dimension_numbers<[1], [0], [0], [1], [0, 0, 1, 1], [], []>} : vector<29x16xf32>, vector<16x16xf32>, vector<29x16xf32> -> vector<29x16xf32>
    %c0_258 = arith.constant 0 : index
    %c1_259 = arith.constant 1 : index
    %c0_260 = arith.constant 0 : index
    %284 = vector.load %arg9[%c0_258, %c1_259, %c0_260] : memref<2x31x16xf32, #tpu.memory_space<vmem>>, vector<1x29x16xf32>
    %285 = vector.shape_cast %284 : vector<1x29x16xf32> to vector<29x16xf32>
    %c97 = arith.constant 97 : index
    %c0_261 = arith.constant 0 : index
    %286 = vector.load %arg2[%c97, %c0_261] : memref<273x32xf32, #tpu.memory_space<vmem>>, vector<16x16xf32>
    %cst_262 = arith.constant dense<0.000000e+00> : vector<29x16xf32>
    %287 = tpu.matmul %285, %286, %cst_262 {dimension_numbers = #tpu.dot_dimension_numbers<[1], [0], [0], [1], [0, 0, 1, 1], [], []>} : vector<29x16xf32>, vector<16x16xf32>, vector<29x16xf32> -> vector<29x16xf32>
    %288 = arith.addf %283, %287 : vector<29x16xf32>
    %c0_263 = arith.constant 0 : index
    %c2_264 = arith.constant 2 : index
    %c0_265 = arith.constant 0 : index
    %289 = vector.load %arg9[%c0_263, %c2_264, %c0_265] : memref<2x31x16xf32, #tpu.memory_space<vmem>>, vector<1x29x16xf32>
    %290 = vector.shape_cast %289 : vector<1x29x16xf32> to vector<29x16xf32>
    %c113 = arith.constant 113 : index
    %c0_266 = arith.constant 0 : index
    %291 = vector.load %arg2[%c113, %c0_266] : memref<273x32xf32, #tpu.memory_space<vmem>>, vector<16x16xf32>
    %cst_267 = arith.constant dense<0.000000e+00> : vector<29x16xf32>
    %292 = tpu.matmul %290, %291, %cst_267 {dimension_numbers = #tpu.dot_dimension_numbers<[1], [0], [0], [1], [0, 0, 1, 1], [], []>} : vector<29x16xf32>, vector<16x16xf32>, vector<29x16xf32> -> vector<29x16xf32>
    %293 = arith.addf %288, %292 : vector<29x16xf32>
    %294 = vector.broadcast %272 : vector<1x16xf32> to vector<29x16xf32>
    %295 = arith.addf %293, %294 : vector<29x16xf32>
    %cst_268 = arith.constant 0.000000e+00 : f32
    %296 = vector.broadcast %cst_268 : f32 to vector<29x16xf32>
    %297 = arith.maximumf %295, %296 : vector<29x16xf32>
    %cst_269 = arith.constant dense<0.000000e+00> : vector<15x16xf32>
    %298 = tpu.matmul %279, %297, %cst_269 {dimension_numbers = #tpu.dot_dimension_numbers<[1], [0], [0], [1], [0, 0, 1, 1], [], []>} : vector<15x29xf32>, vector<29x16xf32>, vector<15x16xf32> -> vector<15x16xf32>
    %c0_270 = arith.constant 0 : index
    %c1_271 = arith.constant 1 : index
    %c0_272 = arith.constant 0 : index
    %299 = vector.load %arg10[%c0_270, %c1_271, %c0_272] : memref<2x17x16xf32, #tpu.memory_space<vmem>>, vector<1x15x16xf32>
    %300 = vector.shape_cast %299 : vector<1x15x16xf32> to vector<15x16xf32>
    %301 = vector.shape_cast %298 : vector<15x16xf32> to vector<1x15x16xf32>
    tpu.vector_store %arg10[%c0_270, %c1_271, %c0_272], %301 {strides = array<i32>} : memref<2x17x16xf32, #tpu.memory_space<vmem>>, vector<1x15x16xf32>,
    %c1_273 = arith.constant 1 : index
    %c0_274 = arith.constant 0 : index
    %c0_275 = arith.constant 0 : index
    %302 = vector.load %arg9[%c1_273, %c0_274, %c0_275] : memref<2x31x16xf32, #tpu.memory_space<vmem>>, vector<1x29x16xf32>
    %303 = vector.shape_cast %302 : vector<1x29x16xf32> to vector<29x16xf32>
    %c81_276 = arith.constant 81 : index
    %c0_277 = arith.constant 0 : index
    %304 = vector.load %arg2[%c81_276, %c0_277] : memref<273x32xf32, #tpu.memory_space<vmem>>, vector<16x16xf32>
    %cst_278 = arith.constant dense<0.000000e+00> : vector<29x16xf32>
    %305 = tpu.matmul %303, %304, %cst_278 {dimension_numbers = #tpu.dot_dimension_numbers<[1], [0], [0], [1], [0, 0, 1, 1], [], []>} : vector<29x16xf32>, vector<16x16xf32>, vector<29x16xf32> -> vector<29x16xf32>
    %c1_279 = arith.constant 1 : index
    %c1_280 = arith.constant 1 : index
    %c0_281 = arith.constant 0 : index
    %306 = vector.load %arg9[%c1_279, %c1_280, %c0_281] : memref<2x31x16xf32, #tpu.memory_space<vmem>>, vector<1x29x16xf32>
    %307 = vector.shape_cast %306 : vector<1x29x16xf32> to vector<29x16xf32>
    %c97_282 = arith.constant 97 : index
    %c0_283 = arith.constant 0 : index
    %308 = vector.load %arg2[%c97_282, %c0_283] : memref<273x32xf32, #tpu.memory_space<vmem>>, vector<16x16xf32>
    %cst_284 = arith.constant dense<0.000000e+00> : vector<29x16xf32>
    %309 = tpu.matmul %307, %308, %cst_284 {dimension_numbers = #tpu.dot_dimension_numbers<[1], [0], [0], [1], [0, 0, 1, 1], [], []>} : vector<29x16xf32>, vector<16x16xf32>, vector<29x16xf32> -> vector<29x16xf32>
    %310 = arith.addf %305, %309 : vector<29x16xf32>
    %c1_285 = arith.constant 1 : index
    %c2_286 = arith.constant 2 : index
    %c0_287 = arith.constant 0 : index
    %311 = vector.load %arg9[%c1_285, %c2_286, %c0_287] : memref<2x31x16xf32, #tpu.memory_space<vmem>>, vector<1x29x16xf32>
    %312 = vector.shape_cast %311 : vector<1x29x16xf32> to vector<29x16xf32>
    %c113_288 = arith.constant 113 : index
    %c0_289 = arith.constant 0 : index
    %313 = vector.load %arg2[%c113_288, %c0_289] : memref<273x32xf32, #tpu.memory_space<vmem>>, vector<16x16xf32>
    %cst_290 = arith.constant dense<0.000000e+00> : vector<29x16xf32>
    %314 = tpu.matmul %312, %313, %cst_290 {dimension_numbers = #tpu.dot_dimension_numbers<[1], [0], [0], [1], [0, 0, 1, 1], [], []>} : vector<29x16xf32>, vector<16x16xf32>, vector<29x16xf32> -> vector<29x16xf32>
    %315 = arith.addf %310, %314 : vector<29x16xf32>
    %316 = vector.broadcast %272 : vector<1x16xf32> to vector<29x16xf32>
    %317 = arith.addf %315, %316 : vector<29x16xf32>
    %cst_291 = arith.constant 0.000000e+00 : f32
    %318 = vector.broadcast %cst_291 : f32 to vector<29x16xf32>
    %319 = arith.maximumf %317, %318 : vector<29x16xf32>
    %cst_292 = arith.constant dense<0.000000e+00> : vector<15x16xf32>
    %320 = tpu.matmul %279, %319, %cst_292 {dimension_numbers = #tpu.dot_dimension_numbers<[1], [0], [0], [1], [0, 0, 1, 1], [], []>} : vector<15x29xf32>, vector<29x16xf32>, vector<15x16xf32> -> vector<15x16xf32>
    %c1_293 = arith.constant 1 : index
    %c1_294 = arith.constant 1 : index
    %c0_295 = arith.constant 0 : index
    %321 = vector.load %arg10[%c1_293, %c1_294, %c0_295] : memref<2x17x16xf32, #tpu.memory_space<vmem>>, vector<1x15x16xf32>
    %322 = vector.shape_cast %321 : vector<1x15x16xf32> to vector<15x16xf32>
    %323 = vector.shape_cast %320 : vector<15x16xf32> to vector<1x15x16xf32>
    tpu.vector_store %arg10[%c1_293, %c1_294, %c0_295], %323 {strides = array<i32>} : memref<2x17x16xf32, #tpu.memory_space<vmem>>, vector<1x15x16xf32>,
    %c5_296 = arith.constant 5 : index
    %c0_297 = arith.constant 0 : index
    %324 = vector.load %arg3[%c5_296, %c0_297] : memref<7x32xf32, #tpu.memory_space<vmem>>, vector<1x32xf32>
    %c0_298 = arith.constant 0 : index
    %c0_299 = arith.constant 0 : index
    %c0_300 = arith.constant 0 : index
    %325 = vector.load %arg10[%c0_298, %c0_299, %c0_300] : memref<2x17x16xf32, #tpu.memory_space<vmem>>, vector<1x15x16xf32>
    %326 = vector.shape_cast %325 : vector<1x15x16xf32> to vector<15x16xf32>
    %c129 = arith.constant 129 : index
    %c0_301 = arith.constant 0 : index
    %327 = vector.load %arg2[%c129, %c0_301] : memref<273x32xf32, #tpu.memory_space<vmem>>, vector<16x32xf32>
    %cst_302 = arith.constant dense<0.000000e+00> : vector<15x32xf32>
    %328 = tpu.matmul %326, %327, %cst_302 {dimension_numbers = #tpu.dot_dimension_numbers<[1], [0], [0], [1], [0, 0, 1, 1], [], []>} : vector<15x16xf32>, vector<16x32xf32>, vector<15x32xf32> -> vector<15x32xf32>
    %c0_303 = arith.constant 0 : index
    %c1_304 = arith.constant 1 : index
    %c0_305 = arith.constant 0 : index
    %329 = vector.load %arg10[%c0_303, %c1_304, %c0_305] : memref<2x17x16xf32, #tpu.memory_space<vmem>>, vector<1x15x16xf32>
    %330 = vector.shape_cast %329 : vector<1x15x16xf32> to vector<15x16xf32>
    %c145 = arith.constant 145 : index
    %c0_306 = arith.constant 0 : index
    %331 = vector.load %arg2[%c145, %c0_306] : memref<273x32xf32, #tpu.memory_space<vmem>>, vector<16x32xf32>
    %cst_307 = arith.constant dense<0.000000e+00> : vector<15x32xf32>
    %332 = tpu.matmul %330, %331, %cst_307 {dimension_numbers = #tpu.dot_dimension_numbers<[1], [0], [0], [1], [0, 0, 1, 1], [], []>} : vector<15x16xf32>, vector<16x32xf32>, vector<15x32xf32> -> vector<15x32xf32>
    %333 = arith.addf %328, %332 : vector<15x32xf32>
    %c0_308 = arith.constant 0 : index
    %c2_309 = arith.constant 2 : index
    %c0_310 = arith.constant 0 : index
    %334 = vector.load %arg10[%c0_308, %c2_309, %c0_310] : memref<2x17x16xf32, #tpu.memory_space<vmem>>, vector<1x15x16xf32>
    %335 = vector.shape_cast %334 : vector<1x15x16xf32> to vector<15x16xf32>
    %c161 = arith.constant 161 : index
    %c0_311 = arith.constant 0 : index
    %336 = vector.load %arg2[%c161, %c0_311] : memref<273x32xf32, #tpu.memory_space<vmem>>, vector<16x32xf32>
    %cst_312 = arith.constant dense<0.000000e+00> : vector<15x32xf32>
    %337 = tpu.matmul %335, %336, %cst_312 {dimension_numbers = #tpu.dot_dimension_numbers<[1], [0], [0], [1], [0, 0, 1, 1], [], []>} : vector<15x16xf32>, vector<16x32xf32>, vector<15x32xf32> -> vector<15x32xf32>
    %338 = arith.addf %333, %337 : vector<15x32xf32>
    %339 = vector.broadcast %324 : vector<1x32xf32> to vector<15x32xf32>
    %340 = arith.addf %338, %339 : vector<15x32xf32>
    %cst_313 = arith.constant 0.000000e+00 : f32
    %341 = vector.broadcast %cst_313 : f32 to vector<15x32xf32>
    %342 = arith.maximumf %340, %341 : vector<15x32xf32>
    %c0_314 = arith.constant 0 : index
    %c1_315 = arith.constant 1 : index
    %c0_316 = arith.constant 0 : index
    %343 = vector.load %arg11[%c0_314, %c1_315, %c0_316] : memref<2x17x32xf32, #tpu.memory_space<vmem>>, vector<1x15x32xf32>
    %344 = vector.shape_cast %343 : vector<1x15x32xf32> to vector<15x32xf32>
    %345 = vector.shape_cast %342 : vector<15x32xf32> to vector<1x15x32xf32>
    tpu.vector_store %arg11[%c0_314, %c1_315, %c0_316], %345 {strides = array<i32>} : memref<2x17x32xf32, #tpu.memory_space<vmem>>, vector<1x15x32xf32>,
    %c1_317 = arith.constant 1 : index
    %c0_318 = arith.constant 0 : index
    %c0_319 = arith.constant 0 : index
    %346 = vector.load %arg10[%c1_317, %c0_318, %c0_319] : memref<2x17x16xf32, #tpu.memory_space<vmem>>, vector<1x15x16xf32>
    %347 = vector.shape_cast %346 : vector<1x15x16xf32> to vector<15x16xf32>
    %c129_320 = arith.constant 129 : index
    %c0_321 = arith.constant 0 : index
    %348 = vector.load %arg2[%c129_320, %c0_321] : memref<273x32xf32, #tpu.memory_space<vmem>>, vector<16x32xf32>
    %cst_322 = arith.constant dense<0.000000e+00> : vector<15x32xf32>
    %349 = tpu.matmul %347, %348, %cst_322 {dimension_numbers = #tpu.dot_dimension_numbers<[1], [0], [0], [1], [0, 0, 1, 1], [], []>} : vector<15x16xf32>, vector<16x32xf32>, vector<15x32xf32> -> vector<15x32xf32>
    %c1_323 = arith.constant 1 : index
    %c1_324 = arith.constant 1 : index
    %c0_325 = arith.constant 0 : index
    %350 = vector.load %arg10[%c1_323, %c1_324, %c0_325] : memref<2x17x16xf32, #tpu.memory_space<vmem>>, vector<1x15x16xf32>
    %351 = vector.shape_cast %350 : vector<1x15x16xf32> to vector<15x16xf32>
    %c145_326 = arith.constant 145 : index
    %c0_327 = arith.constant 0 : index
    %352 = vector.load %arg2[%c145_326, %c0_327] : memref<273x32xf32, #tpu.memory_space<vmem>>, vector<16x32xf32>
    %cst_328 = arith.constant dense<0.000000e+00> : vector<15x32xf32>
    %353 = tpu.matmul %351, %352, %cst_328 {dimension_numbers = #tpu.dot_dimension_numbers<[1], [0], [0], [1], [0, 0, 1, 1], [], []>} : vector<15x16xf32>, vector<16x32xf32>, vector<15x32xf32> -> vector<15x32xf32>
    %354 = arith.addf %349, %353 : vector<15x32xf32>
    %c1_329 = arith.constant 1 : index
    %c2_330 = arith.constant 2 : index
    %c0_331 = arith.constant 0 : index
    %355 = vector.load %arg10[%c1_329, %c2_330, %c0_331] : memref<2x17x16xf32, #tpu.memory_space<vmem>>, vector<1x15x16xf32>
    %356 = vector.shape_cast %355 : vector<1x15x16xf32> to vector<15x16xf32>
    %c161_332 = arith.constant 161 : index
    %c0_333 = arith.constant 0 : index
    %357 = vector.load %arg2[%c161_332, %c0_333] : memref<273x32xf32, #tpu.memory_space<vmem>>, vector<16x32xf32>
    %cst_334 = arith.constant dense<0.000000e+00> : vector<15x32xf32>
    %358 = tpu.matmul %356, %357, %cst_334 {dimension_numbers = #tpu.dot_dimension_numbers<[1], [0], [0], [1], [0, 0, 1, 1], [], []>} : vector<15x16xf32>, vector<16x32xf32>, vector<15x32xf32> -> vector<15x32xf32>
    %359 = arith.addf %354, %358 : vector<15x32xf32>
    %360 = vector.broadcast %324 : vector<1x32xf32> to vector<15x32xf32>
    %361 = arith.addf %359, %360 : vector<15x32xf32>
    %cst_335 = arith.constant 0.000000e+00 : f32
    %362 = vector.broadcast %cst_335 : f32 to vector<15x32xf32>
    %363 = arith.maximumf %361, %362 : vector<15x32xf32>
    %c1_336 = arith.constant 1 : index
    %c1_337 = arith.constant 1 : index
    %c0_338 = arith.constant 0 : index
    %364 = vector.load %arg11[%c1_336, %c1_337, %c0_338] : memref<2x17x32xf32, #tpu.memory_space<vmem>>, vector<1x15x32xf32>
    %365 = vector.shape_cast %364 : vector<1x15x32xf32> to vector<15x32xf32>
    %366 = vector.shape_cast %363 : vector<15x32xf32> to vector<1x15x32xf32>
    tpu.vector_store %arg11[%c1_336, %c1_337, %c0_338], %366 {strides = array<i32>} : memref<2x17x32xf32, #tpu.memory_space<vmem>>, vector<1x15x32xf32>,
    %c6_339 = arith.constant 6 : index
    %c0_340 = arith.constant 0 : index
    %367 = vector.load %arg3[%c6_339, %c0_340] : memref<7x32xf32, #tpu.memory_space<vmem>>, vector<1x32xf32>
    %368 = tpu.iota {dimensions = array<i32: 0>} : vector<8x15xi32>
    %369 = tpu.iota {dimensions = array<i32: 1>} : vector<8x15xi32>
    %c2_i32_341 = arith.constant 2 : i32
    %370 = vector.broadcast %c2_i32_341 : i32 to vector<8x15xi32>
    %371 = arith.muli %370, %368 : vector<8x15xi32>
    %372 = arith.cmpi eq, %369, %371 : vector<8x15xi32>
    %373 = arith.extui %372 : vector<8x15xi1> to vector<8x15xi32>
    %374 = arith.sitofp %373 : vector<8x15xi32> to vector<8x15xf32>
    %c0_342 = arith.constant 0 : index
    %c0_343 = arith.constant 0 : index
    %c0_344 = arith.constant 0 : index
    %375 = vector.load %arg11[%c0_342, %c0_343, %c0_344] : memref<2x17x32xf32, #tpu.memory_space<vmem>>, vector<1x15x32xf32>
    %376 = vector.shape_cast %375 : vector<1x15x32xf32> to vector<15x32xf32>
    %c177 = arith.constant 177 : index
    %c0_345 = arith.constant 0 : index
    %377 = vector.load %arg2[%c177, %c0_345] : memref<273x32xf32, #tpu.memory_space<vmem>>, vector<32x32xf32>
    %cst_346 = arith.constant dense<0.000000e+00> : vector<15x32xf32>
    %378 = tpu.matmul %376, %377, %cst_346 {dimension_numbers = #tpu.dot_dimension_numbers<[1], [0], [0], [1], [0, 0, 1, 1], [], []>} : vector<15x32xf32>, vector<32x32xf32>, vector<15x32xf32> -> vector<15x32xf32>
    %c0_347 = arith.constant 0 : index
    %c1_348 = arith.constant 1 : index
    %c0_349 = arith.constant 0 : index
    %379 = vector.load %arg11[%c0_347, %c1_348, %c0_349] : memref<2x17x32xf32, #tpu.memory_space<vmem>>, vector<1x15x32xf32>
    %380 = vector.shape_cast %379 : vector<1x15x32xf32> to vector<15x32xf32>
    %c209 = arith.constant 209 : index
    %c0_350 = arith.constant 0 : index
    %381 = vector.load %arg2[%c209, %c0_350] : memref<273x32xf32, #tpu.memory_space<vmem>>, vector<32x32xf32>
    %cst_351 = arith.constant dense<0.000000e+00> : vector<15x32xf32>
    %382 = tpu.matmul %380, %381, %cst_351 {dimension_numbers = #tpu.dot_dimension_numbers<[1], [0], [0], [1], [0, 0, 1, 1], [], []>} : vector<15x32xf32>, vector<32x32xf32>, vector<15x32xf32> -> vector<15x32xf32>
    %383 = arith.addf %378, %382 : vector<15x32xf32>
    %c0_352 = arith.constant 0 : index
    %c2_353 = arith.constant 2 : index
    %c0_354 = arith.constant 0 : index
    %384 = vector.load %arg11[%c0_352, %c2_353, %c0_354] : memref<2x17x32xf32, #tpu.memory_space<vmem>>, vector<1x15x32xf32>
    %385 = vector.shape_cast %384 : vector<1x15x32xf32> to vector<15x32xf32>
    %c241 = arith.constant 241 : index
    %c0_355 = arith.constant 0 : index
    %386 = vector.load %arg2[%c241, %c0_355] : memref<273x32xf32, #tpu.memory_space<vmem>>, vector<32x32xf32>
    %cst_356 = arith.constant dense<0.000000e+00> : vector<15x32xf32>
    %387 = tpu.matmul %385, %386, %cst_356 {dimension_numbers = #tpu.dot_dimension_numbers<[1], [0], [0], [1], [0, 0, 1, 1], [], []>} : vector<15x32xf32>, vector<32x32xf32>, vector<15x32xf32> -> vector<15x32xf32>
    %388 = arith.addf %383, %387 : vector<15x32xf32>
    %389 = vector.broadcast %367 : vector<1x32xf32> to vector<15x32xf32>
    %390 = arith.addf %388, %389 : vector<15x32xf32>
    %cst_357 = arith.constant 0.000000e+00 : f32
    %391 = vector.broadcast %cst_357 : f32 to vector<15x32xf32>
    %392 = arith.maximumf %390, %391 : vector<15x32xf32>
    %cst_358 = arith.constant dense<0.000000e+00> : vector<8x32xf32>
    %393 = tpu.matmul %374, %392, %cst_358 {dimension_numbers = #tpu.dot_dimension_numbers<[1], [0], [0], [1], [0, 0, 1, 1], [], []>} : vector<8x15xf32>, vector<15x32xf32>, vector<8x32xf32> -> vector<8x32xf32>
    %cst_359 = arith.constant dense<0.000000e+00> : vector<32xf32>
    %394 = vector.multi_reduction <add>, %393, %cst_359 [0] : vector<8x32xf32> to vector<32xf32>
    %395 = vector.shape_cast %394 : vector<32xf32> to vector<1x32xf32>
    %cst_360 = arith.constant 8.000000e+00 : f32
    %396 = vector.broadcast %cst_360 : f32 to vector<1x32xf32>
    %397 = arith.divf %395, %396 : vector<1x32xf32>
    %c0_361 = arith.constant 0 : index
    %c0_362 = arith.constant 0 : index
    %398 = vector.load %arg4[%c0_361, %c0_362] : memref<2x32xf32, #tpu.memory_space<vmem>>, vector<1x32xf32>
    tpu.vector_store %arg4[%c0_361, %c0_362], %397 {strides = array<i32>} : memref<2x32xf32, #tpu.memory_space<vmem>>, vector<1x32xf32>,
    %c1_363 = arith.constant 1 : index
    %c0_364 = arith.constant 0 : index
    %c0_365 = arith.constant 0 : index
    %399 = vector.load %arg11[%c1_363, %c0_364, %c0_365] : memref<2x17x32xf32, #tpu.memory_space<vmem>>, vector<1x15x32xf32>
    %400 = vector.shape_cast %399 : vector<1x15x32xf32> to vector<15x32xf32>
    %c177_366 = arith.constant 177 : index
    %c0_367 = arith.constant 0 : index
    %401 = vector.load %arg2[%c177_366, %c0_367] : memref<273x32xf32, #tpu.memory_space<vmem>>, vector<32x32xf32>
    %cst_368 = arith.constant dense<0.000000e+00> : vector<15x32xf32>
    %402 = tpu.matmul %400, %401, %cst_368 {dimension_numbers = #tpu.dot_dimension_numbers<[1], [0], [0], [1], [0, 0, 1, 1], [], []>} : vector<15x32xf32>, vector<32x32xf32>, vector<15x32xf32> -> vector<15x32xf32>
    %c1_369 = arith.constant 1 : index
    %c1_370 = arith.constant 1 : index
    %c0_371 = arith.constant 0 : index
    %403 = vector.load %arg11[%c1_369, %c1_370, %c0_371] : memref<2x17x32xf32, #tpu.memory_space<vmem>>, vector<1x15x32xf32>
    %404 = vector.shape_cast %403 : vector<1x15x32xf32> to vector<15x32xf32>
    %c209_372 = arith.constant 209 : index
    %c0_373 = arith.constant 0 : index
    %405 = vector.load %arg2[%c209_372, %c0_373] : memref<273x32xf32, #tpu.memory_space<vmem>>, vector<32x32xf32>
    %cst_374 = arith.constant dense<0.000000e+00> : vector<15x32xf32>
    %406 = tpu.matmul %404, %405, %cst_374 {dimension_numbers = #tpu.dot_dimension_numbers<[1], [0], [0], [1], [0, 0, 1, 1], [], []>} : vector<15x32xf32>, vector<32x32xf32>, vector<15x32xf32> -> vector<15x32xf32>
    %407 = arith.addf %402, %406 : vector<15x32xf32>
    %c1_375 = arith.constant 1 : index
    %c2_376 = arith.constant 2 : index
    %c0_377 = arith.constant 0 : index
    %408 = vector.load %arg11[%c1_375, %c2_376, %c0_377] : memref<2x17x32xf32, #tpu.memory_space<vmem>>, vector<1x15x32xf32>
    %409 = vector.shape_cast %408 : vector<1x15x32xf32> to vector<15x32xf32>
    %c241_378 = arith.constant 241 : index
    %c0_379 = arith.constant 0 : index
    %410 = vector.load %arg2[%c241_378, %c0_379] : memref<273x32xf32, #tpu.memory_space<vmem>>, vector<32x32xf32>
    %cst_380 = arith.constant dense<0.000000e+00> : vector<15x32xf32>
    %411 = tpu.matmul %409, %410, %cst_380 {dimension_numbers = #tpu.dot_dimension_numbers<[1], [0], [0], [1], [0, 0, 1, 1], [], []>} : vector<15x32xf32>, vector<32x32xf32>, vector<15x32xf32> -> vector<15x32xf32>
    %412 = arith.addf %407, %411 : vector<15x32xf32>
    %413 = vector.broadcast %367 : vector<1x32xf32> to vector<15x32xf32>
    %414 = arith.addf %412, %413 : vector<15x32xf32>
    %cst_381 = arith.constant 0.000000e+00 : f32
    %415 = vector.broadcast %cst_381 : f32 to vector<15x32xf32>
    %416 = arith.maximumf %414, %415 : vector<15x32xf32>
    %cst_382 = arith.constant dense<0.000000e+00> : vector<8x32xf32>
    %417 = tpu.matmul %374, %416, %cst_382 {dimension_numbers = #tpu.dot_dimension_numbers<[1], [0], [0], [1], [0, 0, 1, 1], [], []>} : vector<8x15xf32>, vector<15x32xf32>, vector<8x32xf32> -> vector<8x32xf32>
    %cst_383 = arith.constant dense<0.000000e+00> : vector<32xf32>
    %418 = vector.multi_reduction <add>, %417, %cst_383 [0] : vector<8x32xf32> to vector<32xf32>
    %419 = vector.shape_cast %418 : vector<32xf32> to vector<1x32xf32>
    %cst_384 = arith.constant 8.000000e+00 : f32
    %420 = vector.broadcast %cst_384 : f32 to vector<1x32xf32>
    %421 = arith.divf %419, %420 : vector<1x32xf32>
    %c1_385 = arith.constant 1 : index
    %c0_386 = arith.constant 0 : index
    %422 = vector.load %arg4[%c1_385, %c0_386] : memref<2x32xf32, #tpu.memory_space<vmem>>, vector<1x32xf32>
    tpu.vector_store %arg4[%c1_385, %c0_386], %421 {strides = array<i32>} : memref<2x32xf32, #tpu.memory_space<vmem>>, vector<1x32xf32>,
    return
  }
  func.func @transform_0(%arg0: i32) -> (i32, i32, i32) {
    %c0_i32 = arith.constant 0 : i32
    %c0_i32_0 = arith.constant 0 : i32
    %c0_i32_1 = arith.constant 0 : i32
    %c0_i32_2 = arith.constant 0 : i32
    return %c0_i32, %c0_i32_0, %c0_i32_1 : i32, i32, i32
  }
  func.func @transform_1(%arg0: i32) -> (i32, i32) {
    %c0_i32 = arith.constant 0 : i32
    %c0_i32_0 = arith.constant 0 : i32
    %c0_i32_1 = arith.constant 0 : i32
    return %c0_i32, %c0_i32_0 : i32, i32
  }
  func.func @transform_2(%arg0: i32) -> (i32, i32) {
    %c0_i32 = arith.constant 0 : i32
    %c0_i32_0 = arith.constant 0 : i32
    %c0_i32_1 = arith.constant 0 : i32
    return %c0_i32, %c0_i32_0 : i32, i32
  }
  func.func @transform_3(%arg0: i32) -> (i32, i32) {
    %c0_i32 = arith.constant 0 : i32
    %c0_i32_0 = arith.constant 0 : i32
    %c0_i32_1 = arith.constant 0 : i32
    return %c0_i32, %c0_i32_0 : i32, i32
  }
}

</mosaic_0001>

<bundles_post_ra>
// kernel: _lambda_.1
= control target key start
LH: loop header
LB: loop body
LE: loop exit
PB: predicated region body
PF: predicated region fallthrough
CT: control target
= control target key end

     0   :  { %8 = vsyncpa [#allocation10], 0  ;;  %s12784_s0 = inlined_call_operand.vmem [shape: f32[2,128,3], index: 0, kind: input, shape index: {}]   ;;  %s12785_s1 = inlined_call_operand.hbm [shape: f32[273,32], index: 1, kind: input, shape index: {}]   ;;  %s12786_s2 = inlined_call_operand.vmem [shape: f32[7,32], index: 2, kind: input, shape index: {}]   ;;  %s12787_s3 = inlined_call_operand.hbm [shape: f32[2,32], index: 3, kind: output, shape index: {}]  }
   0x1   :  { %9 = vsyncpa [#allocation11], 0  ;;  %s11321_s12 = smov [#allocation9]   ;;  %s11273_s16 = scalar_lea.hbm %s12785_s1, 4480 }
   0x2   :  { %s17_s13 = sshll.u32 %s11321_s12, 4  ;;  %p11274_p0 = scmp.ne.s32.totalorder %s12785_s1, %s11273_s16  ;;  %s18_s13 = int_to_ptr.vmem [resolvable:$true] %s17_s13 }
   0x3   :  { %p11277_p1 = scmp.lt.u32.totalorder %s11273_s16, %s12785_s1 }
   0x5   :  { %p11279_p2 = pnand %p11277_p1, %p11274_p0 }
   0x7   :  { %11282 = shalt.err (!%p11279_p2)
}
   0x8   :  { %s11283_s21 = scalar_lea.vmem %s18_s13, 4480  ;;  %p11288_p4 = scmp.lt.s32.totalorder %s18_s13, %s18_s13 }
   0x9   :  { %p11284_p3 = scmp.ne.s32.totalorder %s18_s13, %s11283_s21  ;;  %p11289_p5 = scmp.lt.s32.totalorder %s11283_s21, %s11283_s21 }
   0xb   :  { %p11290_p6 = por %p11289_p5, %p11288_p4 }
   0xd   :  { %p11291_p7 = pnand %p11290_p6, %p11284_p3 }
   0xf   :  { %11294 = shalt.err (!%p11291_p7)
}
  0x10   :  { %s11322_s22 = smov 128   ;;  %s11323_s23 = smov 8  }
  0x11   :  { %23 = dma.hbm_to_vmem [thread:$0]  %s12785_s1, 4480, %s18_s13, [#allocation10], %s11322_s22, %s11322_s22, %s11323_s23  }
  0x12   :  { %11317 = dma.done.wait [#allocation10], 4480  }
  0x13   :  { %11318 = vsyncadd [#allocation10], 4294962816  ;;  %vm29_vm0 = vcmask 23552   ;;  %vm46_vm1 = vcmask 21504   ;;  %v11324_v0 = vmov 0.0   ;;  %vm325_vm2 = vcmask 1042432  }
  0x14   :  { %30 = vst.msk [vmem:[#allocation2] sm:$0xff] %vm29_vm0, %v11324_v0  ;;  %31 = vst.msk [vmem:[#allocation2 + $0x8] sm:$0xff] %vm29_vm0, %v11324_v0  ;;  %v276_v1 = vld [vmem:[#allocation9 + $0x3] sm:$0x7]  ;;  %v135_v2 = vld [vmem:[%s12784_s0] sm:$0xff]  ;;  %vm65_vm11 = vcmask 31744  }
  0x15   :  { %32 = vst.msk [vmem:[#allocation2 + $0x10] sm:$0xff] %vm29_vm0, %v11324_v0  ;;  %33 = vst.msk [vmem:[#allocation2 + $0x18] sm:$0xff] %vm29_vm0, %v11324_v0  ;;  %v136_v3 = vld [vmem:[%s12784_s0 + $0x8] sm:$0xff]  ;;  %9817 = vmatprep.subr.msk.mxu0 %vm325_vm2, %v276_v1  ;;  %v259_v4 = vld [vmem:[#allocation9] sm:$0x7]  ;;  %vm73_vm12 = vcmask 27648  }
  0x16   :  { %34 = vst.msk [vmem:[#allocation2 + $0x20] sm:$0xff] %vm29_vm0, %v11324_v0  ;;  %35 = vst.msk [vmem:[#allocation2 + $0x28] sm:$0xff] %vm29_vm0, %v11324_v0  ;;  %v137_v5 = vld [vmem:[%s12784_s0 + $0x10] sm:$0xff]  ;;  %v138_v6 = vld [vmem:[%s12784_s0 + $0x18] sm:$0xff]  ;;  %9818 = vmatpush3.msk.msra.mxu0 %vm325_vm2, %v276_v1  ;;  %vm1964_vm13 = vcmask 1046528   ;;  %vm1996_vm14 = vcmask 1045504  }
  0x17   :  { %36 = vst.msk [vmem:[#allocation2 + $0x30] sm:$0xff] %vm29_vm0, %v11324_v0  ;;  %37 = vst.msk [vmem:[#allocation2 + $0x38] sm:$0xff] %vm29_vm0, %v11324_v0  ;;  %v139_v7 = vld [vmem:[%s12784_s0 + $0x20] sm:$0xff]  ;;  %v140_v8 = vld [vmem:[%s12784_s0 + $0x28] sm:$0xff]  ;;  %9843 = vmatprep.subr.msk.mxu0 %vm325_vm2, %v259_v4  ;;  %vm2028_vm15 = vcmask 1044480  }
  0x18   :  { %38 = vst.msk [vmem:[#allocation2 + $0x40] sm:$0xff] %vm29_vm0, %v11324_v0  ;;  %39 = vst.msk [vmem:[#allocation2 + $0x48] sm:$0xff] %vm29_vm0, %v11324_v0  ;;  %v141_v9 = vld [vmem:[%s12784_s0 + $0x30] sm:$0xff]  ;;  %v142_v10 = vld [vmem:[%s12784_s0 + $0x38] sm:$0xff] }
  0x19   :  { %40 = vst.msk [vmem:[#allocation2 + $0x50] sm:$0xff] %vm29_vm0, %v11324_v0  ;;  %41 = vst.msk [vmem:[#allocation2 + $0x58] sm:$0xff] %vm29_vm0, %v11324_v0  ;;  %v143_v11 = vld [vmem:[%s12784_s0 + $0x40] sm:$0xff]  ;;  %v144_v12 = vld [vmem:[%s12784_s0 + $0x48] sm:$0xff] }
  0x1a   :  { %42 = vst.msk [vmem:[#allocation2 + $0x60] sm:$0xff] %vm29_vm0, %v11324_v0  ;;  %43 = vst.msk [vmem:[#allocation2 + $0x68] sm:$0xff] %vm29_vm0, %v11324_v0  ;;  %v145_v13 = vld [vmem:[%s12784_s0 + $0x50] sm:$0xff]  ;;  %v146_v14 = vld [vmem:[%s12784_s0 + $0x58] sm:$0xff] }
  0x1b   :  { %44 = vst.msk [vmem:[#allocation2 + $0x70] sm:$0xff] %vm29_vm0, %v11324_v0  ;;  %45 = vst.msk [vmem:[#allocation2 + $0x78] sm:$0xff] %vm29_vm0, %v11324_v0  ;;  %v147_v15 = vld [vmem:[%s12784_s0 + $0x60] sm:$0xff]  ;;  %v148_v16 = vld [vmem:[%s12784_s0 + $0x68] sm:$0xff] }
  0x1c   :  { %48 = vst.msk [vmem:[#allocation2 + $0x88] sm:$0xff] %vm29_vm0, %v11324_v0  ;;  %49 = vst.msk [vmem:[#allocation2 + $0x90] sm:$0xff] %vm29_vm0, %v11324_v0  ;;  %v149_v17 = vld [vmem:[%s12784_s0 + $0x70] sm:$0xff]  ;;  %v150_v18 = vld [vmem:[%s12784_s0 + $0x78] sm:$0xff] }
  0x1d   :  { %50 = vst.msk [vmem:[#allocation2 + $0x98] sm:$0xff] %vm29_vm0, %v11324_v0  ;;  %51 = vst.msk [vmem:[#allocation2 + $0xa0] sm:$0xff] %vm29_vm0, %v11324_v0  ;;  %v686_v22 = vld [vmem:[#allocation9 + $0x6] sm:$0x7]  ;;  %v915_v39 = vld [vmem:[#allocation9 + $0x9] sm:$0x7] }
  0x1e   :  { %52 = vst.msk [vmem:[#allocation2 + $0xa8] sm:$0xff] %vm29_vm0, %v11324_v0  ;;  %53 = vst.msk [vmem:[#allocation2 + $0xb0] sm:$0xff] %vm29_vm0, %v11324_v0  ;;  %v1144_v56 = vld [vmem:[#allocation9 + $0xc] sm:$0x7] }
  0x1f   :  { %54 = vst.msk [vmem:[#allocation2 + $0xb8] sm:$0xff] %vm29_vm0, %v11324_v0  ;;  %55 = vst.msk [vmem:[#allocation2 + $0xc0] sm:$0xff] %vm29_vm0, %v11324_v0 }
  0x20   :  { %56 = vst.msk [vmem:[#allocation2 + $0xc8] sm:$0xff] %vm29_vm0, %v11324_v0  ;;  %57 = vst.msk [vmem:[#allocation2 + $0xd0] sm:$0xff] %vm29_vm0, %v11324_v0 }
  0x21   :  { %58 = vst.msk [vmem:[#allocation2 + $0xd8] sm:$0xff] %vm29_vm0, %v11324_v0  ;;  %59 = vst.msk [vmem:[#allocation2 + $0xe0] sm:$0xff] %vm29_vm0, %v11324_v0 }
  0x22   :  { %60 = vst.msk [vmem:[#allocation2 + $0xe8] sm:$0xff] %vm29_vm0, %v11324_v0  ;;  %61 = vst.msk [vmem:[#allocation2 + $0xf0] sm:$0xff] %vm29_vm0, %v11324_v0 }
  0x23   :  { %62 = vst.msk [vmem:[#allocation2 + $0xf8] sm:$0xff] %vm29_vm0, %v11324_v0  ;;  %63 = vst.msk [vmem:[#allocation2 + $0x100] sm:$0xff] %vm29_vm0, %v11324_v0 }
  0x24   :  { %47 = vst.msk [vmem:[#allocation2 + $0x80] sm:$0x3f] %vm46_vm1, %v11324_v0  ;;  %64 = vst.msk [vmem:[#allocation2 + $0x108] sm:$0x3f] %vm46_vm1, %v11324_v0  ;;  %vm2060_vm1 = vcmask 1043456  }
  0x25   :  { %167 = vst.msk [vmem:[#allocation2 + $0x3] sm:$0xff] %vm29_vm0, %v135_v2  ;;  %168 = vst.msk [vmem:[#allocation2 + $0xb] sm:$0xff] %vm29_vm0, %v136_v3 }
  0x26   :  { %169 = vst.msk [vmem:[#allocation2 + $0x13] sm:$0xff] %vm29_vm0, %v137_v5  ;;  %170 = vst.msk [vmem:[#allocation2 + $0x1b] sm:$0xff] %vm29_vm0, %v138_v6 }
  0x27   :  { %171 = vst.msk [vmem:[#allocation2 + $0x23] sm:$0xff] %vm29_vm0, %v139_v7  ;;  %172 = vst.msk [vmem:[#allocation2 + $0x2b] sm:$0xff] %vm29_vm0, %v140_v8 }
  0x28   :  { %173 = vst.msk [vmem:[#allocation2 + $0x33] sm:$0xff] %vm29_vm0, %v141_v9  ;;  %174 = vst.msk [vmem:[#allocation2 + $0x3b] sm:$0xff] %vm29_vm0, %v142_v10  ;;  %v1373_v10 = vld [vmem:[#allocation9 + $0xf] sm:$0x7] }
  0x29   :  { %175 = vst.msk [vmem:[#allocation2 + $0x43] sm:$0xff] %vm29_vm0, %v143_v11  ;;  %176 = vst.msk [vmem:[#allocation2 + $0x4b] sm:$0xff] %vm29_vm0, %v144_v12 }
  0x2a   :  { %177 = vst.msk [vmem:[#allocation2 + $0x53] sm:$0xff] %vm29_vm0, %v145_v13  ;;  %178 = vst.msk [vmem:[#allocation2 + $0x5b] sm:$0xff] %vm29_vm0, %v146_v14 }
  0x2b   :  { %179 = vst.msk [vmem:[#allocation2 + $0x63] sm:$0xff] %vm29_vm0, %v147_v15  ;;  %180 = vst.msk [vmem:[#allocation2 + $0x6b] sm:$0xff] %vm29_vm0, %v148_v16 }
  0x2c   :  { %181 = vst.msk [vmem:[#allocation2 + $0x73] sm:$0xff] %vm29_vm0, %v149_v17  ;;  %182 = vst.msk [vmem:[#allocation2 + $0x7b] sm:$0xff] %vm29_vm0, %v150_v18  ;;  %v260_v19 = vld [vmem:[#allocation2 + $0x1] sm:$0xff]  ;;  %v261_v20 = vld [vmem:[#allocation2 + $0x9] sm:$0xff] }
  0x2d   :  { %9819 = vmatprep.mubr.msk.f32.mxu0 %vm29_vm0, %v260_v19  ;;  %v262_v21 = vld [vmem:[#allocation2 + $0x11] sm:$0xff]  ;;  %v263_v23 = vld [vmem:[#allocation2 + $0x19] sm:$0xff]  ;;  %v244_v37 = vld [vmem:[#allocation2 + $0x8] sm:$0xff]  ;;  %66 = vst.msk [vmem:[#allocation3] sm:$0xff] %vm65_vm11, %v11324_v0 }
  0x2e   :  { %9820 = vmatmul.mubr.msk.f32.vlgmr.msra.gmra.mrb[0].mxu0 %vm29_vm0, %v261_v20  ;;  %v264_v24 = vld [vmem:[#allocation2 + $0x21] sm:$0xff]  ;;  %v265_v25 = vld [vmem:[#allocation2 + $0x29] sm:$0xff]  ;;  %v246_v40 = vld [vmem:[#allocation2 + $0x18] sm:$0xff]  ;;  %67 = vst.msk [vmem:[#allocation3 + $0x8] sm:$0xff] %vm65_vm11, %v11324_v0 }
  0x2f   :  { %9844 = vmatpush3.msk.msra.mxu0 %vm325_vm2, %v259_v4  ;;  %9822 = vmatprep.mubr.msk.f32.mxu0 %vm29_vm0, %v262_v21  ;;  %v266_v26 = vld [vmem:[#allocation2 + $0x31] sm:$0xff]  ;;  %v267_v27 = vld [vmem:[#allocation2 + $0x39] sm:$0xff]  ;;  %v248_v42 = vld [vmem:[#allocation2 + $0x28] sm:$0xff]  ;;  %68 = vst.msk [vmem:[#allocation3 + $0x10] sm:$0xff] %vm65_vm11, %v11324_v0 }
  0x30   :  { %9869 = vmatprep.subr.msk.mxu0 %vm325_vm2, %v686_v22  ;;  %v268_v28 = vld [vmem:[#allocation2 + $0x41] sm:$0xff]  ;;  %v269_v29 = vld [vmem:[#allocation2 + $0x49] sm:$0xff]  ;;  %v250_v44 = vld [vmem:[#allocation2 + $0x38] sm:$0xff]  ;;  %69 = vst.msk [vmem:[#allocation3 + $0x18] sm:$0xff] %vm65_vm11, %v11324_v0 }
  0x31   :  { %v270_v30 = vld [vmem:[#allocation2 + $0x51] sm:$0xff]  ;;  %v271_v31 = vld [vmem:[#allocation2 + $0x59] sm:$0xff]  ;;  %v252_v46 = vld [vmem:[#allocation2 + $0x48] sm:$0xff]  ;;  %70 = vst.msk [vmem:[#allocation3 + $0x20] sm:$0xff] %vm65_vm11, %v11324_v0 }
  0x32   :  { %9823 = vmatmul.mubr.msk.f32.gmra.mrb[2].mxu0 %vm29_vm0, %v263_v23  ;;  %v272_v32 = vld [vmem:[#allocation2 + $0x61] sm:$0xff]  ;;  %v273_v33 = vld [vmem:[#allocation2 + $0x69] sm:$0xff]  ;;  %v254_v48 = vld [vmem:[#allocation2 + $0x58] sm:$0xff]  ;;  %71 = vst.msk [vmem:[#allocation3 + $0x28] sm:$0xff] %vm65_vm11, %v11324_v0 }
  0x33   :  { %9825 = vmatprep.mubr.msk.f32.mxu0 %vm29_vm0, %v264_v24  ;;  %v274_v34 = vld [vmem:[#allocation2 + $0x71] sm:$0xff]  ;;  %v275_v35 = vld [vmem:[#allocation2 + $0x79] sm:$0xff]  ;;  %v256_v50 = vld [vmem:[#allocation2 + $0x68] sm:$0xff]  ;;  %72 = vst.msk [vmem:[#allocation3 + $0x30] sm:$0xff] %vm65_vm11, %v11324_v0 }
  0x34   :  { %v243_v36 = vld [vmem:[#allocation2] sm:$0xff]  ;;  %v245_v38 = vld [vmem:[#allocation2 + $0x10] sm:$0xff]  ;;  %v258_v52 = vld [vmem:[#allocation2 + $0x78] sm:$0xff]  ;;  %75 = vst.msk [vmem:[#allocation3 + $0x40] sm:$0xff] %vm65_vm11, %v11324_v0 }
  0x35   :  { %v247_v41 = vld [vmem:[#allocation2 + $0x20] sm:$0xff]  ;;  %v249_v43 = vld [vmem:[#allocation2 + $0x30] sm:$0xff]  ;;  %76 = vst.msk [vmem:[#allocation3 + $0x48] sm:$0xff] %vm65_vm11, %v11324_v0  ;;  %77 = vst.msk [vmem:[#allocation3 + $0x50] sm:$0xff] %vm65_vm11, %v11324_v0 }
  0x36   :  { %9826 = vmatmul.mubr.msk.f32.gmra.mrb[4].mxu0 %vm29_vm0, %v265_v25  ;;  %v251_v45 = vld [vmem:[#allocation2 + $0x40] sm:$0xff]  ;;  %v253_v47 = vld [vmem:[#allocation2 + $0x50] sm:$0xff]  ;;  %78 = vst.msk [vmem:[#allocation3 + $0x58] sm:$0xff] %vm65_vm11, %v11324_v0  ;;  %79 = vst.msk [vmem:[#allocation3 + $0x60] sm:$0xff] %vm65_vm11, %v11324_v0 }
  0x37   :  { %9828 = vmatprep.mubr.msk.f32.mxu0 %vm29_vm0, %v266_v26  ;;  %v255_v49 = vld [vmem:[#allocation2 + $0x60] sm:$0xff]  ;;  %v257_v51 = vld [vmem:[#allocation2 + $0x70] sm:$0xff]  ;;  %80 = vst.msk [vmem:[#allocation3 + $0x68] sm:$0xff] %vm65_vm11, %v11324_v0  ;;  %81 = vst.msk [vmem:[#allocation3 + $0x70] sm:$0xff] %vm65_vm11, %v11324_v0 }
  0x38   :  { %v670_v53 = vld [vmem:[#allocation2 + $0x2] sm:$0xff]  ;;  %v671_v54 = vld [vmem:[#allocation2 + $0xa] sm:$0xff]  ;;  %v672_v55 = vld [vmem:[#allocation2 + $0x12] sm:$0xff]  ;;  %74 = vst.msk [vmem:[#allocation3 + $0x38] sm:$0xf] %vm73_vm12, %v11324_v0 }
  0x39   :  { %v673_v57 = vld [vmem:[#allocation2 + $0x1a] sm:$0xff]  ;;  %v674_v58 = vld [vmem:[#allocation2 + $0x22] sm:$0xff]  ;;  %v675_v59 = vld [vmem:[#allocation2 + $0x2a] sm:$0xff]  ;;  %82 = vst.msk [vmem:[#allocation3 + $0x78] sm:$0xf] %vm73_vm12, %v11324_v0  ;;  %vm2123_vm12 = vcmask 1041408  }
  0x3a   :  { %9829 = vmatmul.mubr.msk.f32.gmra.mrb[6].mxu0 %vm29_vm0, %v267_v27  ;;  %v676_v60 = vld [vmem:[#allocation2 + $0x32] sm:$0xff]  ;;  %v677_v61 = vld [vmem:[#allocation2 + $0x3a] sm:$0xff]  ;;  %v678_v62 = vld [vmem:[#allocation2 + $0x42] sm:$0xff] }
  0x3b   :  { %9831 = vmatprep.mubr.msk.f32.mxu0 %vm29_vm0, %v268_v28  ;;  %v679_v63 = vld [vmem:[#allocation2 + $0x4a] sm:$0xff]  ;;  %v680_v1 = vld [vmem:[#allocation2 + $0x52] sm:$0xff]  ;;  %v681_v2 = vld [vmem:[#allocation2 + $0x5a] sm:$0xff] }
  0x3c   :  { %v682_v3 = vld [vmem:[#allocation2 + $0x62] sm:$0xff]  ;;  %v683_v4 = vld [vmem:[#allocation2 + $0x6a] sm:$0xff]  ;;  %v684_v5 = vld [vmem:[#allocation2 + $0x72] sm:$0xff] }
  0x3d   :  { %v685_v6 = vld [vmem:[#allocation2 + $0x7a] sm:$0xff]  ;;  %v899_v7 = vld [vmem:[#allocation2 + $0x3] sm:$0xff]  ;;  %v900_v8 = vld [vmem:[#allocation2 + $0xb] sm:$0xff] }
  0x3e   :  { %9832 = vmatmul.mubr.msk.f32.gmra.mrb[8].mxu0 %vm29_vm0, %v269_v29  ;;  %v901_v9 = vld [vmem:[#allocation2 + $0x13] sm:$0xff]  ;;  %v902_v11 = vld [vmem:[#allocation2 + $0x1b] sm:$0xff]  ;;  %v903_v12 = vld [vmem:[#allocation2 + $0x23] sm:$0xff] }
  0x3f   :  { %9834 = vmatprep.mubr.msk.f32.mxu0 %vm29_vm0, %v270_v30  ;;  %v904_v13 = vld [vmem:[#allocation2 + $0x2b] sm:$0xff]  ;;  %v905_v14 = vld [vmem:[#allocation2 + $0x33] sm:$0xff]  ;;  %v906_v15 = vld [vmem:[#allocation2 + $0x3b] sm:$0xff] }
  0x40   :  { %v907_v16 = vld [vmem:[#allocation2 + $0x43] sm:$0xff]  ;;  %v908_v17 = vld [vmem:[#allocation2 + $0x4b] sm:$0xff]  ;;  %v909_v18 = vld [vmem:[#allocation2 + $0x53] sm:$0xff] }
  0x41   :  { %v910_v19 = vld [vmem:[#allocation2 + $0x5b] sm:$0xff]  ;;  %v911_v20 = vld [vmem:[#allocation2 + $0x63] sm:$0xff]  ;;  %v912_v21 = vld [vmem:[#allocation2 + $0x6b] sm:$0xff] }
  0x42   :  { %9835 = vmatmul.mubr.msk.f32.gmra.mrb[10].mxu0 %vm29_vm0, %v271_v31  ;;  %v914_v23 = vld [vmem:[#allocation2 + $0x7b] sm:$0xff]  ;;  %v1128_v24 = vld [vmem:[#allocation2 + $0x4] sm:$0xff]  ;;  %v1129_v25 = vld [vmem:[#allocation2 + $0xc] sm:$0xff] }
  0x43   :  { %9837 = vmatprep.mubr.msk.f32.mxu0 %vm29_vm0, %v272_v32  ;;  %v1130_v26 = vld [vmem:[#allocation2 + $0x14] sm:$0xff]  ;;  %v1602_v27 = vld [vmem:[#allocation9 + $0x12] sm:$0x7]  ;;  %v1133_v30 = vld [vmem:[#allocation2 + $0x2c] sm:$0xff] }
  0x44   :  { %v1131_v28 = vld [vmem:[#allocation2 + $0x1c] sm:$0xff]  ;;  %v1132_v29 = vld [vmem:[#allocation2 + $0x24] sm:$0xff]  ;;  %v1134_v31 = vld [vmem:[#allocation2 + $0x34] sm:$0xff] }
  0x45   :  { %v1135_v32 = vld [vmem:[#allocation2 + $0x3c] sm:$0xff] }
  0x46   :  { %9838 = vmatmul.mubr.msk.f32.gmra.mrb[12].mxu0 %vm29_vm0, %v273_v33  ;;  %v1136_v33 = vld [vmem:[#allocation2 + $0x44] sm:$0xff] }
  0x47   :  { %9840 = vmatprep.mubr.msk.f32.mxu0 %vm29_vm0, %v274_v34  ;;  %v1137_v34 = vld [vmem:[#allocation2 + $0x4c] sm:$0xff] }
  0x4a   :  { %9841 = vmatmul.mubr.msk.f32.gmra.mrb[14].mxu0 %vm29_vm0, %v275_v35  ;;  %v1138_v35 = vld [vmem:[#allocation2 + $0x54] sm:$0xff] }
  0x4b   :  { %9845 = vmatprep.mubr.msk.f32.mxu0 %vm29_vm0, %v243_v36  ;;  %v1139_v36 = vld [vmem:[#allocation2 + $0x5c] sm:$0xff] }
  0x4e   :  { %9846 = vmatmul.mubr.msk.f32.vlgmr.msra.gmra.mrb[0].mxu0 %vm29_vm0, %v244_v37  ;;  %v1140_v37 = vld [vmem:[#allocation2 + $0x64] sm:$0xff] }
  0x4f   :  { %9870 = vmatpush3.msk.msra.mxu0 %vm325_vm2, %v686_v22  ;;  %9848 = vmatprep.mubr.msk.f32.mxu0 %vm29_vm0, %v245_v38  ;;  %v913_v22 = vld [vmem:[#allocation2 + $0x73] sm:$0xff] }
  0x50   :  { %9895 = vmatprep.subr.msk.mxu0 %vm325_vm2, %v915_v39  ;;  %v1141_v38 = vld [vmem:[#allocation2 + $0x6c] sm:$0xff] }
  0x52   :  { %9849 = vmatmul.mubr.msk.f32.gmra.mrb[2].mxu0 %vm29_vm0, %v246_v40  ;;  %v1143_v40 = vld [vmem:[#allocation2 + $0x7c] sm:$0xff] }
  0x53   :  { %9851 = vmatprep.mubr.msk.f32.mxu0 %vm29_vm0, %v247_v41  ;;  %v1357_v41 = vld [vmem:[#allocation2 + $0x5] sm:$0xff] }
  0x56   :  { %9852 = vmatmul.mubr.msk.f32.gmra.mrb[4].mxu0 %vm29_vm0, %v248_v42  ;;  %v1358_v42 = vld [vmem:[#allocation2 + $0xd] sm:$0xff] }
  0x57   :  { %9854 = vmatprep.mubr.msk.f32.mxu0 %vm29_vm0, %v249_v43  ;;  %v1359_v43 = vld [vmem:[#allocation2 + $0x15] sm:$0xff] }
  0x5a   :  { %9855 = vmatmul.mubr.msk.f32.gmra.mrb[6].mxu0 %vm29_vm0, %v250_v44  ;;  %v1360_v44 = vld [vmem:[#allocation2 + $0x1d] sm:$0xff] }
  0x5b   :  { %9857 = vmatprep.mubr.msk.f32.mxu0 %vm29_vm0, %v251_v45  ;;  %v1361_v45 = vld [vmem:[#allocation2 + $0x25] sm:$0xff] }
  0x5e   :  { %9858 = vmatmul.mubr.msk.f32.gmra.mrb[8].mxu0 %vm29_vm0, %v252_v46  ;;  %v1362_v46 = vld [vmem:[#allocation2 + $0x2d] sm:$0xff] }
  0x5f   :  { %9860 = vmatprep.mubr.msk.f32.mxu0 %vm29_vm0, %v253_v47  ;;  %v1363_v47 = vld [vmem:[#allocation2 + $0x35] sm:$0xff] }
  0x62   :  { %9861 = vmatmul.mubr.msk.f32.gmra.mrb[10].mxu0 %vm29_vm0, %v254_v48  ;;  %v1364_v48 = vld [vmem:[#allocation2 + $0x3d] sm:$0xff] }
  0x63   :  { %9863 = vmatprep.mubr.msk.f32.mxu0 %vm29_vm0, %v255_v49  ;;  %v1365_v49 = vld [vmem:[#allocation2 + $0x45] sm:$0xff] }
  0x66   :  { %9864 = vmatmul.mubr.msk.f32.gmra.mrb[12].mxu0 %vm29_vm0, %v256_v50  ;;  %v1366_v50 = vld [vmem:[#allocation2 + $0x4d] sm:$0xff] }
  0x67   :  { %9866 = vmatprep.mubr.msk.f32.mxu0 %vm29_vm0, %v257_v51  ;;  %v1367_v51 = vld [vmem:[#allocation2 + $0x55] sm:$0xff] }
  0x6a   :  { %9867 = vmatmul.mubr.msk.f32.gmra.mrb[14].mxu0 %vm29_vm0, %v258_v52  ;;  %v1368_v52 = vld [vmem:[#allocation2 + $0x5d] sm:$0xff] }
  0x6b   :  { %9871 = vmatprep.mubr.msk.f32.mxu0 %vm29_vm0, %v670_v53  ;;  %v1369_v53 = vld [vmem:[#allocation2 + $0x65] sm:$0xff] }
  0x6e   :  { %9872 = vmatmul.mubr.msk.f32.vlgmr.msra.gmra.mrb[0].mxu0 %vm29_vm0, %v671_v54  ;;  %v1370_v54 = vld [vmem:[#allocation2 + $0x6d] sm:$0xff] }
  0x6f   :  { %9896 = vmatpush3.msk.msra.mxu0 %vm325_vm2, %v915_v39  ;;  %9874 = vmatprep.mubr.msk.f32.mxu0 %vm29_vm0, %v672_v55  ;;  %v1142_v39 = vld [vmem:[#allocation2 + $0x74] sm:$0xff] }
  0x70   :  { %9921 = vmatprep.subr.msk.mxu0 %vm325_vm2, %v1144_v56  ;;  %v1371_v55 = vld [vmem:[#allocation2 + $0x75] sm:$0xff] }
  0x72   :  { %9875 = vmatmul.mubr.msk.f32.gmra.mrb[2].mxu0 %vm29_vm0, %v673_v57  ;;  %v1586_v57 = vld [vmem:[#allocation2 + $0x6] sm:$0xff] }
  0x73   :  { %9877 = vmatprep.mubr.msk.f32.mxu0 %vm29_vm0, %v674_v58  ;;  %v1587_v58 = vld [vmem:[#allocation2 + $0xe] sm:$0xff] }
  0x76   :  { %9878 = vmatmul.mubr.msk.f32.gmra.mrb[4].mxu0 %vm29_vm0, %v675_v59  ;;  %v1588_v59 = vld [vmem:[#allocation2 + $0x16] sm:$0xff] }
  0x77   :  { %9880 = vmatprep.mubr.msk.f32.mxu0 %vm29_vm0, %v676_v60  ;;  %v1589_v60 = vld [vmem:[#allocation2 + $0x1e] sm:$0xff] }
  0x7a   :  { %9881 = vmatmul.mubr.msk.f32.gmra.mrb[6].mxu0 %vm29_vm0, %v677_v61  ;;  %v1590_v61 = vld [vmem:[#allocation2 + $0x26] sm:$0xff] }
  0x7b   :  { %9883 = vmatprep.mubr.msk.f32.mxu0 %vm29_vm0, %v678_v62  ;;  %v1591_v62 = vld [vmem:[#allocation2 + $0x2e] sm:$0xff] }
  0x7e   :  { %9884 = vmatmul.mubr.msk.f32.gmra.mrb[8].mxu0 %vm29_vm0, %v679_v63  ;;  %v1592_v63 = vld [vmem:[#allocation2 + $0x36] sm:$0xff] }
  0x7f   :  { %9886 = vmatprep.mubr.msk.f32.mxu0 %vm29_vm0, %v680_v1  ;;  %v1593_v1 = vld [vmem:[#allocation2 + $0x3e] sm:$0xff] }
  0x82   :  { %9887 = vmatmul.mubr.msk.f32.gmra.mrb[10].mxu0 %vm29_vm0, %v681_v2  ;;  %v1594_v2 = vld [vmem:[#allocation2 + $0x46] sm:$0xff] }
  0x83   :  { %9889 = vmatprep.mubr.msk.f32.mxu0 %vm29_vm0, %v682_v3  ;;  %v1595_v3 = vld [vmem:[#allocation2 + $0x4e] sm:$0xff] }
  0x86   :  { %9890 = vmatmul.mubr.msk.f32.gmra.mrb[12].mxu0 %vm29_vm0, %v683_v4  ;;  %v1596_v4 = vld [vmem:[#allocation2 + $0x56] sm:$0xff] }
  0x87   :  { %9892 = vmatprep.mubr.msk.f32.mxu0 %vm29_vm0, %v684_v5  ;;  %v1597_v5 = vld [vmem:[#allocation2 + $0x5e] sm:$0xff] }
  0x8a   :  { %9893 = vmatmul.mubr.msk.f32.gmra.mrb[14].mxu0 %vm29_vm0, %v685_v6  ;;  %v1598_v6 = vld [vmem:[#allocation2 + $0x66] sm:$0xff] }
  0x8b   :  { %9897 = vmatprep.mubr.msk.f32.mxu0 %vm29_vm0, %v899_v7  ;;  %v1599_v7 = vld [vmem:[#allocation2 + $0x6e] sm:$0xff] }
  0x8e   :  { %9898 = vmatmul.mubr.msk.f32.vlgmr.msra.gmra.mrb[0].mxu0 %vm29_vm0, %v900_v8  ;;  %v1600_v8 = vld [vmem:[#allocation2 + $0x76] sm:$0xff] }
  0x8f   :  { %9922 = vmatpush3.msk.msra.mxu0 %vm325_vm2, %v1144_v56  ;;  %9900 = vmatprep.mubr.msk.f32.mxu0 %vm29_vm0, %v901_v9  ;;  %v1372_v56 = vld [vmem:[#allocation2 + $0x7d] sm:$0xff] }
  0x90   :  { %9947 = vmatprep.subr.msk.mxu0 %vm325_vm2, %v1373_v10  ;;  %v1601_v9 = vld [vmem:[#allocation2 + $0x7e] sm:$0xff] }
  0x92   :  { %9901 = vmatmul.mubr.msk.f32.gmra.mrb[2].mxu0 %vm29_vm0, %v902_v11 }
  0x93   :  { %9903 = vmatprep.mubr.msk.f32.mxu0 %vm29_vm0, %v903_v12 }
  0x96   :  { %9904 = vmatmul.mubr.msk.f32.gmra.mrb[4].mxu0 %vm29_vm0, %v904_v13 }
  0x97   :  { %9906 = vmatprep.mubr.msk.f32.mxu0 %vm29_vm0, %v905_v14 }
  0x9a   :  { %9907 = vmatmul.mubr.msk.f32.gmra.mrb[6].mxu0 %vm29_vm0, %v906_v15 }
  0x9b   :  { %9909 = vmatprep.mubr.msk.f32.mxu0 %vm29_vm0, %v907_v16 }
  0x9e   :  { %9910 = vmatmul.mubr.msk.f32.gmra.mrb[8].mxu0 %vm29_vm0, %v908_v17 }
  0x9f   :  { %9912 = vmatprep.mubr.msk.f32.mxu0 %vm29_vm0, %v909_v18  ;;  %v11325_v18 = vmov 1.0  }
  0xa2   :  { %9913 = vmatmul.mubr.msk.f32.gmra.mrb[10].mxu0 %vm29_vm0, %v910_v19 }
  0xa3   :  { %9915 = vmatprep.mubr.msk.f32.mxu0 %vm29_vm0, %v911_v20 }
  0xa6   :  { %9916 = vmatmul.mubr.msk.f32.gmra.mrb[12].mxu0 %vm29_vm0, %v912_v21 }
  0xa7   :  { %9918 = vmatprep.mubr.msk.f32.mxu0 %vm29_vm0, %v913_v22 }
  0xaa   :  { %9919 = vmatmul.mubr.msk.f32.gmra.mrb[14].mxu0 %vm29_vm0, %v914_v23 }
  0xab   :  { %9923 = vmatprep.mubr.msk.f32.mxu0 %vm29_vm0, %v1128_v24 }
  0xae   :  { %9924 = vmatmul.mubr.msk.f32.vlgmr.msra.gmra.mrb[0].mxu0 %vm29_vm0, %v1129_v25 }
  0xaf   :  { %9948 = vmatpush3.msk.msra.mxu0 %vm325_vm2, %v1373_v10  ;;  %9926 = vmatprep.mubr.msk.f32.mxu0 %vm29_vm0, %v1130_v26  ;;  %v200_v10 = vlaneseq }
  0xb0   :  { %9973 = vmatprep.subr.msk.mxu0 %vm325_vm2, %v1602_v27 }
  0xb1   :  { %v201_v11 = vshrl.u32 %v200_v10, 7  ;;  %v210_v13 = vand.u32 127, %v200_v10 }
  0xb2   :  { %9927 = vmatmul.mubr.msk.f32.gmra.mrb[2].mxu0 %vm29_vm0, %v1131_v28 }
  0xb3   :  { %9929 = vmatprep.mubr.msk.f32.mxu0 %vm29_vm0, %v1132_v29  ;;  %v202_v12 = vadd.s32 8, %v201_v11  ;;  %v211_v14 = vmul.u32 2, %v201_v11  ;;  %v203_v17 = vadd.s32 16, %v201_v11  ;;  %v204_v20 = vadd.s32 24, %v201_v11 }
  0xb4   :  { %v205_v24 = vadd.s32 32, %v201_v11  ;;  %v206_v26 = vadd.s32 40, %v201_v11 }
  0xb5   :  { %v212_v15 = vmul.u32 2, %v202_v12  ;;  %vm11620_vm3 = vcmp.eq.s32.totalorder %v210_v13, %v211_v14  ;;  %v213_v21 = vmul.u32 2, %v203_v17 }
  0xb6   :  { %9930 = vmatmul.mubr.msk.f32.gmra.mrb[4].mxu0 %vm29_vm0, %v1133_v30  ;;  %10031 = vmatprep.mubr.msk.f32.mxu1 %vm11620_vm3, %v11325_v18  ;;  %v214_v22 = vmul.u32 2, %v204_v20  ;;  %v216_v28 = vmul.u32 2, %v206_v26  ;;  %v207_v30 = vadd.s32 48, %v201_v11 }
  0xb7   :  { %9932 = vmatprep.mubr.msk.f32.mxu0 %vm29_vm0, %v1134_v31  ;;  %vm11627_vm4 = vcmp.eq.s32.totalorder %v210_v13, %v212_v15  ;;  %vm11634_vm5 = vcmp.eq.s32.totalorder %v210_v13, %v213_v21  ;;  %v151_v31 = vld [vmem:[%s12784_s0 + $0x80] sm:$0xff] }
  0xb8   :  { %vm11638_vm6 = vcmp.eq.s32.totalorder %v210_v13, %v214_v22  ;;  %vm11649_vm8 = vcmp.eq.s32.totalorder %v210_v13, %v216_v28  ;;  %183 = vst.msk [vmem:[#allocation2 + $0x8b] sm:$0xff] %vm29_vm0, %v151_v31 }
  0xb9   :  { %v12458_v19 = vsel %vm11638_vm6, 1.0, %v11324_v0 }
  0xba   :  { %9933 = vmatmul.mubr.msk.f32.gmra.mrb[6].mxu0 %vm29_vm0, %v1135_v32 }
  0xbb   :  { %9935 = vmatprep.mubr.msk.f32.mxu0 %vm29_vm0, %v1136_v33  ;;  %v208_v33 = vadd.s32 56, %v201_v11 }
  0xbe   :  { %9936 = vmatmul.mubr.msk.f32.gmra.mrb[8].mxu0 %vm29_vm0, %v1137_v34  ;;  %v152_v34 = vld [vmem:[%s12784_s0 + $0x88] sm:$0xff] }
  0xbf   :  { %9938 = vmatprep.mubr.msk.f32.mxu0 %vm29_vm0, %v1138_v35  ;;  %v217_v35 = vmul.u32 2, %v207_v30  ;;  %184 = vst.msk [vmem:[#allocation2 + $0x93] sm:$0xff] %vm29_vm0, %v152_v34 }
  0xc1   :  { %vm11658_vm9 = vcmp.eq.s32.totalorder %v210_v13, %v217_v35 }
  0xc2   :  { %9939 = vmatmul.mubr.msk.f32.gmra.mrb[10].mxu0 %vm29_vm0, %v1139_v36  ;;  %v218_v36 = vmul.u32 2, %v208_v33 }
  0xc3   :  { %9941 = vmatprep.mubr.msk.f32.mxu0 %vm29_vm0, %v1140_v37 }
  0xc4   :  { %vm11665_vm10 = vcmp.eq.s32.totalorder %v210_v13, %v218_v36 }
  0xc6   :  { %9942 = vmatmul.mubr.msk.f32.gmra.mrb[12].mxu0 %vm29_vm0, %v1141_v38  ;;  %v153_v38 = vld [vmem:[%s12784_s0 + $0x90] sm:$0xff] }
  0xc7   :  { %9944 = vmatprep.mubr.msk.f32.mxu0 %vm29_vm0, %v1142_v39  ;;  %185 = vst.msk [vmem:[#allocation2 + $0x9b] sm:$0xff] %vm29_vm0, %v153_v38 }
  0xca   :  { %9945 = vmatmul.mubr.msk.f32.gmra.mrb[14].mxu0 %vm29_vm0, %v1143_v40  ;;  %v154_v40 = vld [vmem:[%s12784_s0 + $0x98] sm:$0xff] }
  0xcb   :  { %9949 = vmatprep.mubr.msk.f32.mxu0 %vm29_vm0, %v1357_v41  ;;  %186 = vst.msk [vmem:[#allocation2 + $0xa3] sm:$0xff] %vm29_vm0, %v154_v40  ;;  %v155_v41 = vld [vmem:[%s12784_s0 + $0xa0] sm:$0xff] }
  0xcc   :  { %187 = vst.msk [vmem:[#allocation2 + $0xab] sm:$0xff] %vm29_vm0, %v155_v41 }
  0xce   :  { %9950 = vmatmul.mubr.msk.f32.vlgmr.msra.gmra.mrb[0].mxu0 %vm29_vm0, %v1358_v42  ;;  %v156_v42 = vld [vmem:[%s12784_s0 + $0xa8] sm:$0xff] }
  0xcf   :  { %9974 = vmatpush3.msk.msra.mxu0 %vm325_vm2, %v1602_v27  ;;  %9952 = vmatprep.mubr.msk.f32.mxu0 %vm29_vm0, %v1359_v43  ;;  %v215_v27 = vmul.u32 2, %v205_v24  ;;  %188 = vst.msk [vmem:[#allocation2 + $0xb3] sm:$0xff] %vm29_vm0, %v156_v42  ;;  %v157_v43 = vld [vmem:[%s12784_s0 + $0xb0] sm:$0xff] }
  0xd0   :  { %189 = vst.msk [vmem:[#allocation2 + $0xbb] sm:$0xff] %vm29_vm0, %v157_v43 }
  0xd1   :  { %vm11642_vm7 = vcmp.eq.s32.totalorder %v210_v13, %v215_v27 }
  0xd2   :  { %9953 = vmatmul.mubr.msk.f32.gmra.mrb[2].mxu0 %vm29_vm0, %v1360_v44  ;;  %v158_v44 = vld [vmem:[%s12784_s0 + $0xb8] sm:$0xff] }
  0xd3   :  { %9955 = vmatprep.mubr.msk.f32.mxu0 %vm29_vm0, %v1361_v45  ;;  %190 = vst.msk [vmem:[#allocation2 + $0xc3] sm:$0xff] %vm29_vm0, %v158_v44  ;;  %v159_v45 = vld [vmem:[%s12784_s0 + $0xc0] sm:$0xff] }
  0xd4   :  { %191 = vst.msk [vmem:[#allocation2 + $0xcb] sm:$0xff] %vm29_vm0, %v159_v45 }
  0xd6   :  { %9956 = vmatmul.mubr.msk.f32.gmra.mrb[4].mxu0 %vm29_vm0, %v1362_v46  ;;  %v160_v46 = vld [vmem:[%s12784_s0 + $0xc8] sm:$0xff] }
  0xd7   :  { %9958 = vmatprep.mubr.msk.f32.mxu0 %vm29_vm0, %v1363_v47  ;;  %192 = vst.msk [vmem:[#allocation2 + $0xd3] sm:$0xff] %vm29_vm0, %v160_v46  ;;  %v161_v47 = vld [vmem:[%s12784_s0 + $0xd0] sm:$0xff] }
  0xd8   :  { %193 = vst.msk [vmem:[#allocation2 + $0xdb] sm:$0xff] %vm29_vm0, %v161_v47 }
  0xda   :  { %9959 = vmatmul.mubr.msk.f32.gmra.mrb[6].mxu0 %vm29_vm0, %v1364_v48  ;;  %v162_v48 = vld [vmem:[%s12784_s0 + $0xd8] sm:$0xff] }
  0xdb   :  { %9961 = vmatprep.mubr.msk.f32.mxu0 %vm29_vm0, %v1365_v49  ;;  %194 = vst.msk [vmem:[#allocation2 + $0xe3] sm:$0xff] %vm29_vm0, %v162_v48  ;;  %v163_v49 = vld [vmem:[%s12784_s0 + $0xe0] sm:$0xff] }
  0xdc   :  { %195 = vst.msk [vmem:[#allocation2 + $0xeb] sm:$0xff] %vm29_vm0, %v163_v49 }
  0xde   :  { %9962 = vmatmul.mubr.msk.f32.gmra.mrb[8].mxu0 %vm29_vm0, %v1366_v50  ;;  %v164_v50 = vld [vmem:[%s12784_s0 + $0xe8] sm:$0xff] }
  0xdf   :  { %9964 = vmatprep.mubr.msk.f32.mxu0 %vm29_vm0, %v1367_v51  ;;  %196 = vst.msk [vmem:[#allocation2 + $0xf3] sm:$0xff] %vm29_vm0, %v164_v50  ;;  %v165_v51 = vld [vmem:[%s12784_s0 + $0xf0] sm:$0xff] }
  0xe0   :  { %197 = vst.msk [vmem:[#allocation2 + $0xfb] sm:$0xff] %vm29_vm0, %v165_v51 }
  0xe2   :  { %9965 = vmatmul.mubr.msk.f32.gmra.mrb[10].mxu0 %vm29_vm0, %v1368_v52  ;;  %v166_v52 = vld [vmem:[%s12784_s0 + $0xf8] sm:$0xff] }
  0xe3   :  { %9967 = vmatprep.mubr.msk.f32.mxu0 %vm29_vm0, %v1369_v53  ;;  %198 = vst.msk [vmem:[#allocation2 + $0x103] sm:$0xff] %vm29_vm0, %v166_v52  ;;  %v11725_v53 = vld [vmem:[%s12786_s2] ss:$0 sm:$0xff] }
  0xe6   :  { %9968 = vmatmul.mubr.msk.f32.gmra.mrb[12].mxu0 %vm29_vm0, %v1370_v54 }
  0xe7   :  { %9970 = vmatprep.mubr.msk.f32.mxu0 %vm29_vm0, %v1371_v55 }
  0xea   :  { %9971 = vmatmul.mubr.msk.f32.gmra.mrb[14].mxu0 %vm29_vm0, %v1372_v56 }
  0xeb   :  { %9975 = vmatprep.mubr.msk.f32.mxu0 %vm29_vm0, %v1586_v57 }
  0xee   :  { %9976 = vmatmul.mubr.msk.f32.vlgmr.msra.gmra.mrb[0].mxu0 %vm29_vm0, %v1587_v58 }
  0xef   :  { %9978 = vmatprep.mubr.msk.f32.mxu0 %vm29_vm0, %v1588_v59 }
  0xf2   :  { %9979 = vmatmul.mubr.msk.f32.gmra.mrb[2].mxu0 %vm29_vm0, %v1589_v60 }
  0xf3   :  { %9981 = vmatprep.mubr.msk.f32.mxu0 %vm29_vm0, %v1590_v61 }
  0xf6   :  { %9982 = vmatmul.mubr.msk.f32.gmra.mrb[4].mxu0 %vm29_vm0, %v1591_v62 }
  0xf7   :  { %9984 = vmatprep.mubr.msk.f32.mxu0 %vm29_vm0, %v1592_v63 }
  0xfa   :  { %9985 = vmatmul.mubr.msk.f32.gmra.mrb[6].mxu0 %vm29_vm0, %v1593_v1 }
  0xfb   :  { %9987 = vmatprep.mubr.msk.f32.mxu0 %vm29_vm0, %v1594_v2 }
  0xfe   :  { %9988 = vmatmul.mubr.msk.f32.gmra.mrb[8].mxu0 %vm29_vm0, %v1595_v3 }
  0xff   :  { %9990 = vmatprep.mubr.msk.f32.mxu0 %vm29_vm0, %v1596_v4 }
 0x102   :  { %9991 = vmatmul.mubr.msk.f32.gmra.mrb[10].mxu0 %vm29_vm0, %v1597_v5 }
 0x103   :  { %9993 = vmatprep.mubr.msk.f32.mxu0 %vm29_vm0, %v1598_v6 }
 0x106   :  { %9994 = vmatmul.mubr.msk.f32.gmra.mrb[12].mxu0 %vm29_vm0, %v1599_v7 }
 0x107   :  { %9996 = vmatprep.mubr.msk.f32.mxu0 %vm29_vm0, %v1600_v8 }
 0x10a   :  { %9997 = vmatmul.mubr.msk.f32.gmra.mrb[14].mxu0 %vm29_vm0, %v1601_v9 }
 0x10b   :  { %10257 = vmatprep.mubr.msk.f32.mxu0 %vm11620_vm3, %v11325_v18 }
 0x1c1   :  { %v9977_v54 = vpop.f32.mrb[0].mxu0 }
 0x1c2   :  { %v1820_v55 = vadd.f32 %v9977_v54, %v11725_v53  ;;  %v1720_v56 = vpop.f32.mrb[1].mxu0 }
 0x1c3   :  { %v1819_v57 = vadd.f32 %v11725_v53, %v1720_v56 }
 0x1c4   :  { %v1836_v58 = vmax.f32 %v1820_v55, 0.0 }
 0x1c5   :  { %v1835_v59 = vmax.f32 %v1819_v57, 0.0  ;;  %v9980_v60 = vpop.f32.mrb[2].mxu0  ;;  %v2198_v57 = vld [vmem:[#allocation9 + $0x3] sm:$0x7] }
 0x1c6   :  { %v1822_v61 = vadd.f32 %v9980_v60, %v11725_v53  ;;  %v1730_v62 = vpop.f32.mrb[3].mxu0  ;;  %v2183_v60 = vld [vmem:[#allocation2 + $0x91] sm:$0xff] }
 0x1c7   :  { %v1821_v63 = vadd.f32 %v11725_v53, %v1730_v62  ;;  %v10733_v1 = vpack.c.bf16 %v1836_v58, %v1835_v59  ;;  %v2181_v58 = vld [vmem:[#allocation9] sm:$0x7]  ;;  %v2607_v62 = vld [vmem:[#allocation9 + $0x6] sm:$0x7] }
 0x1c8   :  { %v1838_v2 = vmax.f32 %v1822_v61, 0.0  ;;  %v2182_v59 = vld [vmem:[#allocation2 + $0x89] sm:$0xff]  ;;  %v2184_v61 = vld [vmem:[#allocation2 + $0x99] sm:$0xff] }
 0x1c9   :  { %v1837_v3 = vmax.f32 %v1821_v63, 0.0  ;;  %v9983_v4 = vpop.f32.mrb[4].mxu0  ;;  %10734 = vmatprep.subr.bf16.mxu1 %v10733_v1  ;;  %v2185_v63 = vld [vmem:[#allocation2 + $0xa1] sm:$0xff] }
 0x1ca   :  { %v1824_v5 = vadd.f32 %v9983_v4, %v11725_v53  ;;  %v1740_v6 = vpop.f32.mrb[5].mxu0  ;;  %10736 = vmatpush3.bf16.msra.mxu1 %v10733_v1  ;;  %v2186_v1 = vld [vmem:[#allocation2 + $0xa9] sm:$0xff]  ;;  %v2189_v4 = vld [vmem:[#allocation2 + $0xc1] sm:$0xff] }
 0x1cb   :  { %v10737_v7 = vpack.c.bf16 %v1838_v2, %v1837_v3  ;;  %v1823_v8 = vadd.f32 %v11725_v53, %v1740_v6  ;;  %v2187_v2 = vld [vmem:[#allocation2 + $0xb1] sm:$0xff]  ;;  %v2188_v3 = vld [vmem:[#allocation2 + $0xb9] sm:$0xff] }
 0x1cc   :  { %v1840_v9 = vmax.f32 %v1824_v5, 0.0  ;;  %v2190_v5 = vld [vmem:[#allocation2 + $0xc9] sm:$0xff]  ;;  %v2191_v6 = vld [vmem:[#allocation2 + $0xd1] sm:$0xff] }
 0x1cd   :  { %v1839_v10 = vmax.f32 %v1823_v8, 0.0  ;;  %v9986_v11 = vpop.f32.mrb[6].mxu0  ;;  %10738 = vmatprep.subr.bf16.mxu1 %v10737_v7  ;;  %v2193_v8 = vld [vmem:[#allocation2 + $0xe1] sm:$0xff] }
 0x1ce   :  { %v1826_v12 = vadd.f32 %v9986_v11, %v11725_v53  ;;  %v1750_v13 = vpop.f32.mrb[7].mxu0  ;;  %10740 = vmatpush3.bf16.msra.mxu1 %v10737_v7  ;;  %v2192_v7 = vld [vmem:[#allocation2 + $0xd9] sm:$0xff] }
 0x1cf   :  { %v10741_v14 = vpack.c.bf16 %v1840_v9, %v1839_v10  ;;  %v1825_v15 = vadd.f32 %v11725_v53, %v1750_v13  ;;  %v2194_v9 = vld [vmem:[#allocation2 + $0xe9] sm:$0xff]  ;;  %v2195_v10 = vld [vmem:[#allocation2 + $0xf1] sm:$0xff]  ;;  %v2196_v11 = vld [vmem:[#allocation2 + $0xf9] sm:$0xff] }
 0x1d0   :  { %v1842_v17 = vmax.f32 %v1826_v12, 0.0  ;;  %v2197_v12 = vld [vmem:[#allocation2 + $0x101] sm:$0xff] }
 0x1d1   :  { %v1841_v20 = vmax.f32 %v1825_v15, 0.0  ;;  %v9989_v21 = vpop.f32.mrb[8].mxu0  ;;  %10742 = vmatprep.subr.bf16.mxu1 %v10741_v14  ;;  %v2165_v13 = vld [vmem:[#allocation2 + $0x88] sm:$0xff]  ;;  %v2167_v15 = vld [vmem:[#allocation2 + $0x98] sm:$0xff] }
 0x1d2   :  { %v1828_v22 = vadd.f32 %v9989_v21, %v11725_v53  ;;  %v1760_v24 = vpop.f32.mrb[9].mxu0  ;;  %10744 = vmatpush3.bf16.msra.mxu1 %v10741_v14  ;;  %v2166_v14 = vld [vmem:[#allocation2 + $0x90] sm:$0xff]  ;;  %v2169_v21 = vld [vmem:[#allocation2 + $0xa8] sm:$0xff] }
 0x1d3   :  { %v10745_v26 = vpack.c.bf16 %v1842_v17, %v1841_v20  ;;  %v1827_v27 = vadd.f32 %v11725_v53, %v1760_v24  ;;  %v2836_v17 = vld [vmem:[#allocation9 + $0x9] sm:$0x7]  ;;  %v2168_v20 = vld [vmem:[#allocation2 + $0xa0] sm:$0xff] }
 0x1d4   :  { %v1844_v28 = vmax.f32 %v1828_v22, 0.0  ;;  %v2170_v22 = vld [vmem:[#allocation2 + $0xb0] sm:$0xff]  ;;  %v2171_v24 = vld [vmem:[#allocation2 + $0xb8] sm:$0xff] }
 0x1d5   :  { %v1843_v30 = vmax.f32 %v1827_v27, 0.0  ;;  %v9992_v31 = vpop.f32.mrb[10].mxu0  ;;  %10746 = vmatprep.subr.bf16.mxu1 %v10745_v26  ;;  %v2173_v27 = vld [vmem:[#allocation2 + $0xc8] sm:$0xff] }
 0x1d6   :  { %v1830_v33 = vadd.f32 %v9992_v31, %v11725_v53  ;;  %v1770_v34 = vpop.f32.mrb[11].mxu0  ;;  %10748 = vmatpush3.bf16.msra.mxu1 %v10745_v26  ;;  %v2172_v26 = vld [vmem:[#allocation2 + $0xc0] sm:$0xff] }
 0x1d7   :  { %v10749_v35 = vpack.c.bf16 %v1844_v28, %v1843_v30  ;;  %v1829_v36 = vadd.f32 %v11725_v53, %v1770_v34  ;;  %v2174_v28 = vld [vmem:[#allocation2 + $0xd0] sm:$0xff]  ;;  %v2175_v30 = vld [vmem:[#allocation2 + $0xd8] sm:$0xff]  ;;  %v2176_v31 = vld [vmem:[#allocation2 + $0xe0] sm:$0xff] }
 0x1d8   :  { %v1846_v38 = vmax.f32 %v1830_v33, 0.0  ;;  %v2177_v33 = vld [vmem:[#allocation2 + $0xe8] sm:$0xff]  ;;  %v2178_v34 = vld [vmem:[#allocation2 + $0xf0] sm:$0xff] }
 0x1d9   :  { %v1845_v40 = vmax.f32 %v1829_v36, 0.0  ;;  %v9995_v41 = vpop.f32.mrb[12].mxu0  ;;  %10750 = vmatprep.subr.bf16.mxu1 %v10749_v35  ;;  %v2180_v36 = vld [vmem:[#allocation2 + $0x100] sm:$0xff] }
 0x1da   :  { %v1832_v42 = vadd.f32 %v9995_v41, %v11725_v53  ;;  %v1780_v43 = vpop.f32.mrb[13].mxu0  ;;  %10752 = vmatpush3.bf16.msra.mxu1 %v10749_v35  ;;  %v2179_v35 = vld [vmem:[#allocation2 + $0xf8] sm:$0xff] }
 0x1db   :  { %v10753_v44 = vpack.c.bf16 %v1846_v38, %v1845_v40  ;;  %v1831_v45 = vadd.f32 %v11725_v53, %v1780_v43  ;;  %v2591_v38 = vld [vmem:[#allocation2 + $0x8a] sm:$0xff]  ;;  %v2592_v40 = vld [vmem:[#allocation2 + $0x92] sm:$0xff]  ;;  %v2593_v41 = vld [vmem:[#allocation2 + $0x9a] sm:$0xff] }
 0x1dc   :  { %v1848_v46 = vmax.f32 %v1832_v42, 0.0  ;;  %v3065_v42 = vld [vmem:[#allocation9 + $0xc] sm:$0x7]  ;;  %v2594_v43 = vld [vmem:[#allocation2 + $0xa2] sm:$0xff] }
 0x1dd   :  { %v1847_v47 = vmax.f32 %v1831_v45, 0.0  ;;  %v9998_v48 = vpop.f32.mrb[14].mxu0  ;;  %10754 = vmatprep.subr.bf16.mxu1 %v10753_v44  ;;  %v2596_v45 = vld [vmem:[#allocation2 + $0xb2] sm:$0xff] }
 0x1de   :  { %v1834_v49 = vadd.f32 %v9998_v48, %v11725_v53  ;;  %v1790_v50 = vpop.f32.mrb[15].mxu0  ;;  %10756 = vmatpush3.bf16.msra.mxu1 %v10753_v44  ;;  %v2595_v44 = vld [vmem:[#allocation2 + $0xaa] sm:$0xff] }
 0x1df   :  { %v10757_v51 = vpack.c.bf16 %v1848_v46, %v1847_v47  ;;  %v1833_v52 = vadd.f32 %v11725_v53, %v1790_v50  ;;  %v2597_v46 = vld [vmem:[#allocation2 + $0xba] sm:$0xff]  ;;  %v2598_v47 = vld [vmem:[#allocation2 + $0xc2] sm:$0xff]  ;;  %v2599_v48 = vld [vmem:[#allocation2 + $0xca] sm:$0xff] }
 0x1e0   :  { %v1850_v54 = vmax.f32 %v1834_v49, 0.0  ;;  %v2600_v49 = vld [vmem:[#allocation2 + $0xd2] sm:$0xff]  ;;  %v2601_v50 = vld [vmem:[#allocation2 + $0xda] sm:$0xff] }
 0x1e1   :  { %v1849_v55 = vmax.f32 %v1833_v52, 0.0  ;;  %10758 = vmatprep.subr.bf16.mxu1 %v10757_v51  ;;  %v2603_v52 = vld [vmem:[#allocation2 + $0xea] sm:$0xff] }
 0x1e2   :  { %10760 = vmatpush3.bf16.msra.mxu1 %v10757_v51  ;;  %v2602_v51 = vld [vmem:[#allocation2 + $0xe2] sm:$0xff] }
 0x1e3   :  { %v10761_v56 = vpack.c.bf16 %v1850_v54, %v1849_v55  ;;  %v2604_v54 = vld [vmem:[#allocation2 + $0xf2] sm:$0xff]  ;;  %v2605_v55 = vld [vmem:[#allocation2 + $0xfa] sm:$0xff] }
 0x1e5   :  { %10762 = vmatprep.subr.bf16.mxu1 %v10761_v56 }
 0x1e6   :  { %10764 = vmatpush3.bf16.msra.mxu1 %v10761_v56  ;;  %v2606_v56 = vld [vmem:[#allocation2 + $0x102] sm:$0xff] }
 0x1e7   :  { %10043 = vmatprep.subr.msk.mxu1 %vm325_vm2, %v2198_v57 }
 0x1e9   :  { %10032 = vmatmul.mubr.msk.f32.vlgmr.msra.gmra.mrb[0].mxu1 %vm11627_vm4, %v11325_v18 }
 0x1ea   :  { %10044 = vmatpush3.msk.msra.mxu1 %vm325_vm2, %v2198_v57  ;;  %10034 = vmatprep.mubr.msk.f32.mxu1 %vm11634_vm5, %v11325_v18  ;;  %v2820_v57 = vld [vmem:[#allocation2 + $0x8b] sm:$0xff] }
 0x1eb   :  { %10069 = vmatprep.subr.msk.mxu1 %vm325_vm2, %v2181_v58 }
 0x1ed   :  { %10035 = vmatmul.mubr.msk.f32.gmra.mrb[2].mxu1 %vm11638_vm6, %v11325_v18 }
 0x1ee   :  { %10037 = vmatprep.mubr.msk.f32.mxu1 %vm11642_vm7, %v11325_v18 }
 0x1f1   :  { %10038 = vmatmul.mubr.msk.f32.gmra.mrb[4].mxu1 %vm11649_vm8, %v11325_v18 }
 0x1f2   :  { %10040 = vmatprep.mubr.msk.f32.mxu1 %vm11658_vm9, %v11325_v18 }
 0x1f5   :  { %10041 = vmatmul.mubr.msk.f32.gmra.mrb[6].mxu1 %vm11665_vm10, %v11325_v18 }
 0x1f6   :  { %10045 = vmatprep.mubr.msk.f32.mxu1 %vm29_vm0, %v2182_v59  ;;  %v2822_v59 = vld [vmem:[#allocation2 + $0x9b] sm:$0xff] }
 0x1f9   :  { %10046 = vmatmul.mubr.msk.f32.vlgmr.msra.gmra.mrb[8].mxu1 %vm29_vm0, %v2183_v60  ;;  %v3294_v60 = vld [vmem:[#allocation9 + $0xf] sm:$0x7] }
 0x1fa   :  { %10070 = vmatpush3.msk.msra.mxu1 %vm325_vm2, %v2181_v58  ;;  %10048 = vmatprep.mubr.msk.f32.mxu1 %vm29_vm0, %v2184_v61  ;;  %v2821_v58 = vld [vmem:[#allocation2 + $0x93] sm:$0xff]  ;;  %v2823_v61 = vld [vmem:[#allocation2 + $0xa3] sm:$0xff] }
 0x1fb   :  { %10095 = vmatprep.subr.msk.mxu1 %vm325_vm2, %v2607_v62 }
 0x1fd   :  { %10049 = vmatmul.mubr.msk.f32.gmra.mrb[10].mxu1 %vm29_vm0, %v2185_v63  ;;  %v2825_v63 = vld [vmem:[#allocation2 + $0xb3] sm:$0xff] }
 0x1fe   :  { %10051 = vmatprep.mubr.msk.f32.mxu1 %vm29_vm0, %v2186_v1  ;;  %v2826_v1 = vld [vmem:[#allocation2 + $0xbb] sm:$0xff] }
 0x201   :  { %10052 = vmatmul.mubr.msk.f32.gmra.mrb[12].mxu1 %vm29_vm0, %v2187_v2  ;;  %v2827_v2 = vld [vmem:[#allocation2 + $0xc3] sm:$0xff] }
 0x202   :  { %10054 = vmatprep.mubr.msk.f32.mxu1 %vm29_vm0, %v2188_v3  ;;  %v2828_v3 = vld [vmem:[#allocation2 + $0xcb] sm:$0xff] }
 0x205   :  { %10055 = vmatmul.mubr.msk.f32.gmra.mrb[14].mxu1 %vm29_vm0, %v2189_v4  ;;  %v2829_v4 = vld [vmem:[#allocation2 + $0xd3] sm:$0xff] }
 0x206   :  { %10057 = vmatprep.mubr.msk.f32.mxu1 %vm29_vm0, %v2190_v5  ;;  %v2830_v5 = vld [vmem:[#allocation2 + $0xdb] sm:$0xff] }
 0x209   :  { %10058 = vmatmul.mubr.msk.f32.gmra.mrb[16].mxu1 %vm29_vm0, %v2191_v6  ;;  %v2831_v6 = vld [vmem:[#allocation2 + $0xe3] sm:$0xff] }
 0x20a   :  { %10060 = vmatprep.mubr.msk.f32.mxu1 %vm29_vm0, %v2192_v7  ;;  %v2832_v7 = vld [vmem:[#allocation2 + $0xeb] sm:$0xff] }
 0x20d   :  { %10061 = vmatmul.mubr.msk.f32.gmra.mrb[18].mxu1 %vm29_vm0, %v2193_v8  ;;  %v2833_v8 = vld [vmem:[#allocation2 + $0xf3] sm:$0xff] }
 0x20e   :  { %10063 = vmatprep.mubr.msk.f32.mxu1 %vm29_vm0, %v2194_v9  ;;  %v2834_v9 = vld [vmem:[#allocation2 + $0xfb] sm:$0xff] }
 0x211   :  { %10064 = vmatmul.mubr.msk.f32.gmra.mrb[20].mxu1 %vm29_vm0, %v2195_v10  ;;  %v2835_v10 = vld [vmem:[#allocation2 + $0x103] sm:$0xff] }
 0x212   :  { %10066 = vmatprep.mubr.msk.f32.mxu1 %vm29_vm0, %v2196_v11  ;;  %v3049_v11 = vld [vmem:[#allocation2 + $0x8c] sm:$0xff] }
 0x215   :  { %10067 = vmatmul.mubr.msk.f32.gmra.mrb[22].mxu1 %vm29_vm0, %v2197_v12  ;;  %v3050_v12 = vld [vmem:[#allocation2 + $0x94] sm:$0xff] }
 0x216   :  { %10071 = vmatprep.mubr.msk.f32.mxu1 %vm29_vm0, %v2165_v13  ;;  %v3051_v13 = vld [vmem:[#allocation2 + $0x9c] sm:$0xff] }
 0x219   :  { %10072 = vmatmul.mubr.msk.f32.vlgmr.msra.gmra.mrb[8].mxu1 %vm29_vm0, %v2166_v14  ;;  %v3523_v14 = vld [vmem:[#allocation9 + $0x12] sm:$0x7] }
 0x21a   :  { %10096 = vmatpush3.msk.msra.mxu1 %vm325_vm2, %v2607_v62  ;;  %10074 = vmatprep.mubr.msk.f32.mxu1 %vm29_vm0, %v2167_v15  ;;  %v2824_v62 = vld [vmem:[#allocation2 + $0xab] sm:$0xff] }
 0x21b   :  { %10121 = vmatprep.subr.msk.mxu1 %vm325_vm2, %v2836_v17  ;;  %v3052_v15 = vld [vmem:[#allocation2 + $0xa4] sm:$0xff] }
 0x21d   :  { %10075 = vmatmul.mubr.msk.f32.gmra.mrb[10].mxu1 %vm29_vm0, %v2168_v20  ;;  %v3054_v20 = vld [vmem:[#allocation2 + $0xb4] sm:$0xff] }
 0x21e   :  { %10077 = vmatprep.mubr.msk.f32.mxu1 %vm29_vm0, %v2169_v21  ;;  %v3055_v21 = vld [vmem:[#allocation2 + $0xbc] sm:$0xff] }
 0x221   :  { %10078 = vmatmul.mubr.msk.f32.gmra.mrb[12].mxu1 %vm29_vm0, %v2170_v22  ;;  %v3056_v22 = vld [vmem:[#allocation2 + $0xc4] sm:$0xff] }
 0x222   :  { %10080 = vmatprep.mubr.msk.f32.mxu1 %vm29_vm0, %v2171_v24  ;;  %v3057_v24 = vld [vmem:[#allocation2 + $0xcc] sm:$0xff] }
 0x225   :  { %10081 = vmatmul.mubr.msk.f32.gmra.mrb[14].mxu1 %vm29_vm0, %v2172_v26  ;;  %v3058_v26 = vld [vmem:[#allocation2 + $0xd4] sm:$0xff] }
 0x226   :  { %10083 = vmatprep.mubr.msk.f32.mxu1 %vm29_vm0, %v2173_v27  ;;  %v3059_v27 = vld [vmem:[#allocation2 + $0xdc] sm:$0xff] }
 0x229   :  { %10084 = vmatmul.mubr.msk.f32.gmra.mrb[16].mxu1 %vm29_vm0, %v2174_v28  ;;  %v3060_v28 = vld [vmem:[#allocation2 + $0xe4] sm:$0xff] }
 0x22a   :  { %10086 = vmatprep.mubr.msk.f32.mxu1 %vm29_vm0, %v2175_v30  ;;  %v3061_v30 = vld [vmem:[#allocation2 + $0xec] sm:$0xff] }
 0x22d   :  { %10087 = vmatmul.mubr.msk.f32.gmra.mrb[18].mxu1 %vm29_vm0, %v2176_v31  ;;  %v3062_v31 = vld [vmem:[#allocation2 + $0xf4] sm:$0xff] }
 0x22e   :  { %10089 = vmatprep.mubr.msk.f32.mxu1 %vm29_vm0, %v2177_v33  ;;  %v3063_v33 = vld [vmem:[#allocation2 + $0xfc] sm:$0xff] }
 0x231   :  { %10090 = vmatmul.mubr.msk.f32.gmra.mrb[20].mxu1 %vm29_vm0, %v2178_v34  ;;  %v3064_v34 = vld [vmem:[#allocation2 + $0x104] sm:$0xff] }
 0x232   :  { %10092 = vmatprep.mubr.msk.f32.mxu1 %vm29_vm0, %v2179_v35  ;;  %v3278_v35 = vld [vmem:[#allocation2 + $0x8d] sm:$0xff] }
 0x235   :  { %10093 = vmatmul.mubr.msk.f32.gmra.mrb[22].mxu1 %vm29_vm0, %v2180_v36  ;;  %v3279_v36 = vld [vmem:[#allocation2 + $0x95] sm:$0xff] }
 0x236   :  { %10097 = vmatprep.mubr.msk.f32.mxu1 %vm29_vm0, %v2591_v38  ;;  %v3280_v38 = vld [vmem:[#allocation2 + $0x9d] sm:$0xff] }
 0x239   :  { %10098 = vmatmul.mubr.msk.f32.vlgmr.msra.gmra.mrb[8].mxu1 %vm29_vm0, %v2592_v40  ;;  %v3281_v40 = vld [vmem:[#allocation2 + $0xa5] sm:$0xff] }
 0x23a   :  { %10122 = vmatpush3.msk.msra.mxu1 %vm325_vm2, %v2836_v17  ;;  %10100 = vmatprep.mubr.msk.f32.mxu1 %vm29_vm0, %v2593_v41  ;;  %v3053_v17 = vld [vmem:[#allocation2 + $0xac] sm:$0xff] }
 0x23b   :  { %10147 = vmatprep.subr.msk.mxu1 %vm325_vm2, %v3065_v42  ;;  %v3282_v41 = vld [vmem:[#allocation2 + $0xad] sm:$0xff] }
 0x23d   :  { %10101 = vmatmul.mubr.msk.f32.gmra.mrb[10].mxu1 %vm29_vm0, %v2594_v43  ;;  %v3284_v43 = vld [vmem:[#allocation2 + $0xbd] sm:$0xff] }
 0x23e   :  { %10103 = vmatprep.mubr.msk.f32.mxu1 %vm29_vm0, %v2595_v44  ;;  %v3285_v44 = vld [vmem:[#allocation2 + $0xc5] sm:$0xff] }
 0x241   :  { %10104 = vmatmul.mubr.msk.f32.gmra.mrb[12].mxu1 %vm29_vm0, %v2596_v45  ;;  %v3286_v45 = vld [vmem:[#allocation2 + $0xcd] sm:$0xff] }
 0x242   :  { %10106 = vmatprep.mubr.msk.f32.mxu1 %vm29_vm0, %v2597_v46  ;;  %v3287_v46 = vld [vmem:[#allocation2 + $0xd5] sm:$0xff] }
 0x245   :  { %10107 = vmatmul.mubr.msk.f32.gmra.mrb[14].mxu1 %vm29_vm0, %v2598_v47  ;;  %v3288_v47 = vld [vmem:[#allocation2 + $0xdd] sm:$0xff] }
 0x246   :  { %10109 = vmatprep.mubr.msk.f32.mxu1 %vm29_vm0, %v2599_v48  ;;  %v3289_v48 = vld [vmem:[#allocation2 + $0xe5] sm:$0xff] }
 0x249   :  { %10110 = vmatmul.mubr.msk.f32.gmra.mrb[16].mxu1 %vm29_vm0, %v2600_v49  ;;  %v3290_v49 = vld [vmem:[#allocation2 + $0xed] sm:$0xff] }
 0x24a   :  { %10112 = vmatprep.mubr.msk.f32.mxu1 %vm29_vm0, %v2601_v50  ;;  %v3291_v50 = vld [vmem:[#allocation2 + $0xf5] sm:$0xff] }
 0x24d   :  { %10113 = vmatmul.mubr.msk.f32.gmra.mrb[18].mxu1 %vm29_vm0, %v2602_v51  ;;  %v3292_v51 = vld [vmem:[#allocation2 + $0xfd] sm:$0xff] }
 0x24e   :  { %10115 = vmatprep.mubr.msk.f32.mxu1 %vm29_vm0, %v2603_v52  ;;  %v3293_v52 = vld [vmem:[#allocation2 + $0x105] sm:$0xff] }
 0x251   :  { %10116 = vmatmul.mubr.msk.f32.gmra.mrb[20].mxu1 %vm29_vm0, %v2604_v54  ;;  %v3507_v54 = vld [vmem:[#allocation2 + $0x8e] sm:$0xff] }
 0x252   :  { %10118 = vmatprep.mubr.msk.f32.mxu1 %vm29_vm0, %v2605_v55  ;;  %v3508_v55 = vld [vmem:[#allocation2 + $0x96] sm:$0xff] }
 0x255   :  { %10119 = vmatmul.mubr.msk.f32.gmra.mrb[22].mxu1 %vm29_vm0, %v2606_v56  ;;  %v3509_v56 = vld [vmem:[#allocation2 + $0x9e] sm:$0xff] }
 0x256   :  { %10123 = vmatprep.mubr.msk.f32.mxu1 %vm29_vm0, %v2820_v57  ;;  %v3510_v57 = vld [vmem:[#allocation2 + $0xa6] sm:$0xff] }
 0x259   :  { %10124 = vmatmul.mubr.msk.f32.vlgmr.msra.gmra.mrb[8].mxu1 %vm29_vm0, %v2821_v58  ;;  %v3511_v58 = vld [vmem:[#allocation2 + $0xae] sm:$0xff] }
 0x25a   :  { %10148 = vmatpush3.msk.msra.mxu1 %vm325_vm2, %v3065_v42  ;;  %10126 = vmatprep.mubr.msk.f32.mxu1 %vm29_vm0, %v2822_v59  ;;  %v3283_v42 = vld [vmem:[#allocation2 + $0xb5] sm:$0xff] }
 0x25b   :  { %10173 = vmatprep.subr.msk.mxu1 %vm325_vm2, %v3294_v60 }
 0x25d   :  { %10127 = vmatmul.mubr.msk.f32.gmra.mrb[10].mxu1 %vm29_vm0, %v2823_v61 }
 0x25e   :  { %10129 = vmatprep.mubr.msk.f32.mxu1 %vm29_vm0, %v2824_v62 }
 0x261   :  { %10130 = vmatmul.mubr.msk.f32.gmra.mrb[12].mxu1 %vm29_vm0, %v2825_v63 }
 0x262   :  { %10132 = vmatprep.mubr.msk.f32.mxu1 %vm29_vm0, %v2826_v1 }
 0x265   :  { %10133 = vmatmul.mubr.msk.f32.gmra.mrb[14].mxu1 %vm29_vm0, %v2827_v2 }
 0x266   :  { %10135 = vmatprep.mubr.msk.f32.mxu1 %vm29_vm0, %v2828_v3 }
 0x269   :  { %10136 = vmatmul.mubr.msk.f32.gmra.mrb[16].mxu1 %vm29_vm0, %v2829_v4 }
 0x26a   :  { %10138 = vmatprep.mubr.msk.f32.mxu1 %vm29_vm0, %v2830_v5 }
 0x26d   :  { %10139 = vmatmul.mubr.msk.f32.gmra.mrb[18].mxu1 %vm29_vm0, %v2831_v6  ;;  %v3512_v6 = vld [vmem:[#allocation2 + $0xb6] sm:$0xff] }
 0x26e   :  { %10141 = vmatprep.mubr.msk.f32.mxu1 %vm29_vm0, %v2832_v7 }
 0x271   :  { %10142 = vmatmul.mubr.msk.f32.gmra.mrb[20].mxu1 %vm29_vm0, %v2833_v8 }
 0x272   :  { %10144 = vmatprep.mubr.msk.f32.mxu1 %vm29_vm0, %v2834_v9 }
 0x275   :  { %10145 = vmatmul.mubr.msk.f32.gmra.mrb[22].mxu1 %vm29_vm0, %v2835_v10 }
 0x276   :  { %10149 = vmatprep.mubr.msk.f32.mxu1 %vm29_vm0, %v3049_v11  ;;  %v3513_v11 = vld [vmem:[#allocation2 + $0xbe] sm:$0xff] }
 0x279   :  { %10150 = vmatmul.mubr.msk.f32.vlgmr.msra.gmra.mrb[8].mxu1 %vm29_vm0, %v3050_v12 }
 0x27a   :  { %10174 = vmatpush3.msk.msra.mxu1 %vm325_vm2, %v3294_v60  ;;  %10152 = vmatprep.mubr.msk.f32.mxu1 %vm29_vm0, %v3051_v13 }
 0x27b   :  { %10199 = vmatprep.subr.msk.mxu1 %vm325_vm2, %v3523_v14 }
 0x27d   :  { %10153 = vmatmul.mubr.msk.f32.gmra.mrb[10].mxu1 %vm29_vm0, %v3052_v15 }
 0x27e   :  { %10155 = vmatprep.mubr.msk.f32.mxu1 %vm29_vm0, %v3053_v17 }
 0x281   :  { %10156 = vmatmul.mubr.msk.f32.gmra.mrb[12].mxu1 %vm29_vm0, %v3054_v20 }
 0x282   :  { %10158 = vmatprep.mubr.msk.f32.mxu1 %vm29_vm0, %v3055_v21 }
 0x285   :  { %10159 = vmatmul.mubr.msk.f32.gmra.mrb[14].mxu1 %vm29_vm0, %v3056_v22 }
 0x286   :  { %10161 = vmatprep.mubr.msk.f32.mxu1 %vm29_vm0, %v3057_v24 }
 0x289   :  { %10162 = vmatmul.mubr.msk.f32.gmra.mrb[16].mxu1 %vm29_vm0, %v3058_v26 }
 0x28a   :  { %10164 = vmatprep.mubr.msk.f32.mxu1 %vm29_vm0, %v3059_v27 }
 0x28d   :  { %10165 = vmatmul.mubr.msk.f32.gmra.mrb[18].mxu1 %vm29_vm0, %v3060_v28 }
 0x28e   :  { %10167 = vmatprep.mubr.msk.f32.mxu1 %vm29_vm0, %v3061_v30  ;;  %v3514_v30 = vld [vmem:[#allocation2 + $0xc6] sm:$0xff] }
 0x291   :  { %10168 = vmatmul.mubr.msk.f32.gmra.mrb[20].mxu1 %vm29_vm0, %v3062_v31 }
 0x292   :  { %10170 = vmatprep.mubr.msk.f32.mxu1 %vm29_vm0, %v3063_v33 }
 0x295   :  { %10171 = vmatmul.mubr.msk.f32.gmra.mrb[22].mxu1 %vm29_vm0, %v3064_v34 }
 0x296   :  { %10175 = vmatprep.mubr.msk.f32.mxu1 %vm29_vm0, %v3278_v35 }
 0x299   :  { %10176 = vmatmul.mubr.msk.f32.vlgmr.msra.gmra.mrb[8].mxu1 %vm29_vm0, %v3279_v36  ;;  %v3515_v36 = vld [vmem:[#allocation2 + $0xce] sm:$0xff] }
 0x29a   :  { %10200 = vmatpush3.msk.msra.mxu1 %vm325_vm2, %v3523_v14  ;;  %10178 = vmatprep.mubr.msk.f32.mxu1 %vm29_vm0, %v3280_v38 }
 0x29d   :  { %10179 = vmatmul.mubr.msk.f32.gmra.mrb[10].mxu1 %vm29_vm0, %v3281_v40 }
 0x29e   :  { %10181 = vmatprep.mubr.msk.f32.mxu1 %vm29_vm0, %v3282_v41 }
 0x2a1   :  { %10182 = vmatmul.mubr.msk.f32.gmra.mrb[12].mxu1 %vm29_vm0, %v3283_v42 }
 0x2a2   :  { %10184 = vmatprep.mubr.msk.f32.mxu1 %vm29_vm0, %v3284_v43 }
 0x2a5   :  { %10185 = vmatmul.mubr.msk.f32.gmra.mrb[14].mxu1 %vm29_vm0, %v3285_v44 }
 0x2a6   :  { %10187 = vmatprep.mubr.msk.f32.mxu1 %vm29_vm0, %v3286_v45 }
 0x2a9   :  { %10188 = vmatmul.mubr.msk.f32.gmra.mrb[16].mxu1 %vm29_vm0, %v3287_v46 }
 0x2aa   :  { %10190 = vmatprep.mubr.msk.f32.mxu1 %vm29_vm0, %v3288_v47 }
 0x2ad   :  { %10191 = vmatmul.mubr.msk.f32.gmra.mrb[18].mxu1 %vm29_vm0, %v3289_v48 }
 0x2ae   :  { %10193 = vmatprep.mubr.msk.f32.mxu1 %vm29_vm0, %v3290_v49 }
 0x2b1   :  { %10194 = vmatmul.mubr.msk.f32.gmra.mrb[20].mxu1 %vm29_vm0, %v3291_v50 }
 0x2b2   :  { %10196 = vmatprep.mubr.msk.f32.mxu1 %vm29_vm0, %v3292_v51 }
 0x2b5   :  { %10197 = vmatmul.mubr.msk.f32.gmra.mrb[22].mxu1 %vm29_vm0, %v3293_v52 }
 0x2b6   :  { %10201 = vmatprep.mubr.msk.f32.mxu1 %vm29_vm0, %v3507_v54  ;;  %v3516_v54 = vld [vmem:[#allocation2 + $0xd6] sm:$0xff] }
 0x2b9   :  { %10202 = vmatmul.mubr.msk.f32.vlgmr.msra.gmra.mrb[8].mxu1 %vm29_vm0, %v3508_v55 }
 0x2ba   :  { %10204 = vmatprep.mubr.msk.f32.mxu1 %vm29_vm0, %v3509_v56 }
 0x2bc   :  { %v11907_v59 = vpop.f32.mrb[0].mxu1 }
 0x2bd   :  { %v1966_v60 = vrot.slane %v11907_v59, 1  ;;  %v1998_v61 = vrot.slane %v11907_v59, 2  ;;  %v2030_v62 = vrot.slane %v11907_v59, 3  ;;  %v2062_v63 = vrot.slane %v11907_v59, 4  ;;  %v1917_v1 = vpop.f32.mrb[1].mxu1  ;;  %10205 = vmatmul.mubr.msk.f32.gmra.mrb[10].mxu1 %vm29_vm0, %v3510_v57 }
 0x2be   :  { %v2093_v2 = vrot.slane %v11907_v59, 5  ;;  %v2125_v3 = vrot.slane %v11907_v59, 6  ;;  %v1965_v4 = vrot.slane %v1917_v1, 1  ;;  %v1997_v5 = vrot.slane %v1917_v1, 2  ;;  %10207 = vmatprep.mubr.msk.f32.mxu1 %vm29_vm0, %v3511_v58 }
 0x2bf   :  { %v2029_v7 = vrot.slane %v1917_v1, 3  ;;  %v2061_v8 = vrot.slane %v1917_v1, 4  ;;  %v2092_v9 = vrot.slane %v1917_v1, 5  ;;  %v2124_v10 = vrot.slane %v1917_v1, 6 }
 0x2c0   :  { %v1967_v12 = vsel %vm1964_vm13, %v1965_v4, %v1966_v60  ;;  %v1999_v13 = vsel %vm1996_vm14, %v1997_v5, %v1998_v61  ;;  %v11919_v14 = vpop.f32.mrb[2].mxu1 }
 0x2c1   :  { %v1988_v15 = vmax.f32 %v1917_v1, %v1967_v12  ;;  %v2031_v17 = vsel %vm2028_vm15, %v2029_v7, %v2030_v62  ;;  %v2063_v20 = vsel %vm2060_vm1, %v2061_v8, %v2062_v63  ;;  %v2094_v21 = vsel %vm325_vm2, %v2092_v9, %v2093_v2  ;;  %v1927_v22 = vpop.f32.mrb[3].mxu1  ;;  %10208 = vmatmul.mubr.msk.f32.gmra.mrb[12].mxu1 %vm29_vm0, %v3512_v6 }
 0x2c2   :  { %v2126_v24 = vsel %vm2123_vm12, %v2124_v10, %v2125_v3  ;;  %v1970_v26 = vrot.slane %v11919_v14, 1  ;;  %v2002_v27 = vrot.slane %v11919_v14, 2  ;;  %v2034_v28 = vrot.slane %v11919_v14, 3  ;;  %10210 = vmatprep.mubr.msk.f32.mxu1 %vm29_vm0, %v3513_v11 }
 0x2c3   :  { %v2020_v31 = vmax.f32 %v1988_v15, %v1999_v13  ;;  %v2066_v33 = vrot.slane %v11919_v14, 4  ;;  %v2097_v34 = vrot.slane %v11919_v14, 5  ;;  %v2129_v35 = vrot.slane %v11919_v14, 6  ;;  %v3518_v13 = vld [vmem:[#allocation2 + $0xe6] sm:$0xff] }
 0x2c4   :  { %v1968_v38 = vrot.slane %v1927_v22, 1  ;;  %v2000_v40 = vrot.slane %v1927_v22, 2  ;;  %v2032_v41 = vrot.slane %v1927_v22, 3  ;;  %v2064_v42 = vrot.slane %v1927_v22, 4  ;;  %v11935_v43 = vpop.f32.mrb[4].mxu1 }
 0x2c5   :  { %v2052_v44 = vmax.f32 %v2020_v31, %v2031_v17  ;;  %v2095_v45 = vrot.slane %v1927_v22, 5  ;;  %v2127_v46 = vrot.slane %v1927_v22, 6  ;;  %v1974_v47 = vrot.slane %v11935_v43, 1  ;;  %v11938_v48 = vpop.f32.mrb[5].mxu1  ;;  %10211 = vmatmul.mubr.msk.f32.gmra.mrb[14].mxu1 %vm29_vm0, %v3514_v30 }
 0x2c6   :  { %v1969_v49 = vsel %vm1964_vm13, %v1966_v60, %v1968_v38  ;;  %v1971_v50 = vsel %vm1964_vm13, %v1968_v38, %v1970_v26  ;;  %v2001_v51 = vsel %vm1996_vm14, %v1998_v61, %v2000_v40  ;;  %v2003_v52 = vsel %vm1996_vm14, %v2000_v40, %v2002_v27  ;;  %10213 = vmatprep.mubr.msk.f32.mxu1 %vm29_vm0, %v3515_v36  ;;  %v3517_v60 = vld [vmem:[#allocation2 + $0xde] sm:$0xff] }
 0x2c7   :  { %v2084_v55 = vmax.f32 %v2052_v44, %v2063_v20  ;;  %v1989_v56 = vmax.f32 %v11907_v59, %v1969_v49  ;;  %v1990_v57 = vmax.f32 %v1927_v22, %v1971_v50  ;;  %v2033_v58 = vsel %vm2028_vm15, %v2030_v62, %v2032_v41  ;;  %v3519_v22 = vld [vmem:[#allocation2 + $0xee] sm:$0xff] }
 0x2c8   :  { %v2035_v1 = vsel %vm2028_vm15, %v2032_v41, %v2034_v28  ;;  %v2065_v61 = vsel %vm2060_vm1, %v2062_v63, %v2064_v42  ;;  %v2067_v4 = vsel %vm2060_vm1, %v2064_v42, %v2066_v33  ;;  %v2096_v5 = vsel %vm325_vm2, %v2093_v2, %v2095_v45  ;;  %v11960_v6 = vpop.f32.mrb[6].mxu1 }
 0x2c9   :  { %v2115_v7 = vmax.f32 %v2084_v55, %v2094_v21  ;;  %v2021_v8 = vmax.f32 %v1989_v56, %v2001_v51  ;;  %v2022_v9 = vmax.f32 %v1990_v57, %v2003_v52  ;;  %v2098_v62 = vsel %vm325_vm2, %v2095_v45, %v2097_v34  ;;  %v11965_v10 = vpop.f32.mrb[7].mxu1  ;;  %10214 = vmatmul.mubr.msk.f32.gmra.mrb[16].mxu1 %vm29_vm0, %v3516_v54  ;;  %v3521_v52 = vld [vmem:[#allocation2 + $0xfe] sm:$0xff] }
 0x2ca   :  { %v2128_v63 = vsel %vm2123_vm12, %v2125_v3, %v2127_v46  ;;  %v2130_v2 = vsel %vm2123_vm12, %v2127_v46, %v2129_v35  ;;  %v2006_v11 = vrot.slane %v11935_v43, 2  ;;  %v2038_v12 = vrot.slane %v11935_v43, 3  ;;  %10216 = vmatprep.mubr.msk.f32.mxu1 %vm29_vm0, %v3517_v60  ;;  %v3520_v46 = vld [vmem:[#allocation2 + $0xf6] sm:$0xff] }
 0x2cb   :  { %v2147_v15 = vmax.f32 %v2115_v7, %v2126_v24  ;;  %v2053_v17 = vmax.f32 %v2021_v8, %v2033_v58  ;;  %v2054_v20 = vmax.f32 %v2022_v9, %v2035_v1  ;;  %v2070_v21 = vrot.slane %v11935_v43, 4 }
 0x2cc   :  { %v2101_v59 = vrot.slane %v11935_v43, 5  ;;  %v2133_v3 = vrot.slane %v11935_v43, 6  ;;  %v1972_v30 = vrot.slane %v11938_v48, 1  ;;  %v2004_v31 = vrot.slane %v11938_v48, 2 }
 0x2cd   :  { %2155 = vst.msk [vmem:[#allocation3 + $0x1] sm:$0xff] %vm65_vm11, %v2147_v15  ;;  %v2085_v36 = vmax.f32 %v2053_v17, %v2065_v61  ;;  %v2086_v38 = vmax.f32 %v2054_v20, %v2067_v4  ;;  %v2036_v40 = vrot.slane %v11938_v48, 3  ;;  %v2068_v24 = vrot.slane %v11938_v48, 4  ;;  %10217 = vmatmul.mubr.msk.f32.gmra.mrb[18].mxu1 %vm29_vm0, %v3518_v13 }
 0x2ce   :  { %v1973_v41 = vsel %vm1964_vm13, %v1970_v26, %v1972_v30  ;;  %v1975_v42 = vsel %vm1964_vm13, %v1972_v30, %v1974_v47  ;;  %v2005_v44 = vsel %vm1996_vm14, %v2002_v27, %v2004_v31  ;;  %v2007_v45 = vsel %vm1996_vm14, %v2004_v31, %v2006_v11  ;;  %10219 = vmatprep.mubr.msk.f32.mxu1 %vm29_vm0, %v3519_v22 }
 0x2cf   :  { %v2116_v49 = vmax.f32 %v2085_v36, %v2096_v5  ;;  %v2117_v50 = vmax.f32 %v2086_v38, %v2098_v62  ;;  %v1991_v51 = vmax.f32 %v11919_v14, %v1973_v41  ;;  %v1992_v26 = vmax.f32 %v11938_v48, %v1975_v42 }
 0x2d0   :  { %v2037_v54 = vsel %vm2028_vm15, %v2034_v28, %v2036_v40  ;;  %v2039_v27 = vsel %vm2028_vm15, %v2036_v40, %v2038_v12  ;;  %v2069_v55 = vsel %vm2060_vm1, %v2066_v33, %v2068_v24  ;;  %v2071_v56 = vsel %vm2060_vm1, %v2068_v24, %v2070_v21  ;;  %v3522_v33 = vld [vmem:[#allocation2 + $0x106] sm:$0xff] }
 0x2d1   :  { %v2148_v57 = vmax.f32 %v2116_v49, %v2128_v63  ;;  %v2149_v58 = vmax.f32 %v2117_v50, %v2130_v2  ;;  %v2023_v60 = vmax.f32 %v1991_v51, %v2005_v44  ;;  %v2024_v1 = vmax.f32 %v1992_v26, %v2007_v45  ;;  %10220 = vmatmul.mubr.msk.f32.gmra.mrb[20].mxu1 %vm29_vm0, %v3520_v46 }
 0x2d2   :  { %v2099_v28 = vrot.slane %v11938_v48, 5  ;;  %v2131_v61 = vrot.slane %v11938_v48, 6  ;;  %v1978_v4 = vrot.slane %v11960_v6, 1  ;;  %v2010_v5 = vrot.slane %v11960_v6, 2  ;;  %10222 = vmatprep.mubr.msk.f32.mxu1 %vm29_vm0, %v3521_v52 }
 0x2d3   :  { %2156 = vst.msk [vmem:[#allocation3 + $0x9] sm:$0xff] %vm65_vm11, %v2148_v57  ;;  %2157 = vst.msk [vmem:[#allocation3 + $0x11] sm:$0xff] %vm65_vm11, %v2149_v58  ;;  %v2055_v7 = vmax.f32 %v2023_v60, %v2037_v54  ;;  %v2056_v8 = vmax.f32 %v2024_v1, %v2039_v27  ;;  %v2042_v9 = vrot.slane %v11960_v6, 3  ;;  %v2074_v62 = vrot.slane %v11960_v6, 4 }
 0x2d4   :  { %v2100_v48 = vsel %vm325_vm2, %v2097_v34, %v2099_v28  ;;  %v2102_v63 = vsel %vm325_vm2, %v2099_v28, %v2101_v59  ;;  %v2132_v2 = vsel %vm2123_vm12, %v2129_v35, %v2131_v61  ;;  %v2134_v13 = vsel %vm2123_vm12, %v2131_v61, %v2133_v3 }
 0x2d5   :  { %v2087_v15 = vmax.f32 %v2055_v7, %v2069_v55  ;;  %v2088_v17 = vmax.f32 %v2056_v8, %v2071_v56  ;;  %v1995_v20 = vmax.f32 %v11960_v6, %v1978_v4  ;;  %v2105_v22 = vrot.slane %v11960_v6, 5  ;;  %10223 = vmatmul.mubr.msk.f32.gmra.mrb[22].mxu1 %vm29_vm0, %v3522_v33 }
 0x2d6   :  { %v2137_v34 = vrot.slane %v11960_v6, 6  ;;  %v1976_v30 = vrot.slane %v11965_v10, 1  ;;  %v2008_v14 = vrot.slane %v11965_v10, 2  ;;  %v2040_v35 = vrot.slane %v11965_v10, 3 }
 0x2d7   :  { %v2118_v31 = vmax.f32 %v2087_v15, %v2100_v48  ;;  %v2119_v36 = vmax.f32 %v2088_v17, %v2102_v63  ;;  %v2027_v38 = vmax.f32 %v1995_v20, %v2010_v5  ;;  %v2072_v40 = vrot.slane %v11965_v10, 4  ;;  %v11272_v17 = vld [vmem:[%s12786_s2] ss:$0 sm:$0xff] }
 0x2d8   :  { %v1977_v24 = vsel %vm1964_vm13, %v1974_v47, %v1976_v30  ;;  %v1979_v41 = vsel %vm1964_vm13, %v1976_v30, %v1978_v4  ;;  %v2009_v6 = vsel %vm1996_vm14, %v2006_v11, %v2008_v14  ;;  %v2011_v42 = vsel %vm1996_vm14, %v2008_v14, %v2010_v5 }
 0x2d9   :  { %v2150_v44 = vmax.f32 %v2118_v31, %v2132_v2  ;;  %v2151_v45 = vmax.f32 %v2119_v36, %v2134_v13  ;;  %v2059_v46 = vmax.f32 %v2027_v38, %v2042_v9  ;;  %v1993_v49 = vmax.f32 %v11935_v43, %v1977_v24 }
 0x2da   :  { %v1994_v50 = vmax.f32 %v11965_v10, %v1979_v41  ;;  %v2041_v51 = vsel %vm2028_vm15, %v2038_v12, %v2040_v35  ;;  %v2043_v47 = vsel %vm2028_vm15, %v2040_v35, %v2042_v9  ;;  %v2073_v26 = vsel %vm2060_vm1, %v2070_v21, %v2072_v40  ;;  %v4088_v29 = vld [vmem:[#allocation3 + $0x11] sm:$0xff] }
 0x2db   :  { %2158 = vst.msk [vmem:[#allocation3 + $0x19] sm:$0xff] %vm65_vm11, %v2150_v44  ;;  %2159 = vst.msk [vmem:[#allocation3 + $0x21] sm:$0xff] %vm65_vm11, %v2151_v45  ;;  %v2091_v11 = vmax.f32 %v2059_v46, %v2074_v62  ;;  %v2025_v52 = vmax.f32 %v1993_v49, %v2009_v6  ;;  %v2075_v54 = vsel %vm2060_vm1, %v2072_v40, %v2074_v62  ;;  %v2103_v27 = vrot.slane %v11965_v10, 5 }
 0x2dc   :  { %v2026_v55 = vmax.f32 %v1994_v50, %v2011_v42  ;;  %v2135_v56 = vrot.slane %v11965_v10, 6  ;;  %vm2162_vm0 = vcmask 25600  }
 0x2dd   :  { %v2122_v12 = vmax.f32 %v2091_v11, %v2105_v22  ;;  %v2057_v57 = vmax.f32 %v2025_v52, %v2041_v51  ;;  %v2104_v58 = vsel %vm325_vm2, %v2101_v59, %v2103_v27  ;;  %v2106_v21 = vsel %vm325_vm2, %v2103_v27, %v2105_v22 }
 0x2de   :  { %v2058_v60 = vmax.f32 %v2026_v55, %v2043_v47  ;;  %v2136_v1 = vsel %vm2123_vm12, %v2133_v3, %v2135_v56  ;;  %v2138_v28 = vsel %vm2123_vm12, %v2135_v56, %v2137_v34 }
 0x2df   :  { %v2154_v61 = vmax.f32 %v2122_v12, %v2137_v34  ;;  %v2089_v4 = vmax.f32 %v2057_v57, %v2073_v26 }
 0x2e0   :  { %v2090_v5 = vmax.f32 %v2058_v60, %v2075_v54 }
 0x2e1   :  { %2163 = vst.msk [vmem:[#allocation3 + $0x39] sm:$0x3] %vm2162_vm0, %v2154_v61  ;;  %v2120_v10 = vmax.f32 %v2089_v4, %v2104_v58 }
 0x2e2   :  { %v2121_v33 = vmax.f32 %v2090_v5, %v2106_v21  ;;  %v4089_v32 = vld [vmem:[#allocation3 + $0x19] sm:$0xff]  ;;  %v4090_v37 = vld [vmem:[#allocation3 + $0x21] sm:$0xff] }
 0x2e3   :  { %v2152_v7 = vmax.f32 %v2120_v10, %v2136_v1 }
 0x2e4   :  { %v2153_v8 = vmax.f32 %v2121_v33, %v2138_v28 }
 0x2e5   :  { %2160 = vst.msk [vmem:[#allocation3 + $0x29] sm:$0xff] %vm65_vm11, %v2152_v7 }
 0x2e6   :  { %2161 = vst.msk [vmem:[#allocation3 + $0x31] sm:$0xff] %vm65_vm11, %v2153_v8 }
 0x2ed   :  { %v4092_v39 = vld [vmem:[#allocation3 + $0x31] sm:$0xff] }
 0x38c   :  { %v10203_v59 = vpop.f32.mrb[8].mxu1 }
 0x38d   :  { %v3737_v43 = vadd.f32 %v10203_v59, %v11725_v53  ;;  %v3641_v9 = vpop.f32.mrb[9].mxu1 }
 0x38e   :  { %v3736_v3 = vadd.f32 %v11725_v53, %v3641_v9 }
 0x38f   :  { %v3753_v62 = vmax.f32 %v3737_v43, 0.0 }
 0x390   :  { %v3752_v48 = vmax.f32 %v3736_v3, 0.0  ;;  %v10206_v63 = vpop.f32.mrb[10].mxu1  ;;  %v4094_v3 = vld [vmem:[#allocation9 + $0x19] sm:$0xf] }
 0x391   :  { %v3739_v2 = vadd.f32 %v10206_v63, %v11725_v53  ;;  %v3651_v13 = vpop.f32.mrb[11].mxu1  ;;  %v4087_v63 = vld [vmem:[#allocation3 + $0x9] sm:$0xff] }
 0x392   :  { %v10765_v15 = vpack.c.bf16 %v3753_v62, %v3752_v48  ;;  %v3738_v20 = vadd.f32 %v11272_v17, %v3651_v13  ;;  %v4085_v62 = vld [vmem:[#allocation9 + $0x15] sm:$0xf]  ;;  %v4086_v48 = vld [vmem:[#allocation3 + $0x1] sm:$0xff]  ;;  %v4093_v13 = vld [vmem:[#allocation3 + $0x39] sm:$0x3] }
 0x393   :  { %v3755_v22 = vmax.f32 %v3739_v2, 0.0  ;;  %v4367_v2 = vld [vmem:[#allocation9 + $0x1d] sm:$0xf] }
 0x394   :  { %v3754_v34 = vmax.f32 %v3738_v20, 0.0  ;;  %v10209_v30 = vpop.f32.mrb[12].mxu1  ;;  %10766 = vmatprep.subr.bf16.mxu0 %v10765_v15  ;;  %v4079_v20 = vld [vmem:[#allocation3 + $0x10] sm:$0xff] }
 0x395   :  { %v3741_v14 = vadd.f32 %v11272_v17, %v10209_v30  ;;  %v3661_v35 = vpop.f32.mrb[13].mxu1  ;;  %10768 = vmatpush3.bf16.msra.mxu0 %v10765_v15  ;;  %v4077_v15 = vld [vmem:[#allocation3] sm:$0xff]  ;;  %v4082_v30 = vld [vmem:[#allocation3 + $0x28] sm:$0xff] }
 0x396   :  { %v10769_v31 = vpack.c.bf16 %v3755_v22, %v3754_v34  ;;  %v3740_v36 = vadd.f32 %v11272_v17, %v3661_v35  ;;  %v4080_v22 = vld [vmem:[#allocation3 + $0x18] sm:$0xff]  ;;  %v4081_v34 = vld [vmem:[#allocation3 + $0x20] sm:$0xff] }
 0x397   :  { %v3757_v38 = vmax.f32 %v3741_v14, 0.0  ;;  %v4083_v14 = vld [vmem:[#allocation3 + $0x30] sm:$0xff]  ;;  %v4084_v35 = vld [vmem:[#allocation3 + $0x38] sm:$0x3] }
 0x398   :  { %v3756_v40 = vmax.f32 %v3740_v36, 0.0  ;;  %v10212_v24 = vpop.f32.mrb[14].mxu1  ;;  %10770 = vmatprep.subr.bf16.mxu0 %v10769_v31  ;;  %v4360_v36 = vld [vmem:[#allocation3 + $0xa] sm:$0xff] }
 0x399   :  { %v3743_v53 = vadd.f32 %v11272_v17, %v10212_v24  ;;  %v3671_v41 = vpop.f32.mrb[15].mxu1  ;;  %10772 = vmatpush3.bf16.msra.mxu0 %v10769_v31  ;;  %v4359_v31 = vld [vmem:[#allocation3 + $0x2] sm:$0xff] }
 0x39a   :  { %v10773_v6 = vpack.c.bf16 %v3757_v38, %v3756_v40  ;;  %v3742_v42 = vadd.f32 %v11272_v17, %v3671_v41  ;;  %v4361_v38 = vld [vmem:[#allocation3 + $0x12] sm:$0xff]  ;;  %v4362_v40 = vld [vmem:[#allocation3 + $0x1a] sm:$0xff]  ;;  %v4363_v24 = vld [vmem:[#allocation3 + $0x22] sm:$0xff] }
 0x39b   :  { %v3759_v44 = vmax.f32 %v3743_v53, 0.0  ;;  %v4364_v53 = vld [vmem:[#allocation3 + $0x2a] sm:$0xff]  ;;  %v4365_v41 = vld [vmem:[#allocation3 + $0x32] sm:$0xff] }
 0x39c   :  { %v3758_v45 = vmax.f32 %v3742_v42, 0.0  ;;  %v10215_v46 = vpop.f32.mrb[16].mxu1  ;;  %10774 = vmatprep.subr.bf16.mxu0 %v10773_v6  ;;  %v4554_v42 = vld [vmem:[#allocation9 + $0x19] sm:$0xf] }
 0x39d   :  { %v3745_v49 = vadd.f32 %v11272_v17, %v10215_v46  ;;  %v3681_v50 = vpop.f32.mrb[17].mxu1  ;;  %10776 = vmatpush3.bf16.msra.mxu0 %v10773_v6  ;;  %v4366_v6 = vld [vmem:[#allocation3 + $0x3a] sm:$0x3]  ;;  %10957 = vmatprep.subr.msk.mxu1 %vm2060_vm1, %v4554_v42 }
 0x39e   :  { %v10777_v51 = vpack.c.bf16 %v3759_v44, %v3758_v45  ;;  %v3744_v47 = vadd.f32 %v11272_v17, %v3681_v50  ;;  %10958 = vmatpush3.msk.msra.mxu1 %vm2060_vm1, %v4554_v42  ;;  %v12137_v44 = vld [vmem:[#allocation9 + $0x15] sm:$0xf]  ;;  %v12181_v45 = vld [vmem:[#allocation9 + $0x29] sm:$0xff] }
 0x39f   :  { %v3761_v26 = vmax.f32 %v3745_v49, 0.0  ;;  %10325 = vmatprep.subr.msk.mxu1 %vm2060_vm1, %v12137_v44 }
 0x3a0   :  { %v3760_v11 = vmax.f32 %v3744_v47, 0.0  ;;  %v10218_v52 = vpop.f32.mrb[18].mxu1  ;;  %10778 = vmatprep.subr.bf16.mxu0 %v10777_v51 }
 0x3a1   :  { %v3747_v54 = vadd.f32 %v11272_v17, %v10218_v52  ;;  %v3691_v27 = vpop.f32.mrb[19].mxu1  ;;  %10780 = vmatpush3.bf16.msra.mxu0 %v10777_v51 }
 0x3a2   :  { %v10781_v55 = vpack.c.bf16 %v3761_v26, %v3760_v11  ;;  %v3746_v56 = vadd.f32 %v11272_v17, %v3691_v27 }
 0x3a3   :  { %v3763_v12 = vmax.f32 %v3747_v54, 0.0 }
 0x3a4   :  { %v3762_v57 = vmax.f32 %v3746_v56, 0.0  ;;  %v10221_v58 = vpop.f32.mrb[20].mxu1  ;;  %10782 = vmatprep.subr.bf16.mxu0 %v10781_v55 }
 0x3a5   :  { %v3749_v21 = vadd.f32 %v11272_v17, %v10221_v58  ;;  %v3701_v60 = vpop.f32.mrb[21].mxu1  ;;  %10784 = vmatpush3.bf16.msra.mxu0 %v10781_v55 }
 0x3a6   :  { %v10785_v1 = vpack.c.bf16 %v3763_v12, %v3762_v57  ;;  %v3748_v28 = vadd.f32 %v11272_v17, %v3701_v60 }
 0x3a7   :  { %v3765_v61 = vmax.f32 %v3749_v21, 0.0 }
 0x3a8   :  { %v3764_v4 = vmax.f32 %v3748_v28, 0.0  ;;  %v10224_v5 = vpop.f32.mrb[22].mxu1  ;;  %10786 = vmatprep.subr.bf16.mxu0 %v10785_v1 }
 0x3a9   :  { %v3751_v10 = vadd.f32 %v11272_v17, %v10224_v5  ;;  %v3711_v33 = vpop.f32.mrb[23].mxu1  ;;  %10788 = vmatpush3.bf16.msra.mxu0 %v10785_v1 }
 0x3aa   :  { %v10789_v7 = vpack.c.bf16 %v3765_v61, %v3764_v4  ;;  %v3750_v8 = vadd.f32 %v11272_v17, %v3711_v33  ;;  %v4078_v17 = vld [vmem:[#allocation3 + $0x8] sm:$0xff] }
 0x3ab   :  { %v3767_v59 = vmax.f32 %v3751_v10, 0.0 }
 0x3ac   :  { %v3766_v43 = vmax.f32 %v3750_v8, 0.0  ;;  %10790 = vmatprep.subr.bf16.mxu0 %v10789_v7 }
 0x3ad   :  { %10792 = vmatpush3.bf16.msra.mxu0 %v10789_v7 }
 0x3ae   :  { %v10793_v9 = vpack.c.bf16 %v3767_v59, %v3766_v43 }
 0x3b0   :  { %10794 = vmatprep.subr.bf16.mxu0 %v10793_v9 }
 0x3b1   :  { %10796 = vmatpush3.bf16.msra.mxu0 %v10793_v9 }
 0x3b2   :  { %10269 = vmatprep.subr.msk.mxu0 %vm2060_vm1, %v4094_v3 }
 0x3b4   :  { %10258 = vmatmul.mubr.msk.f32.vlgmr.msra.gmra.mrb[16].mxu0 %vm11627_vm4, %v11325_v18 }
 0x3b5   :  { %10270 = vmatpush3.msk.msra.mxu0 %vm2060_vm1, %v4094_v3  ;;  %10260 = vmatprep.mubr.msk.f32.mxu0 %vm11634_vm5, %v11325_v18 }
 0x3b6   :  { %10283 = vmatprep.subr.msk.mxu0 %vm2060_vm1, %v4085_v62 }
 0x3b8   :  { %10261 = vmatmul.mubr.msk.f32.gmra.mrb[18].mxu0 %vm11638_vm6, %v11325_v18  ;;  %vm110_vm6 = vcmask 130048  }
 0x3b9   :  { %10263 = vmatprep.mubr.msk.f32.mxu0 %vm11642_vm7, %v11325_v18  ;;  %vm83_vm7 = vcmask 64512   ;;  %112 = vst.msk [vmem:[#allocation6 + $0x8] sm:$0xff] %vm110_vm6, %v11324_v0  ;;  %113 = vst.msk [vmem:[#allocation6 + $0x10] sm:$0xff] %vm110_vm6, %v11324_v0 }
 0x3ba   :  { %85 = vst.msk [vmem:[#allocation4 + $0x8] sm:$0xff] %vm83_vm7, %v11324_v0  ;;  %86 = vst.msk [vmem:[#allocation4 + $0x10] sm:$0xff] %vm83_vm7, %v11324_v0 }
 0x3bb   :  { %84 = vst.msk [vmem:[#allocation4] sm:$0xff] %vm83_vm7, %v11324_v0  ;;  %87 = vst.msk [vmem:[#allocation4 + $0x18] sm:$0xff] %vm83_vm7, %v11324_v0 }
 0x3bc   :  { %10264 = vmatmul.mubr.msk.f32.gmra.mrb[20].mxu0 %vm11649_vm8, %v11325_v18  ;;  %88 = vst.msk [vmem:[#allocation4 + $0x20] sm:$0xff] %vm83_vm7, %v11324_v0  ;;  %89 = vst.msk [vmem:[#allocation4 + $0x28] sm:$0xff] %vm83_vm7, %v11324_v0  ;;  %vm91_vm8 = vcmask 60416  }
 0x3bd   :  { %10266 = vmatprep.mubr.msk.f32.mxu0 %vm11658_vm9, %v11325_v18  ;;  %90 = vst.msk [vmem:[#allocation4 + $0x30] sm:$0xff] %vm83_vm7, %v11324_v0  ;;  %93 = vst.msk [vmem:[#allocation4 + $0x40] sm:$0xff] %vm83_vm7, %v11324_v0  ;;  %vm5436_vm9 = vcmask 474112  }
 0x3be   :  { %94 = vst.msk [vmem:[#allocation4 + $0x48] sm:$0xff] %vm83_vm7, %v11324_v0  ;;  %95 = vst.msk [vmem:[#allocation4 + $0x50] sm:$0xff] %vm83_vm7, %v11324_v0 }
 0x3bf   :  { %96 = vst.msk [vmem:[#allocation4 + $0x58] sm:$0xff] %vm83_vm7, %v11324_v0  ;;  %97 = vst.msk [vmem:[#allocation4 + $0x60] sm:$0xff] %vm83_vm7, %v11324_v0 }
 0x3c0   :  { %10267 = vmatmul.mubr.msk.f32.gmra.mrb[22].mxu0 %vm11665_vm10, %v11325_v18  ;;  %v4091_v18 = vld [vmem:[#allocation3 + $0x29] sm:$0xff]  ;;  %98 = vst.msk [vmem:[#allocation4 + $0x68] sm:$0xff] %vm83_vm7, %v11324_v0  ;;  %99 = vst.msk [vmem:[#allocation4 + $0x70] sm:$0xff] %vm83_vm7, %v11324_v0 }
 0x3c1   :  { %10271 = vmatprep.mubr.msk.f32.mxu0 %vm65_vm11, %v4086_v48  ;;  %101 = vst.msk [vmem:[#allocation5] sm:$0xff] %vm83_vm7, %v11324_v0  ;;  %102 = vst.msk [vmem:[#allocation5 + $0x8] sm:$0xff] %vm83_vm7, %v11324_v0 }
 0x3c2   :  { %103 = vst.msk [vmem:[#allocation5 + $0x10] sm:$0xff] %vm83_vm7, %v11324_v0  ;;  %106 = vst.msk [vmem:[#allocation5 + $0x20] sm:$0xff] %vm83_vm7, %v11324_v0 }
 0x3c3   :  { %107 = vst.msk [vmem:[#allocation5 + $0x28] sm:$0xff] %vm83_vm7, %v11324_v0  ;;  %108 = vst.msk [vmem:[#allocation5 + $0x30] sm:$0xff] %vm83_vm7, %v11324_v0 }
 0x3c4   :  { %10272 = vmatmul.mubr.msk.f32.vlgmr.msra.gmra.mrb[24].mxu0 %vm65_vm11, %v4087_v63  ;;  %92 = vst.msk [vmem:[#allocation4 + $0x38] sm:$0xf] %vm91_vm8, %v11324_v0  ;;  %100 = vst.msk [vmem:[#allocation4 + $0x78] sm:$0xf] %vm91_vm8, %v11324_v0  ;;  %vm7804_vm8 = vcmask 260096  }
 0x3c5   :  { %10274 = vmatprep.mubr.msk.f32.mxu0 %vm65_vm11, %v4088_v29  ;;  %10284 = vmatpush3.msk.msra.mxu0 %vm2060_vm1, %v4085_v62  ;;  %111 = vst.msk [vmem:[#allocation6] sm:$0xff] %vm110_vm6, %v11324_v0  ;;  %116 = vst.msk [vmem:[#allocation6 + $0x20] sm:$0xff] %vm110_vm6, %v11324_v0 }
 0x3c6   :  { %10297 = vmatprep.subr.msk.mxu0 %vm2060_vm1, %v4367_v2  ;;  %117 = vst.msk [vmem:[#allocation6 + $0x28] sm:$0xff] %vm110_vm6, %v11324_v0  ;;  %118 = vst.msk [vmem:[#allocation6 + $0x30] sm:$0xff] %vm110_vm6, %v11324_v0 }
 0x3c7   :  { %120 = vst.msk [vmem:[#allocation7] sm:$0xff] %vm110_vm6, %v11324_v0  ;;  %121 = vst.msk [vmem:[#allocation7 + $0x8] sm:$0xff] %vm110_vm6, %v11324_v0 }
 0x3c8   :  { %10275 = vmatmul.mubr.msk.f32.gmra.mrb[26].mxu0 %vm65_vm11, %v4089_v32  ;;  %124 = vst.msk [vmem:[#allocation7 + $0x18] sm:$0xff] %vm110_vm6, %v11324_v0  ;;  %125 = vst.msk [vmem:[#allocation7 + $0x20] sm:$0xff] %vm110_vm6, %v11324_v0 }
 0x3c9   :  { %10277 = vmatprep.mubr.msk.f32.mxu0 %vm65_vm11, %v4090_v37 }
 0x3cc   :  { %10278 = vmatmul.mubr.msk.f32.gmra.mrb[28].mxu0 %vm65_vm11, %v4091_v18 }
 0x3cd   :  { %10280 = vmatprep.mubr.msk.f32.mxu0 %vm65_vm11, %v4092_v39 }
 0x3d0   :  { %10281 = vmatmul.mubr.msk.f32.gmra.mrb[30].mxu0 %vm65_vm11, %v4093_v13 }
 0x3d1   :  { %10285 = vmatprep.mubr.msk.f32.mxu0 %vm65_vm11, %v4077_v15 }
 0x3d4   :  { %10286 = vmatmul.mubr.msk.f32.vlgmr.msra.gmra.mrb[24].mxu0 %vm65_vm11, %v4078_v17 }
 0x3d5   :  { %10288 = vmatprep.mubr.msk.f32.mxu0 %vm65_vm11, %v4079_v20  ;;  %10298 = vmatpush3.msk.msra.mxu0 %vm2060_vm1, %v4367_v2 }
 0x3d6   :  { %10311 = vmatprep.subr.msk.mxu0 %vm2060_vm1, %v4554_v42 }
 0x3d8   :  { %10289 = vmatmul.mubr.msk.f32.gmra.mrb[26].mxu0 %vm65_vm11, %v4080_v22 }
 0x3d9   :  { %10291 = vmatprep.mubr.msk.f32.mxu0 %vm65_vm11, %v4081_v34 }
 0x3dc   :  { %10292 = vmatmul.mubr.msk.f32.gmra.mrb[28].mxu0 %vm65_vm11, %v4082_v30 }
 0x3dd   :  { %10294 = vmatprep.mubr.msk.f32.mxu0 %vm65_vm11, %v4083_v14 }
 0x3e0   :  { %10295 = vmatmul.mubr.msk.f32.gmra.mrb[30].mxu0 %vm65_vm11, %v4084_v35 }
 0x3e1   :  { %10299 = vmatprep.mubr.msk.f32.mxu0 %vm65_vm11, %v4359_v31 }
 0x3e4   :  { %10300 = vmatmul.mubr.msk.f32.vlgmr.msra.gmra.mrb[24].mxu0 %vm65_vm11, %v4360_v36 }
 0x3e5   :  { %10302 = vmatprep.mubr.msk.f32.mxu0 %vm65_vm11, %v4361_v38  ;;  %10312 = vmatpush3.msk.msra.mxu0 %vm2060_vm1, %v4554_v42 }
 0x3e6   :  { %10353 = vmatprep.subr.mxu0 %v12181_v45 }
 0x3e8   :  { %10303 = vmatmul.mubr.msk.f32.gmra.mrb[26].mxu0 %vm65_vm11, %v4362_v40 }
 0x3e9   :  { %10305 = vmatprep.mubr.msk.f32.mxu0 %vm65_vm11, %v4363_v24 }
 0x3ec   :  { %10306 = vmatmul.mubr.msk.f32.gmra.mrb[28].mxu0 %vm65_vm11, %v4364_v53 }
 0x3ed   :  { %10308 = vmatprep.mubr.msk.f32.mxu0 %vm65_vm11, %v4365_v41 }
 0x3f0   :  { %10309 = vmatmul.mubr.msk.f32.gmra.mrb[30].mxu0 %vm65_vm11, %v4366_v6 }
 0x487   :  { %v10259_v46 = vpop.f32.mrb[16].mxu0 }
 0x488   :  { %v3882_v49 = vrot.slane %v10259_v46, 1  ;;  %v3913_v50 = vrot.slane %v10259_v46, 2  ;;  %v3944_v51 = vrot.slane %v10259_v46, 3  ;;  %v3975_v47 = vrot.slane %v10259_v46, 4  ;;  %v3834_v26 = vpop.f32.mrb[17].mxu0 }
 0x489   :  { %v4006_v11 = vrot.slane %v10259_v46, 5  ;;  %v4037_v52 = vrot.slane %v10259_v46, 6  ;;  %v3881_v54 = vrot.slane %v3834_v26, 1  ;;  %v3912_v27 = vrot.slane %v3834_v26, 2 }
 0x48a   :  { %v3943_v55 = vrot.slane %v3834_v26, 3  ;;  %v3974_v56 = vrot.slane %v3834_v26, 4  ;;  %v4005_v12 = vrot.slane %v3834_v26, 5  ;;  %v4036_v57 = vrot.slane %v3834_v26, 6 }
 0x48b   :  { %v3883_v58 = vsel %vm1964_vm13, %v3881_v54, %v3882_v49  ;;  %v3914_v21 = vsel %vm1996_vm14, %v3912_v27, %v3913_v50  ;;  %v12188_v60 = vpop.f32.mrb[18].mxu0 }
 0x48c   :  { %v3904_v1 = vmax.f32 %v3834_v26, %v3883_v58  ;;  %v3945_v28 = vsel %vm2028_vm15, %v3943_v55, %v3944_v51  ;;  %v3976_v61 = vsel %vm2060_vm1, %v3974_v56, %v3975_v47  ;;  %v4007_v4 = vsel %vm325_vm2, %v4005_v12, %v4006_v11  ;;  %v3844_v5 = vpop.f32.mrb[19].mxu0 }
 0x48d   :  { %v4038_v10 = vsel %vm2123_vm12, %v4036_v57, %v4037_v52  ;;  %v3886_v33 = vrot.slane %v12188_v60, 1  ;;  %v3917_v7 = vrot.slane %v12188_v60, 2  ;;  %v3948_v8 = vrot.slane %v12188_v60, 3 }
 0x48e   :  { %v3935_v59 = vmax.f32 %v3904_v1, %v3914_v21  ;;  %v3979_v43 = vrot.slane %v12188_v60, 4  ;;  %v4010_v9 = vrot.slane %v12188_v60, 5  ;;  %v4041_v3 = vrot.slane %v12188_v60, 6 }
 0x48f   :  { %v3884_v62 = vrot.slane %v3844_v5, 1  ;;  %v3915_v48 = vrot.slane %v3844_v5, 2  ;;  %v3946_v63 = vrot.slane %v3844_v5, 3  ;;  %v3977_v2 = vrot.slane %v3844_v5, 4  ;;  %v12200_v29 = vpop.f32.mrb[20].mxu0 }
 0x490   :  { %v3966_v32 = vmax.f32 %v3935_v59, %v3945_v28  ;;  %v4008_v37 = vrot.slane %v3844_v5, 5  ;;  %v4039_v18 = vrot.slane %v3844_v5, 6  ;;  %v3890_v39 = vrot.slane %v12200_v29, 1  ;;  %v12203_v13 = vpop.f32.mrb[21].mxu0 }
 0x491   :  { %v3885_v15 = vsel %vm1964_vm13, %v3882_v49, %v3884_v62  ;;  %v3887_v17 = vsel %vm1964_vm13, %v3884_v62, %v3886_v33  ;;  %v3916_v20 = vsel %vm1996_vm14, %v3913_v50, %v3915_v48  ;;  %v3918_v22 = vsel %vm1996_vm14, %v3915_v48, %v3917_v7 }
 0x492   :  { %v3997_v34 = vmax.f32 %v3966_v32, %v3976_v61  ;;  %v3905_v30 = vmax.f32 %v10259_v46, %v3885_v15  ;;  %v3906_v14 = vmax.f32 %v3844_v5, %v3887_v17  ;;  %v3947_v35 = vsel %vm2028_vm15, %v3944_v51, %v3946_v63 }
 0x493   :  { %v3949_v31 = vsel %vm2028_vm15, %v3946_v63, %v3948_v8  ;;  %v3978_v36 = vsel %vm2060_vm1, %v3975_v47, %v3977_v2  ;;  %v3980_v38 = vsel %vm2060_vm1, %v3977_v2, %v3979_v43  ;;  %v4009_v40 = vsel %vm325_vm2, %v4006_v11, %v4008_v37  ;;  %v12214_v24 = vpop.f32.mrb[22].mxu0 }
 0x494   :  { %v4028_v53 = vmax.f32 %v3997_v34, %v4007_v4  ;;  %v3936_v41 = vmax.f32 %v3905_v30, %v3916_v20  ;;  %v3937_v6 = vmax.f32 %v3906_v14, %v3918_v22  ;;  %v4011_v42 = vsel %vm325_vm2, %v4008_v37, %v4010_v9  ;;  %v12219_v46 = vpop.f32.mrb[23].mxu0 }
 0x495   :  { %v4040_v49 = vsel %vm2123_vm12, %v4037_v52, %v4039_v18  ;;  %v4042_v50 = vsel %vm2123_vm12, %v4039_v18, %v4041_v3  ;;  %v3921_v51 = vrot.slane %v12200_v29, 2  ;;  %v3952_v47 = vrot.slane %v12200_v29, 3 }
 0x496   :  { %v4059_v26 = vmax.f32 %v4028_v53, %v4038_v10  ;;  %v3967_v11 = vmax.f32 %v3936_v41, %v3947_v35  ;;  %v3968_v54 = vmax.f32 %v3937_v6, %v3949_v31  ;;  %v3983_v27 = vrot.slane %v12200_v29, 4 }
 0x497   :  { %v4014_v55 = vrot.slane %v12200_v29, 5  ;;  %v4045_v56 = vrot.slane %v12200_v29, 6  ;;  %v3888_v12 = vrot.slane %v12203_v13, 1  ;;  %v3919_v52 = vrot.slane %v12203_v13, 2 }
 0x498   :  { %4068 = vst.msk [vmem:[#allocation3 + $0x41] sm:$0xff] %vm65_vm11, %v4059_v26  ;;  %v3998_v57 = vmax.f32 %v3967_v11, %v3978_v36  ;;  %v3999_v58 = vmax.f32 %v3968_v54, %v3980_v38  ;;  %v3950_v21 = vrot.slane %v12203_v13, 3  ;;  %v3981_v1 = vrot.slane %v12203_v13, 4 }
 0x499   :  { %v3889_v28 = vsel %vm1964_vm13, %v3886_v33, %v3888_v12  ;;  %v3891_v61 = vsel %vm1964_vm13, %v3888_v12, %v3890_v39  ;;  %v3920_v4 = vsel %vm1996_vm14, %v3917_v7, %v3919_v52  ;;  %v3922_v5 = vsel %vm1996_vm14, %v3919_v52, %v3921_v51 }
 0x49a   :  { %v4029_v10 = vmax.f32 %v3998_v57, %v4009_v40  ;;  %v4030_v59 = vmax.f32 %v3999_v58, %v4011_v42  ;;  %v3907_v62 = vmax.f32 %v12188_v60, %v3889_v28  ;;  %v3908_v48 = vmax.f32 %v12203_v13, %v3891_v61 }
 0x49b   :  { %v3951_v63 = vsel %vm2028_vm15, %v3948_v8, %v3950_v21  ;;  %v3953_v33 = vsel %vm2028_vm15, %v3950_v21, %v3952_v47  ;;  %v3982_v2 = vsel %vm2060_vm1, %v3979_v43, %v3981_v1  ;;  %v3984_v7 = vsel %vm2060_vm1, %v3981_v1, %v3983_v27 }
 0x49c   :  { %v4060_v32 = vmax.f32 %v4029_v10, %v4040_v49  ;;  %v4061_v37 = vmax.f32 %v4030_v59, %v4042_v50  ;;  %v3938_v18 = vmax.f32 %v3907_v62, %v3920_v4  ;;  %v3939_v15 = vmax.f32 %v3908_v48, %v3922_v5  ;;  %v12294_v10 = vld [vmem:[#allocation9 + $0x21] sm:$0xff] }
 0x49d   :  { %v4012_v17 = vrot.slane %v12203_v13, 5  ;;  %v4043_v20 = vrot.slane %v12203_v13, 6  ;;  %v3894_v8 = vrot.slane %v12214_v24, 1  ;;  %v3925_v22 = vrot.slane %v12214_v24, 2 }
 0x49e   :  { %4069 = vst.msk [vmem:[#allocation3 + $0x49] sm:$0xff] %vm65_vm11, %v4060_v32  ;;  %4070 = vst.msk [vmem:[#allocation3 + $0x51] sm:$0xff] %vm65_vm11, %v4061_v37  ;;  %v3969_v43 = vmax.f32 %v3938_v18, %v3951_v63  ;;  %v3970_v34 = vmax.f32 %v3939_v15, %v3953_v33  ;;  %v3956_v30 = vrot.slane %v12214_v24, 3  ;;  %v3987_v14 = vrot.slane %v12214_v24, 4 }
 0x49f   :  { %v4013_v35 = vsel %vm325_vm2, %v4010_v9, %v4012_v17  ;;  %v4015_v13 = vsel %vm325_vm2, %v4012_v17, %v4014_v55  ;;  %v4044_v31 = vsel %vm2123_vm12, %v4041_v3, %v4043_v20  ;;  %v4046_v36 = vsel %vm2123_vm12, %v4043_v20, %v4045_v56  ;;  %v4546_v38 = vld [vmem:[#allocation3 + $0x41] sm:$0xff] }
 0x4a0   :  { %v4000_v40 = vmax.f32 %v3969_v43, %v3982_v2  ;;  %v4001_v53 = vmax.f32 %v3970_v34, %v3984_v7  ;;  %v3911_v41 = vmax.f32 %v12214_v24, %v3894_v8  ;;  %v4018_v6 = vrot.slane %v12214_v24, 5  ;;  %10313 = vmatprep.mubr.msk.f32.mxu0 %vm65_vm11, %v4546_v38  ;;  %v4827_v34 = vld [vmem:[#allocation9 + $0x1d] sm:$0xf] }
 0x4a1   :  { %v4049_v9 = vrot.slane %v12214_v24, 6  ;;  %v3892_v42 = vrot.slane %v12219_v46, 1  ;;  %v3923_v60 = vrot.slane %v12219_v46, 2  ;;  %v3954_v3 = vrot.slane %v12219_v46, 3 }
 0x4a2   :  { %v4031_v49 = vmax.f32 %v4000_v40, %v4013_v35  ;;  %v4032_v50 = vmax.f32 %v4001_v53, %v4015_v13  ;;  %v3942_v26 = vmax.f32 %v3911_v41, %v3925_v22  ;;  %v3985_v11 = vrot.slane %v12219_v46, 4 }
 0x4a3   :  { %v3893_v54 = vsel %vm1964_vm13, %v3890_v39, %v3892_v42  ;;  %v3895_v12 = vsel %vm1964_vm13, %v3892_v42, %v3894_v8  ;;  %v3924_v52 = vsel %vm1996_vm14, %v3921_v51, %v3923_v60  ;;  %v3926_v24 = vsel %vm1996_vm14, %v3923_v60, %v3925_v22 }
 0x4a4   :  { %v4062_v57 = vmax.f32 %v4031_v49, %v4044_v31  ;;  %v4063_v58 = vmax.f32 %v4032_v50, %v4046_v36  ;;  %v3973_v21 = vmax.f32 %v3942_v26, %v3956_v30  ;;  %v3909_v1 = vmax.f32 %v12200_v29, %v3893_v54  ;;  %v12324_v29 = vld [vmem:[%s12786_s2 + $0x1] ss:$0 sm:$0xff] }
 0x4a5   :  { %v3910_v28 = vmax.f32 %v12219_v46, %v3895_v12  ;;  %v3955_v61 = vsel %vm2028_vm15, %v3952_v47, %v3954_v3  ;;  %v3957_v4 = vsel %vm2028_vm15, %v3954_v3, %v3956_v30  ;;  %v3986_v39 = vsel %vm2060_vm1, %v3983_v27, %v3985_v11  ;;  %v4547_v51 = vld [vmem:[#allocation3 + $0x49] sm:$0xff]  ;;  %v4548_v5 = vld [vmem:[#allocation3 + $0x51] sm:$0xff] }
 0x4a6   :  { %4071 = vst.msk [vmem:[#allocation3 + $0x59] sm:$0xff] %vm65_vm11, %v4062_v57  ;;  %4072 = vst.msk [vmem:[#allocation3 + $0x61] sm:$0xff] %vm65_vm11, %v4063_v58  ;;  %v4004_v59 = vmax.f32 %v3973_v21, %v3987_v14  ;;  %v3940_v62 = vmax.f32 %v3909_v1, %v3924_v52  ;;  %v3988_v48 = vsel %vm2060_vm1, %v3985_v11, %v3987_v14  ;;  %v4016_v47 = vrot.slane %v12219_v46, 5  ;;  %v4538_v49 = vld [vmem:[#allocation3 + $0x48] sm:$0xff]  ;;  %v4539_v11 = vld [vmem:[#allocation3 + $0x50] sm:$0xff] }
 0x4a7   :  { %10314 = vmatmul.mubr.msk.f32.vlgmr.msra.gmra.mrb[32].mxu0 %vm65_vm11, %v4547_v51  ;;  %10316 = vmatprep.mubr.msk.f32.mxu1 %vm65_vm11, %v4548_v5  ;;  %v3941_v63 = vmax.f32 %v3910_v28, %v3926_v24  ;;  %v4047_v27 = vrot.slane %v12219_v46, 6  ;;  %v12350_v5 = vld [vmem:[#allocation9 + $0x31] sm:$0xff]  ;;  %vm6399_vm14 = vcmask 126976  }
 0x4a8   :  { %10354 = vmatpush3.msra.mxu0 %v12181_v45  ;;  %v4035_v33 = vmax.f32 %v4004_v59, %v4018_v6  ;;  %v3971_v2 = vmax.f32 %v3940_v62, %v3955_v61  ;;  %v4017_v7 = vsel %vm325_vm2, %v4014_v55, %v4016_v47  ;;  %v4019_v32 = vsel %vm325_vm2, %v4016_v47, %v4018_v6  ;;  %v4537_v6 = vld [vmem:[#allocation3 + $0x40] sm:$0xff] }
 0x4a9   :  { %10367 = vmatprep.subr.mxu0 %v12294_v10  ;;  %v3972_v37 = vmax.f32 %v3941_v63, %v3957_v4  ;;  %v4048_v18 = vsel %vm2123_vm12, %v4045_v56, %v4047_v27  ;;  %v4050_v15 = vsel %vm2123_vm12, %v4047_v27, %v4049_v9  ;;  %vm4535_vm2 = vcmask 58368  }
 0x4aa   :  { %v4066_v46 = vmax.f32 %v4035_v33, %v4049_v9  ;;  %v4002_v17 = vmax.f32 %v3971_v2, %v3986_v39  ;;  %v4819_v2 = vld [vmem:[#allocation3 + $0x42] sm:$0xff] }
 0x4ab   :  { %v4003_v20 = vmax.f32 %v3972_v37, %v3988_v48  ;;  %v4820_v37 = vld [vmem:[#allocation3 + $0x4a] sm:$0xff] }
 0x4ac   :  { %4075 = vst.msk [vmem:[#allocation3 + $0x79] sm:$0x3] %vm2162_vm0, %v4066_v46  ;;  %v4033_v8 = vmax.f32 %v4002_v17, %v4017_v7  ;;  %vm127_vm0 = vcmask 261120  }
 0x4ad   :  { %v4034_v22 = vmax.f32 %v4003_v20, %v4019_v32  ;;  %v4549_v43 = vld [vmem:[#allocation3 + $0x59] sm:$0xff]  ;;  %v4550_v55 = vld [vmem:[#allocation3 + $0x61] sm:$0xff]  ;;  %129 = vst.msk [vmem:[#allocation8 + $0x8] sm:$0xff] %vm127_vm0, %v11324_v0  ;;  %128 = vst.msk [vmem:[#allocation8] sm:$0xff] %vm127_vm0, %v11324_v0 }
 0x4ae   :  { %v4064_v30 = vmax.f32 %v4033_v8, %v4048_v18  ;;  %10317 = vmatmul.mubr.msk.f32.vlgmr.msra.gmra.mrb[24].mxu1 %vm65_vm11, %v4549_v43  ;;  %v4540_v57 = vld [vmem:[#allocation3 + $0x58] sm:$0xff]  ;;  %v4541_v1 = vld [vmem:[#allocation3 + $0x60] sm:$0xff]  ;;  %132 = vst.msk [vmem:[#allocation8 + $0x18] sm:$0xff] %vm127_vm0, %v11324_v0  ;;  %133 = vst.msk [vmem:[#allocation8 + $0x20] sm:$0xff] %vm127_vm0, %v11324_v0 }
 0x4af   :  { %v4065_v14 = vmax.f32 %v4034_v22, %v4050_v15  ;;  %10319 = vmatprep.mubr.msk.f32.mxu1 %vm65_vm11, %v4550_v55  ;;  %10326 = vmatpush3.msk.msra.mxu1 %vm2060_vm1, %v12137_v44  ;;  %v4821_v18 = vld [vmem:[#allocation3 + $0x52] sm:$0xff]  ;;  %v4822_v20 = vld [vmem:[#allocation3 + $0x5a] sm:$0xff] }
 0x4b0   :  { %4073 = vst.msk [vmem:[#allocation3 + $0x69] sm:$0xff] %vm65_vm11, %v4064_v30  ;;  %10339 = vmatprep.subr.msk.mxu1 %vm2060_vm1, %v4827_v34 }
 0x4b1   :  { %4074 = vst.msk [vmem:[#allocation3 + $0x71] sm:$0xff] %vm65_vm11, %v4065_v14 }
 0x4b3   :  { %v4553_v40 = vld [vmem:[#allocation3 + $0x79] sm:$0x3] }
 0x4b7   :  { %v4551_v56 = vld [vmem:[#allocation3 + $0x69] sm:$0xff]  ;;  %v10301_v35 = vpop.f32.mrb[24].mxu0 }
 0x4b8   :  { %10320 = vmatmul.mubr.msk.f32.gmra.mrb[26].mxu1 %vm65_vm11, %v4551_v56  ;;  %v4552_v13 = vld [vmem:[#allocation3 + $0x71] sm:$0xff]  ;;  %v4513_v31 = vadd.f32 %v10301_v35, %v12324_v29  ;;  %v4461_v36 = vpop.f32.mrb[25].mxu0  ;;  %v4542_v62 = vld [vmem:[#allocation3 + $0x68] sm:$0xff]  ;;  %v4826_v56 = vld [vmem:[#allocation3 + $0x7a] sm:$0x3] }
 0x4b9   :  { %10322 = vmatprep.mubr.msk.f32.mxu1 %vm65_vm11, %v4552_v13  ;;  %v4512_v44 = vadd.f32 %v12324_v29, %v4461_v36  ;;  %v4543_v47 = vld [vmem:[#allocation3 + $0x70] sm:$0xff]  ;;  %v4544_v33 = vld [vmem:[#allocation3 + $0x78] sm:$0x3]  ;;  %v4823_v8 = vld [vmem:[#allocation3 + $0x62] sm:$0xff] }
 0x4ba   :  { %v4521_v38 = vmax.f32 %v4513_v31, 0.0  ;;  %v4824_v55 = vld [vmem:[#allocation3 + $0x6a] sm:$0xff] }
 0x4bb   :  { %v4520_v53 = vmax.f32 %v4512_v44, 0.0  ;;  %v10304_v41 = vpop.f32.mrb[26].mxu0 }
 0x4bc   :  { %10323 = vmatmul.mubr.msk.f32.gmra.mrb[28].mxu1 %vm65_vm11, %v4553_v40  ;;  %4529 = vst.msk [vmem:[#allocation4 + $0x9] sm:$0xff] %vm83_vm7, %v4521_v38  ;;  %v4515_v9 = vadd.f32 %v10304_v41, %v12324_v29  ;;  %v4471_v42 = vpop.f32.mrb[27].mxu0 }
 0x4bd   :  { %10327 = vmatprep.mubr.msk.f32.mxu1 %vm65_vm11, %v4537_v6  ;;  %4528 = vst.msk [vmem:[#allocation4 + $0x1] sm:$0xff] %vm83_vm7, %v4520_v53  ;;  %v4514_v60 = vadd.f32 %v12324_v29, %v4471_v42  ;;  %v12394_v42 = vsel %vm11620_vm3, 1.0, %v11324_v0  ;;  %vm11326_vm3 = vmmov 1  }
 0x4be   :  { %v4523_v3 = vmax.f32 %v4515_v9, 0.0  ;;  %vm12431_vm10 = vmpackc.low %vm2123_vm12, %vm11326_vm3 }
 0x4bf   :  { %v4522_v50 = vmax.f32 %v4514_v60, 0.0  ;;  %v10307_v26 = vpop.f32.mrb[28].mxu0  ;;  %vm12638_vm12 = vmpackc.low %vm2028_vm15, %vm11326_vm3  ;;  %vm122_vm15 = vcmask 122880  }
 0x4c0   :  { %10328 = vmatmul.mubr.msk.f32.vlgmr.msra.gmra.mrb[30].mxu1 %vm65_vm11, %v4538_v49  ;;  %4531 = vst.msk [vmem:[#allocation4 + $0x19] sm:$0xff] %vm83_vm7, %v4523_v3  ;;  %v4517_v54 = vadd.f32 %v10307_v26, %v12324_v29  ;;  %v4481_v12 = vpop.f32.mrb[29].mxu0 }
 0x4c1   :  { %10330 = vmatprep.mubr.msk.f32.mxu1 %vm65_vm11, %v4539_v11  ;;  %4530 = vst.msk [vmem:[#allocation4 + $0x11] sm:$0xff] %vm83_vm7, %v4522_v50  ;;  %v4516_v52 = vadd.f32 %v12324_v29, %v4481_v12  ;;  %10340 = vmatpush3.msk.msra.mxu1 %vm2060_vm1, %v4827_v34  ;;  %v4825_v34 = vld [vmem:[#allocation3 + $0x72] sm:$0xff]  ;;  %vm7050_vm1 = vcmask 236544  }
 0x4c2   :  { %v4525_v24 = vmax.f32 %v4517_v54, 0.0  ;;  %123 = vst.msk [vmem:[#allocation7 + $0x10] sm:$0x1] %vm122_vm15, %v11324_v0  ;;  %126 = vst.msk [vmem:[#allocation7 + $0x28] sm:$0x1] %vm122_vm15, %v11324_v0 }
 0x4c3   :  { %v4524_v58 = vmax.f32 %v4516_v52, 0.0  ;;  %v10310_v21 = vpop.f32.mrb[30].mxu0  ;;  %v5004_v51 = vld [vmem:[#allocation4 + $0x9] sm:$0xff] }
 0x4c4   :  { %10331 = vmatmul.mubr.msk.f32.gmra.mrb[24].mxu1 %vm65_vm11, %v4540_v57  ;;  %4533 = vst.msk [vmem:[#allocation4 + $0x29] sm:$0xff] %vm83_vm7, %v4525_v24  ;;  %v4519_v28 = vadd.f32 %v10310_v21, %v12324_v29  ;;  %v4491_v61 = vpop.f32.mrb[31].mxu0  ;;  %v5003_v4 = vld [vmem:[#allocation4 + $0x1] sm:$0xff] }
 0x4c5   :  { %10333 = vmatprep.mubr.msk.f32.mxu1 %vm65_vm11, %v4541_v1  ;;  %4532 = vst.msk [vmem:[#allocation4 + $0x21] sm:$0xff] %vm83_vm7, %v4524_v58  ;;  %v4518_v39 = vadd.f32 %v12324_v29, %v4491_v61  ;;  %10355 = vmatprep.mubr.msk.f32.mxu0 %vm83_vm7, %v5003_v4  ;;  %v4994_v17 = vld [vmem:[#allocation4] sm:$0xff]  ;;  %v4995_v22 = vld [vmem:[#allocation4 + $0x8] sm:$0xff] }
 0x4c6   :  { %v4527_v59 = vmax.f32 %v4519_v28, 0.0  ;;  %10356 = vmatmul.mubr.msk.f32.vlgmr.msra.gmra.mrb[34].mxu0 %vm83_vm7, %v5004_v51  ;;  %v5270_v36 = vld [vmem:[#allocation4 + $0x2] sm:$0xff] }
 0x4c7   :  { %v4526_v48 = vmax.f32 %v4518_v39, 0.0  ;;  %10368 = vmatpush3.msra.mxu0 %v12294_v10  ;;  %v5006_v27 = vld [vmem:[#allocation4 + $0x19] sm:$0xff] }
 0x4c8   :  { %10334 = vmatmul.mubr.msk.f32.gmra.mrb[26].mxu1 %vm65_vm11, %v4542_v62  ;;  %4536 = vst.msk [vmem:[#allocation4 + $0x39] sm:$0x3] %vm4535_vm2, %v4527_v59  ;;  %v5005_v63 = vld [vmem:[#allocation4 + $0x11] sm:$0xff]  ;;  %10381 = vmatprep.subr.mxu0 %v12350_v5 }
 0x4c9   :  { %10336 = vmatprep.mubr.msk.f32.mxu1 %vm65_vm11, %v4543_v47  ;;  %4534 = vst.msk [vmem:[#allocation4 + $0x31] sm:$0xff] %vm83_vm7, %v4526_v48  ;;  %10358 = vmatprep.mubr.msk.f32.mxu0 %vm83_vm7, %v5005_v63  ;;  %v4996_v43 = vld [vmem:[#allocation4 + $0x10] sm:$0xff]  ;;  %v4997_v30 = vld [vmem:[#allocation4 + $0x18] sm:$0xff] }
 0x4ca   :  { %10359 = vmatmul.mubr.msk.f32.gmra.mrb[36].mxu0 %vm83_vm7, %v5006_v27  ;;  %v5271_v44 = vld [vmem:[#allocation4 + $0xa] sm:$0xff]  ;;  %v5272_v38 = vld [vmem:[#allocation4 + $0x12] sm:$0xff] }
 0x4cb   :  { %v5008_v32 = vld [vmem:[#allocation4 + $0x29] sm:$0xff] }
 0x4cc   :  { %10337 = vmatmul.mubr.msk.f32.gmra.mrb[28].mxu1 %vm65_vm11, %v4544_v33  ;;  %v5007_v7 = vld [vmem:[#allocation4 + $0x21] sm:$0xff] }
 0x4cd   :  { %10341 = vmatprep.mubr.msk.f32.mxu1 %vm65_vm11, %v4819_v2  ;;  %10361 = vmatprep.mubr.msk.f32.mxu0 %vm83_vm7, %v5007_v7  ;;  %v4998_v14 = vld [vmem:[#allocation4 + $0x20] sm:$0xff]  ;;  %v4999_v35 = vld [vmem:[#allocation4 + $0x28] sm:$0xff]  ;;  %v12419_v7 = vld [vmem:[%s12786_s2 + $0x2] ss:$0 sm:$0xff] }
 0x4ce   :  { %10362 = vmatmul.mubr.msk.f32.gmra.mrb[38].mxu0 %vm83_vm7, %v5008_v32  ;;  %v5273_v40 = vld [vmem:[#allocation4 + $0x1a] sm:$0xff]  ;;  %v5274_v53 = vld [vmem:[#allocation4 + $0x22] sm:$0xff] }
 0x4cf   :  { %v5010_v46 = vld [vmem:[#allocation4 + $0x39] sm:$0x3] }
 0x4d0   :  { %10342 = vmatmul.mubr.msk.f32.vlgmr.msra.gmra.mrb[30].mxu1 %vm65_vm11, %v4820_v37  ;;  %v5009_v15 = vld [vmem:[#allocation4 + $0x31] sm:$0xff]  ;;  %v5277_v9 = vld [vmem:[#allocation4 + $0x3a] sm:$0x3] }
 0x4d1   :  { %10344 = vmatprep.mubr.msk.f32.mxu1 %vm65_vm11, %v4821_v18  ;;  %10364 = vmatprep.mubr.msk.f32.mxu0 %vm83_vm7, %v5009_v15  ;;  %v5000_v13 = vld [vmem:[#allocation4 + $0x30] sm:$0xff]  ;;  %v5001_v31 = vld [vmem:[#allocation4 + $0x38] sm:$0x3] }
 0x4d2   :  { %10365 = vmatmul.mubr.msk.f32.gmra.mrb[40].mxu0 %vm83_vm7, %v5010_v46  ;;  %v5275_v41 = vld [vmem:[#allocation4 + $0x2a] sm:$0xff]  ;;  %v5276_v6 = vld [vmem:[#allocation4 + $0x32] sm:$0xff] }
 0x4d3   :  { %10369 = vmatprep.mubr.msk.f32.mxu0 %vm83_vm7, %v4994_v17 }
 0x4d4   :  { %10345 = vmatmul.mubr.msk.f32.gmra.mrb[24].mxu1 %vm65_vm11, %v4822_v20 }
 0x4d5   :  { %10347 = vmatprep.mubr.msk.f32.mxu1 %vm65_vm11, %v4823_v8 }
 0x4d6   :  { %10370 = vmatmul.mubr.msk.f32.vlgmr.msra.gmra.mrb[34].mxu0 %vm83_vm7, %v4995_v22 }
 0x4d7   :  { %10372 = vmatprep.mubr.msk.f32.mxu0 %vm83_vm7, %v4996_v43  ;;  %10382 = vmatpush3.msra.mxu0 %v12350_v5 }
 0x4d8   :  { %10348 = vmatmul.mubr.msk.f32.gmra.mrb[26].mxu1 %vm65_vm11, %v4824_v55 }
 0x4d9   :  { %10350 = vmatprep.mubr.msk.f32.mxu1 %vm65_vm11, %v4825_v34 }
 0x4da   :  { %10373 = vmatmul.mubr.msk.f32.gmra.mrb[36].mxu0 %vm83_vm7, %v4997_v30 }
 0x4db   :  { %10375 = vmatprep.mubr.msk.f32.mxu0 %vm83_vm7, %v4998_v14 }
 0x4dc   :  { %10351 = vmatmul.mubr.msk.f32.gmra.mrb[28].mxu1 %vm65_vm11, %v4826_v56  ;;  %vm114_vm11 = vcmask 129024  }
 0x4dd   :  { %10411 = vmatprep.mubr.msk.f32.mxu1 %vm5436_vm9, %v12394_v42  ;;  %115 = vst.msk [vmem:[#allocation6 + $0x18] sm:$0x7f] %vm114_vm11, %v11324_v0  ;;  %119 = vst.msk [vmem:[#allocation6 + $0x38] sm:$0x7f] %vm114_vm11, %v11324_v0 }
 0x4de   :  { %10376 = vmatmul.mubr.msk.f32.gmra.mrb[38].mxu0 %vm83_vm7, %v4999_v35 }
 0x4df   :  { %10378 = vmatprep.mubr.msk.f32.mxu0 %vm83_vm7, %v5000_v13 }
 0x4e2   :  { %10379 = vmatmul.mubr.msk.f32.gmra.mrb[40].mxu0 %vm83_vm7, %v5001_v31 }
 0x4e3   :  { %10383 = vmatprep.mubr.msk.f32.mxu0 %vm83_vm7, %v5270_v36 }
 0x4e6   :  { %10384 = vmatmul.mubr.msk.f32.vlgmr.msra.gmra.mrb[34].mxu0 %vm83_vm7, %v5271_v44 }
 0x4e7   :  { %10386 = vmatprep.mubr.msk.f32.mxu0 %vm83_vm7, %v5272_v38 }
 0x4ea   :  { %10387 = vmatmul.mubr.msk.f32.gmra.mrb[36].mxu0 %vm83_vm7, %v5273_v40 }
 0x4eb   :  { %10389 = vmatprep.mubr.msk.f32.mxu0 %vm83_vm7, %v5274_v53 }
 0x4ee   :  { %10390 = vmatmul.mubr.msk.f32.gmra.mrb[38].mxu0 %vm83_vm7, %v5275_v41 }
 0x4ef   :  { %10392 = vmatprep.mubr.msk.f32.mxu0 %vm83_vm7, %v5276_v6 }
 0x4f2   :  { %10393 = vmatmul.mubr.msk.f32.gmra.mrb[40].mxu0 %vm83_vm7, %v5277_v9 }
 0x4f3   :  { %10475 = vmatprep.mubr.msk.f32.mxu0 %vm5436_vm9, %v12394_v42 }
 0x57a   :  { %v10315_v60 = vpop.f32.mrb[32].mxu0 }
 0x57b   :  { %v4648_v3 = vpop.f32.mrb[33].mxu0 }
 0x5a3   :  { %v10343_v49 = vpop.f32.mrb[30].mxu1 }
 0x5a4   :  { %v10959_v50 = vadd.f32 %v10343_v49, %v10315_v60  ;;  %v4921_v26 = vpop.f32.mrb[31].mxu1  ;;  %v12440_v49 = vsel %vm11627_vm4, 1.0, %v11324_v0  ;;  %vm104_vm4 = vcmask 63488  }
 0x5a5   :  { %v10960_v11 = vadd.f32 %v4921_v26, %v4648_v3  ;;  %105 = vst.msk [vmem:[#allocation5 + $0x18] sm:$0x7f] %vm104_vm4, %v11324_v0  ;;  %109 = vst.msk [vmem:[#allocation5 + $0x38] sm:$0x7f] %vm104_vm4, %v11324_v0 }
 0x5a6   :  { %v4969_v54 = vadd.f32 %v10959_v50, %v12324_v29  ;;  %v12448_v50 = vsel %vm11634_vm5, 1.0, %v11324_v0  ;;  %vm5540_vm5 = vcmask 61440  }
 0x5a7   :  { %v4968_v12 = vadd.f32 %v10960_v11, %v12324_v29  ;;  %v10346_v16 = vpop.f32.mrb[24].mxu1 }
 0x5a8   :  { %v4977_v52 = vmax.f32 %v4969_v54, 0.0  ;;  %v4971_v24 = vadd.f32 %v10346_v16, %v12324_v29  ;;  %v4931_v57 = vpop.f32.mrb[25].mxu1 }
 0x5a9   :  { %v4976_v58 = vmax.f32 %v4968_v12, 0.0  ;;  %v4970_v21 = vadd.f32 %v12324_v29, %v4931_v57 }
 0x5aa   :  { %4986 = vst.msk [vmem:[#allocation4 + $0x49] sm:$0xff] %vm83_vm7, %v4977_v52  ;;  %v4979_v1 = vmax.f32 %v4971_v24, 0.0 }
 0x5ab   :  { %4985 = vst.msk [vmem:[#allocation4 + $0x41] sm:$0xff] %vm83_vm7, %v4976_v58  ;;  %v4978_v28 = vmax.f32 %v4970_v21, 0.0  ;;  %v10349_v61 = vpop.f32.mrb[26].mxu1 }
 0x5ac   :  { %4988 = vst.msk [vmem:[#allocation4 + $0x59] sm:$0xff] %vm83_vm7, %v4979_v1  ;;  %v4973_v4 = vadd.f32 %v10349_v61, %v12324_v29  ;;  %v4941_v39 = vpop.f32.mrb[27].mxu1 }
 0x5ad   :  { %4987 = vst.msk [vmem:[#allocation4 + $0x51] sm:$0xff] %vm83_vm7, %v4978_v28  ;;  %v4972_v51 = vadd.f32 %v12324_v29, %v4941_v39 }
 0x5ae   :  { %v4981_v59 = vmax.f32 %v4973_v4, 0.0 }
 0x5af   :  { %v4980_v62 = vmax.f32 %v4972_v51, 0.0  ;;  %v10352_v48 = vpop.f32.mrb[28].mxu1 }
 0x5b0   :  { %4990 = vst.msk [vmem:[#allocation4 + $0x69] sm:$0xff] %vm83_vm7, %v4981_v59  ;;  %v4975_v47 = vadd.f32 %v10352_v48, %v12324_v29  ;;  %v4951_v63 = vpop.f32.mrb[29].mxu1 }
 0x5b1   :  { %4989 = vst.msk [vmem:[#allocation4 + $0x61] sm:$0xff] %vm83_vm7, %v4980_v62  ;;  %v4974_v27 = vadd.f32 %v12324_v29, %v4951_v63  ;;  %v5552_v26 = vld [vmem:[#allocation4 + $0x49] sm:$0xff] }
 0x5b2   :  { %v4983_v33 = vmax.f32 %v4975_v47, 0.0  ;;  %v5551_v23 = vld [vmem:[#allocation4 + $0x41] sm:$0xff] }
 0x5b3   :  { %v4982_v2 = vmax.f32 %v4974_v27, 0.0  ;;  %v5554_v25 = vld [vmem:[#allocation4 + $0x59] sm:$0xff]  ;;  %v5818_v61 = vld [vmem:[#allocation4 + $0x42] sm:$0xff] }
 0x5b4   :  { %4992 = vst.msk [vmem:[#allocation4 + $0x79] sm:$0x3] %vm4535_vm2, %v4983_v33  ;;  %v5542_v52 = vld [vmem:[#allocation4 + $0x40] sm:$0xff]  ;;  %v5544_v24 = vld [vmem:[#allocation4 + $0x50] sm:$0xff]  ;;  %v5545_v57 = vld [vmem:[#allocation4 + $0x58] sm:$0xff]  ;;  %vm11328_vm2 = vmmov 0  }
 0x5b5   :  { %4991 = vst.msk [vmem:[#allocation4 + $0x71] sm:$0xff] %vm83_vm7, %v4982_v2  ;;  %v5819_v4 = vld [vmem:[#allocation4 + $0x4a] sm:$0xff] }
 0x5b7   :  { %v5556_v54 = vld [vmem:[#allocation4 + $0x69] sm:$0xff] }
 0x5b8   :  { %v5555_v11 = vld [vmem:[#allocation4 + $0x61] sm:$0xff] }
 0x5b9   :  { %v10385_v32 = vpop.f32.mrb[34].mxu0  ;;  %v5546_v58 = vld [vmem:[#allocation4 + $0x60] sm:$0xff]  ;;  %v5547_v21 = vld [vmem:[#allocation4 + $0x68] sm:$0xff] }
 0x5ba   :  { %v5421_v37 = vadd.f32 %v10385_v32, %v12419_v7  ;;  %v5369_v18 = vpop.f32.mrb[35].mxu0  ;;  %v5821_v39 = vld [vmem:[#allocation4 + $0x5a] sm:$0xff]  ;;  %v5822_v51 = vld [vmem:[#allocation4 + $0x62] sm:$0xff] }
 0x5bb   :  { %v5420_v15 = vadd.f32 %v12419_v7, %v5369_v18  ;;  %v5558_v16 = vld [vmem:[#allocation4 + $0x79] sm:$0x3] }
 0x5bc   :  { %v5429_v46 = vmax.f32 %v5421_v37, 0.0  ;;  %v5557_v12 = vld [vmem:[#allocation4 + $0x71] sm:$0xff]  ;;  %v5825_v48 = vld [vmem:[#allocation4 + $0x7a] sm:$0x3] }
 0x5bd   :  { %v5428_v17 = vmax.f32 %v5420_v15, 0.0  ;;  %v10388_v29 = vpop.f32.mrb[36].mxu0  ;;  %v5548_v1 = vld [vmem:[#allocation4 + $0x70] sm:$0xff]  ;;  %v5549_v28 = vld [vmem:[#allocation4 + $0x78] sm:$0x3] }
 0x5be   :  { %v5423_v20 = vadd.f32 %v10388_v29, %v12419_v7  ;;  %v5379_v8 = vpop.f32.mrb[37].mxu0  ;;  %v5823_v59 = vld [vmem:[#allocation4 + $0x6a] sm:$0xff]  ;;  %v5824_v62 = vld [vmem:[#allocation4 + $0x72] sm:$0xff] }
 0x5bf   :  { %v10797_v22 = vpack.c.bf16 %v5429_v46, %v5428_v17  ;;  %v5422_v43 = vadd.f32 %v12419_v7, %v5379_v8 }
 0x5c0   :  { %v5431_v55 = vmax.f32 %v5423_v20, 0.0 }
 0x5c1   :  { %v5430_v34 = vmax.f32 %v5422_v43, 0.0  ;;  %v10391_v30 = vpop.f32.mrb[38].mxu0  ;;  %10798 = vmatprep.subr.bf16.mxu1 %v10797_v22 }
 0x5c2   :  { %v5425_v14 = vadd.f32 %v10391_v30, %v12419_v7  ;;  %v5389_v56 = vpop.f32.mrb[39].mxu0  ;;  %10800 = vmatpush3.bf16.msra.mxu1 %v10797_v22 }
 0x5c3   :  { %v10801_v35 = vpack.c.bf16 %v5431_v55, %v5430_v34  ;;  %v5424_v13 = vadd.f32 %v12419_v7, %v5389_v56 }
 0x5c4   :  { %v5433_v31 = vmax.f32 %v5425_v14, 0.0 }
 0x5c5   :  { %v5432_v36 = vmax.f32 %v5424_v13, 0.0  ;;  %v10394_v44 = vpop.f32.mrb[40].mxu0  ;;  %10802 = vmatprep.subr.bf16.mxu1 %v10801_v35 }
 0x5c6   :  { %v5427_v38 = vadd.f32 %v10394_v44, %v12419_v7  ;;  %v5399_v40 = vpop.f32.mrb[41].mxu0  ;;  %10804 = vmatpush3.bf16.msra.mxu1 %v10801_v35 }
 0x5c7   :  { %v10805_v53 = vpack.c.bf16 %v5433_v31, %v5432_v36  ;;  %v5426_v41 = vadd.f32 %v12419_v7, %v5399_v40 }
 0x5c8   :  { %v5435_v6 = vmax.f32 %v5427_v38, 0.0 }
 0x5c9   :  { %v5434_v9 = vmax.f32 %v5426_v41, 0.0  ;;  %10806 = vmatprep.subr.bf16.mxu1 %v10805_v53 }
 0x5ca   :  { %10808 = vmatpush3.bf16.msra.mxu1 %v10805_v53 }
 0x5cb   :  { %v10809_v3 = vpack.c.bf16 %v5435_v6, %v5434_v9 }
 0x5cd   :  { %10811 = vmatprep.subr.msk.bf16.mxu1 %vm12431_vm10, %v10809_v3 }
 0x5ce   :  { %10814 = vmatpush3.bf16.msk.msra.mxu1 %vm12431_vm10, %v10809_v3  ;;  %v6083_v3 = vld [vmem:[#allocation9 + $0x41] sm:$0xff] }
 0x5cf   :  { %10417 = vmatprep.subr.mxu1 %v12181_v45 }
 0x5d1   :  { %10412 = vmatmul.mubr.msk.f32.vlgmr.msra.gmra.mrb[32].mxu1 %vm5436_vm9, %v12440_v49 }
 0x5d2   :  { %10418 = vmatpush3.msra.mxu1 %v12181_v45  ;;  %10414 = vmatprep.mubr.msk.f32.mxu1 %vm5436_vm9, %v12448_v50  ;;  %v5553_v45 = vld [vmem:[#allocation4 + $0x51] sm:$0xff] }
 0x5d3   :  { %10431 = vmatprep.subr.mxu1 %v12294_v10 }
 0x5d5   :  { %10415 = vmatmul.mubr.msk.f32.gmra.mrb[34].mxu1 %vm5436_vm9, %v12458_v19 }
 0x5d6   :  { %10419 = vmatprep.mubr.msk.f32.mxu1 %vm83_vm7, %v5551_v23  ;;  %v12508_v23 = vld [vmem:[#allocation9 + $0x39] sm:$0xff] }
 0x5d9   :  { %10420 = vmatmul.mubr.msk.f32.vlgmr.msra.gmra.mrb[36].mxu1 %vm83_vm7, %v5552_v26  ;;  %v12518_v26 = vld [vmem:[#allocation9 + $0x49] sm:$0xff] }
 0x5da   :  { %10422 = vmatprep.mubr.msk.f32.mxu1 %vm83_vm7, %v5553_v45  ;;  %10432 = vmatpush3.msra.mxu1 %v12294_v10  ;;  %v5543_v10 = vld [vmem:[#allocation4 + $0x48] sm:$0xff] }
 0x5db   :  { %10445 = vmatprep.subr.mxu1 %v12350_v5 }
 0x5dd   :  { %10423 = vmatmul.mubr.msk.f32.gmra.mrb[38].mxu1 %vm83_vm7, %v5554_v25 }
 0x5de   :  { %10425 = vmatprep.mubr.msk.f32.mxu1 %vm83_vm7, %v5555_v11 }
 0x5e1   :  { %10426 = vmatmul.mubr.msk.f32.gmra.mrb[40].mxu1 %vm83_vm7, %v5556_v54 }
 0x5e2   :  { %10428 = vmatprep.mubr.msk.f32.mxu1 %vm83_vm7, %v5557_v12 }
 0x5e5   :  { %10429 = vmatmul.mubr.msk.f32.gmra.mrb[42].mxu1 %vm83_vm7, %v5558_v16 }
 0x5e6   :  { %10433 = vmatprep.mubr.msk.f32.mxu1 %vm83_vm7, %v5542_v52 }
 0x5e9   :  { %10434 = vmatmul.mubr.msk.f32.vlgmr.msra.gmra.mrb[36].mxu1 %vm83_vm7, %v5543_v10 }
 0x5ea   :  { %10436 = vmatprep.mubr.msk.f32.mxu1 %vm83_vm7, %v5544_v24  ;;  %10446 = vmatpush3.msra.mxu1 %v12350_v5  ;;  %v5820_v5 = vld [vmem:[#allocation4 + $0x52] sm:$0xff]  ;;  %v6735_v24 = vld [vmem:[#allocation9 + $0x61] sm:$0xff] }
 0x5ed   :  { %10437 = vmatmul.mubr.msk.f32.gmra.mrb[38].mxu1 %vm83_vm7, %v5545_v57  ;;  %v6736_v57 = vld [vmem:[#allocation9 + $0x69] sm:$0xff] }
 0x5ee   :  { %10439 = vmatprep.mubr.msk.f32.mxu1 %vm83_vm7, %v5546_v58  ;;  %v12535_v58 = vpack.c.bf16 %v6736_v57, %v6735_v24  ;;  %v12630_v57 = vld [vmem:[%s12786_s2 + $0x4] ss:$0 sm:$0xff] }
 0x5f0   :  { %10834 = vmatprep.subr.bf16.mxu1 %v12535_v58 }
 0x5f1   :  { %10440 = vmatmul.mubr.msk.f32.gmra.mrb[40].mxu1 %vm83_vm7, %v5547_v21  ;;  %v6729_v21 = vld [vmem:[#allocation9 + $0x51] sm:$0xff] }
 0x5f2   :  { %10442 = vmatprep.mubr.msk.f32.mxu1 %vm83_vm7, %v5548_v1  ;;  %v6730_v1 = vld [vmem:[#allocation9 + $0x59] sm:$0xff] }
 0x5f5   :  { %10443 = vmatmul.mubr.msk.f32.gmra.mrb[42].mxu1 %vm83_vm7, %v5549_v28  ;;  %v12563_v28 = vpack.c.bf16 %v6730_v1, %v6729_v21 }
 0x5f6   :  { %10447 = vmatprep.mubr.msk.f32.mxu1 %vm83_vm7, %v5818_v61 }
 0x5f9   :  { %10448 = vmatmul.mubr.msk.f32.vlgmr.msra.gmra.mrb[36].mxu1 %vm83_vm7, %v5819_v4 }
 0x5fa   :  { %10450 = vmatprep.mubr.msk.f32.mxu1 %vm83_vm7, %v5820_v5  ;;  %10836 = vmatpush3.bf16.msra.mxu1 %v12535_v58 }
 0x5fb   :  { %10838 = vmatprep.subr.bf16.mxu1 %v12563_v28 }
 0x5fd   :  { %10451 = vmatmul.mubr.msk.f32.gmra.mrb[38].mxu1 %vm83_vm7, %v5821_v39 }
 0x5fe   :  { %10453 = vmatprep.mubr.msk.f32.mxu1 %vm83_vm7, %v5822_v51 }
 0x601   :  { %10454 = vmatmul.mubr.msk.f32.gmra.mrb[40].mxu1 %vm83_vm7, %v5823_v59 }
 0x602   :  { %10456 = vmatprep.mubr.msk.f32.mxu1 %vm83_vm7, %v5824_v62 }
 0x605   :  { %10457 = vmatmul.mubr.msk.f32.gmra.mrb[42].mxu1 %vm83_vm7, %v5825_v48 }
 0x6a4   :  { %v10413_v47 = vpop.f32.mrb[32].mxu1 }
 0x6a5   :  { %5538 = vst.msk [vmem:[#allocation5 + $0x9] sm:$0xff] %vm83_vm7, %v10413_v47  ;;  %v5518_v63 = vpop.f32.mrb[33].mxu1 }
 0x6a6   :  { %5537 = vst.msk [vmem:[#allocation5 + $0x1] sm:$0xff] %vm83_vm7, %v5518_v63 }
 0x6a8   :  { %v10416_v27 = vpop.f32.mrb[34].mxu1 }
 0x6a9   :  { %5541 = vst.msk [vmem:[#allocation5 + $0x19] sm:$0x1f] %vm5540_vm5, %v10416_v27  ;;  %v5528_v33 = vpop.f32.mrb[35].mxu1 }
 0x6aa   :  { %5539 = vst.msk [vmem:[#allocation5 + $0x11] sm:$0xff] %vm83_vm7, %v5528_v33 }
 0x6ac   :  { %v6080_v60 = vld [vmem:[#allocation5 + $0x9] sm:$0xff] }
 0x6ad   :  { %v6074_v25 = vld [vmem:[#allocation5] sm:$0xff] }
 0x6ae   :  { %v6278_v12 = vld [vmem:[#allocation5 + $0x2] sm:$0xff] }
 0x6b0   :  { %v6281_v10 = vld [vmem:[#allocation5 + $0x1a] sm:$0x1f] }
 0x6b1   :  { %v6081_v45 = vld [vmem:[#allocation5 + $0x11] sm:$0xff] }
 0x6b2   :  { %v6076_v11 = vld [vmem:[#allocation5 + $0x10] sm:$0xff]  ;;  %v6077_v54 = vld [vmem:[#allocation5 + $0x18] sm:$0x1f] }
 0x6b3   :  { %v6279_v16 = vld [vmem:[#allocation5 + $0xa] sm:$0xff]  ;;  %v6280_v52 = vld [vmem:[#allocation5 + $0x12] sm:$0xff] }
 0x6cc   :  { %v10449_v2 = vpop.f32.mrb[36].mxu1 }
 0x6cd   :  { %v5965_v32 = vadd.f32 %v10449_v2, %v12419_v7  ;;  %v5917_v37 = vpop.f32.mrb[37].mxu1  ;;  %v12583_v2 = vld [vmem:[%s12786_s2 + $0x3] ss:$0 sm:$0xff] }
 0x6ce   :  { %v5964_v18 = vadd.f32 %v12419_v7, %v5917_v37 }
 0x6cf   :  { %v5973_v15 = vmax.f32 %v5965_v32, 0.0 }
 0x6d0   :  { %v5972_v46 = vmax.f32 %v5964_v18, 0.0  ;;  %v10452_v17 = vpop.f32.mrb[38].mxu1 }
 0x6d1   :  { %v5967_v29 = vadd.f32 %v10452_v17, %v12419_v7  ;;  %v5927_v20 = vpop.f32.mrb[39].mxu1 }
 0x6d2   :  { %v10815_v8 = vpack.c.bf16 %v5973_v15, %v5972_v46  ;;  %v5966_v22 = vadd.f32 %v12419_v7, %v5927_v20 }
 0x6d3   :  { %v5975_v43 = vmax.f32 %v5967_v29, 0.0 }
 0x6d4   :  { %v5974_v55 = vmax.f32 %v5966_v22, 0.0  ;;  %v10455_v34 = vpop.f32.mrb[40].mxu1  ;;  %10816 = vmatprep.subr.bf16.mxu0 %v10815_v8 }
 0x6d5   :  { %v5969_v30 = vadd.f32 %v10455_v34, %v12419_v7  ;;  %v5937_v14 = vpop.f32.mrb[41].mxu1  ;;  %10818 = vmatpush3.bf16.msra.mxu0 %v10815_v8 }
 0x6d6   :  { %v10819_v56 = vpack.c.bf16 %v5975_v43, %v5974_v55  ;;  %v5968_v35 = vadd.f32 %v12419_v7, %v5937_v14 }
 0x6d7   :  { %v5977_v13 = vmax.f32 %v5969_v30, 0.0 }
 0x6d8   :  { %v5976_v31 = vmax.f32 %v5968_v35, 0.0  ;;  %v10458_v36 = vpop.f32.mrb[42].mxu1  ;;  %10820 = vmatprep.subr.bf16.mxu0 %v10819_v56  ;;  %v6935_v35 = vld [vmem:[#allocation9 + $0x71] sm:$0xff] }
 0x6d9   :  { %v5971_v44 = vadd.f32 %v10458_v36, %v12419_v7  ;;  %v5947_v38 = vpop.f32.mrb[43].mxu1  ;;  %10822 = vmatpush3.bf16.msra.mxu0 %v10819_v56 }
 0x6da   :  { %v10823_v40 = vpack.c.bf16 %v5977_v13, %v5976_v31  ;;  %v5970_v53 = vadd.f32 %v12419_v7, %v5947_v38  ;;  %v6079_v7 = vld [vmem:[#allocation5 + $0x1] sm:$0xff]  ;;  %v6936_v13 = vld [vmem:[#allocation9 + $0x79] sm:$0xff] }
 0x6db   :  { %v5979_v41 = vmax.f32 %v5971_v44, 0.0  ;;  %v12598_v36 = vpack.c.bf16 %v6936_v13, %v6935_v35 }
 0x6dc   :  { %v5978_v6 = vmax.f32 %v5970_v53, 0.0  ;;  %10824 = vmatprep.subr.bf16.mxu0 %v10823_v40 }
 0x6dd   :  { %10826 = vmatpush3.bf16.msra.mxu0 %v10823_v40 }
 0x6de   :  { %v10827_v9 = vpack.c.bf16 %v5979_v41, %v5978_v6 }
 0x6e0   :  { %10829 = vmatprep.subr.msk.bf16.mxu0 %vm12431_vm10, %v10827_v9 }
 0x6e1   :  { %10832 = vmatpush3.bf16.msk.msra.mxu0 %vm12431_vm10, %v10827_v9  ;;  %vm8342_vm10 = vcmask 121856  }
 0x6e2   :  { %10481 = vmatprep.subr.mxu0 %v6083_v3 }
 0x6e4   :  { %10476 = vmatmul.mubr.msk.f32.vlgmr.msra.gmra.mrb[42].mxu0 %vm5436_vm9, %v12440_v49 }
 0x6e5   :  { %10482 = vmatpush3.msra.mxu0 %v6083_v3  ;;  %10478 = vmatprep.mubr.msk.f32.mxu0 %vm5436_vm9, %v12448_v50  ;;  %v6082_v50 = vld [vmem:[#allocation5 + $0x19] sm:$0x1f] }
 0x6e6   :  { %10489 = vmatprep.subr.mxu0 %v12508_v23 }
 0x6e8   :  { %10479 = vmatmul.mubr.msk.f32.gmra.mrb[44].mxu0 %vm5436_vm9, %v12458_v19  ;;  %v6075_v19 = vld [vmem:[#allocation5 + $0x8] sm:$0xff]  ;;  %vm12742_vm9 = vmpackc.low %vm1964_vm13, %vm11326_vm3 }
 0x6e9   :  { %10483 = vmatprep.mubr.msk.f32.mxu0 %vm83_vm7, %v6079_v7 }
 0x6ec   :  { %10484 = vmatmul.mubr.msk.f32.vlgmr.msra.gmra.mrb[46].mxu0 %vm83_vm7, %v6080_v60 }
 0x6ed   :  { %10486 = vmatprep.mubr.msk.f32.mxu0 %vm83_vm7, %v6081_v45  ;;  %10490 = vmatpush3.msra.mxu0 %v12508_v23 }
 0x6ee   :  { %10497 = vmatprep.subr.mxu0 %v12518_v26 }
 0x6f0   :  { %10487 = vmatmul.mubr.msk.f32.gmra.mrb[48].mxu0 %vm83_vm7, %v6082_v50 }
 0x6f1   :  { %10491 = vmatprep.mubr.msk.f32.mxu0 %vm83_vm7, %v6074_v25 }
 0x6f4   :  { %10492 = vmatmul.mubr.msk.f32.vlgmr.msra.gmra.mrb[46].mxu0 %vm83_vm7, %v6075_v19 }
 0x6f5   :  { %10494 = vmatprep.mubr.msk.f32.mxu0 %vm83_vm7, %v6076_v11  ;;  %10498 = vmatpush3.msra.mxu0 %v12518_v26 }
 0x6f6   :  { %10505 = vmatprep.subr.mxu0 %v6083_v3 }
 0x6f8   :  { %10495 = vmatmul.mubr.msk.f32.gmra.mrb[48].mxu0 %vm83_vm7, %v6077_v54 }
 0x6f9   :  { %10499 = vmatprep.mubr.msk.f32.mxu0 %vm83_vm7, %v6278_v12 }
 0x6fc   :  { %10500 = vmatmul.mubr.msk.f32.vlgmr.msra.gmra.mrb[46].mxu0 %vm83_vm7, %v6279_v16 }
 0x6fd   :  { %10502 = vmatprep.mubr.msk.f32.mxu0 %vm83_vm7, %v6280_v52  ;;  %10506 = vmatpush3.msra.mxu0 %v6083_v3 }
 0x6fe   :  { %10513 = vmatprep.subr.mxu0 %v12508_v23 }
 0x700   :  { %10503 = vmatmul.mubr.msk.f32.gmra.mrb[48].mxu0 %vm83_vm7, %v6281_v10 }
 0x7b7   :  { %v10477_v61 = vpop.f32.mrb[42].mxu0 }
 0x7b8   :  { %6070 = vst.msk [vmem:[#allocation5 + $0x29] sm:$0xff] %vm83_vm7, %v10477_v61  ;;  %v6049_v4 = vpop.f32.mrb[43].mxu0 }
 0x7b9   :  { %6069 = vst.msk [vmem:[#allocation5 + $0x21] sm:$0xff] %vm83_vm7, %v6049_v4 }
 0x7bb   :  { %v10480_v5 = vpop.f32.mrb[44].mxu0 }
 0x7bc   :  { %6072 = vst.msk [vmem:[#allocation5 + $0x39] sm:$0x1f] %vm5540_vm5, %v10480_v5  ;;  %v6059_v39 = vpop.f32.mrb[45].mxu0 }
 0x7bd   :  { %6071 = vst.msk [vmem:[#allocation5 + $0x31] sm:$0xff] %vm83_vm7, %v6059_v39 }
 0x7bf   :  { %v6407_v59 = vld [vmem:[#allocation5 + $0x29] sm:$0xff] }
 0x7c0   :  { %v6406_v51 = vld [vmem:[#allocation5 + $0x21] sm:$0xff] }
 0x7c1   :  { %10507 = vmatprep.mubr.msk.f32.mxu0 %vm83_vm7, %v6406_v51  ;;  %v6401_v47 = vld [vmem:[#allocation5 + $0x20] sm:$0xff]  ;;  %v6402_v63 = vld [vmem:[#allocation5 + $0x28] sm:$0xff] }
 0x7c2   :  { %10508 = vmatmul.mubr.msk.f32.vlgmr.msra.gmra.mrb[50].mxu0 %vm83_vm7, %v6407_v59  ;;  %v6605_v32 = vld [vmem:[#allocation5 + $0x22] sm:$0xff] }
 0x7c3   :  { %10514 = vmatpush3.msra.mxu0 %v12508_v23  ;;  %v6409_v48 = vld [vmem:[#allocation5 + $0x39] sm:$0x1f] }
 0x7c4   :  { %v6408_v62 = vld [vmem:[#allocation5 + $0x31] sm:$0xff]  ;;  %10521 = vmatprep.subr.mxu0 %v12518_v26  ;;  %v6608_v30 = vld [vmem:[#allocation5 + $0x3a] sm:$0x1f] }
 0x7c5   :  { %10510 = vmatprep.mubr.msk.f32.mxu0 %vm83_vm7, %v6408_v62  ;;  %v6403_v27 = vld [vmem:[#allocation5 + $0x30] sm:$0xff]  ;;  %v6404_v33 = vld [vmem:[#allocation5 + $0x38] sm:$0x1f] }
 0x7c6   :  { %10511 = vmatmul.mubr.msk.f32.gmra.mrb[52].mxu0 %vm83_vm7, %v6409_v48  ;;  %v6606_v17 = vld [vmem:[#allocation5 + $0x2a] sm:$0xff]  ;;  %v6607_v20 = vld [vmem:[#allocation5 + $0x32] sm:$0xff] }
 0x7c7   :  { %10515 = vmatprep.mubr.msk.f32.mxu0 %vm83_vm7, %v6401_v47 }
 0x7ca   :  { %10516 = vmatmul.mubr.msk.f32.vlgmr.msra.gmra.mrb[50].mxu0 %vm83_vm7, %v6402_v63 }
 0x7cb   :  { %10518 = vmatprep.mubr.msk.f32.mxu0 %vm83_vm7, %v6403_v27  ;;  %10522 = vmatpush3.msra.mxu0 %v12518_v26 }
 0x7ce   :  { %10519 = vmatmul.mubr.msk.f32.gmra.mrb[52].mxu0 %vm83_vm7, %v6404_v33 }
 0x7cf   :  { %v10501_v37 = vpop.f32.mrb[46].mxu0  ;;  %10523 = vmatprep.mubr.msk.f32.mxu0 %vm83_vm7, %v6605_v32 }
 0x7d0   :  { %v6389_v18 = vadd.f32 %v10501_v37, %v12583_v2  ;;  %v6361_v15 = vpop.f32.mrb[47].mxu0 }
 0x7d1   :  { %v6388_v46 = vadd.f32 %v12583_v2, %v6361_v15 }
 0x7d2   :  { %v6393_v29 = vmax.f32 %v6389_v18, 0.0  ;;  %10524 = vmatmul.mubr.msk.f32.vlgmr.msra.gmra.mrb[50].mxu0 %vm83_vm7, %v6606_v17 }
 0x7d3   :  { %v6392_v8 = vmax.f32 %v6388_v46, 0.0  ;;  %v10504_v22 = vpop.f32.mrb[48].mxu0  ;;  %10526 = vmatprep.mubr.msk.f32.mxu0 %vm83_vm7, %v6607_v20 }
 0x7d4   :  { %6397 = vst.msk [vmem:[#allocation6 + $0x9] sm:$0xff] %vm110_vm6, %v6393_v29  ;;  %v6391_v43 = vadd.f32 %v10504_v22, %v12583_v2  ;;  %v6371_v55 = vpop.f32.mrb[49].mxu0 }
 0x7d5   :  { %6396 = vst.msk [vmem:[#allocation6 + $0x1] sm:$0xff] %vm110_vm6, %v6392_v8  ;;  %v6390_v34 = vadd.f32 %v12583_v2, %v6371_v55 }
 0x7d6   :  { %v6395_v14 = vmax.f32 %v6391_v43, 0.0  ;;  %10527 = vmatmul.mubr.msk.f32.gmra.mrb[52].mxu0 %vm83_vm7, %v6608_v30  ;;  %vm130_vm7 = vcmask 253952  }
 0x7d7   :  { %v6394_v56 = vmax.f32 %v6390_v34, 0.0  ;;  %10567 = vmatprep.mubr.msk.f32.mxu0 %vm7050_vm1, %v12394_v42  ;;  %131 = vst.msk [vmem:[#allocation8 + $0x10] sm:$0x1] %vm130_vm7, %v11324_v0  ;;  %134 = vst.msk [vmem:[#allocation8 + $0x28] sm:$0x1] %vm130_vm7, %v11324_v0 }
 0x7d8   :  { %6400 = vst.msk [vmem:[#allocation6 + $0x19] sm:$0x1f] %vm6399_vm14, %v6395_v14 }
 0x7d9   :  { %6398 = vst.msk [vmem:[#allocation6 + $0x11] sm:$0xff] %vm110_vm6, %v6394_v56 }
 0x7db   :  { %v6732_v44 = vld [vmem:[#allocation6 + $0x9] sm:$0xff] }
 0x7dc   :  { %v6731_v31 = vld [vmem:[#allocation6 + $0x1] sm:$0xff] }
 0x7dd   :  { %10533 = vmatprep.mubr.msk.f32.mxu1 %vm110_vm6, %v6731_v31  ;;  %v6725_v53 = vld [vmem:[#allocation6] sm:$0xff]  ;;  %v6726_v41 = vld [vmem:[#allocation6 + $0x8] sm:$0xff] }
 0x7de   :  { %10534 = vmatmul.mubr.msk.f32.vlgmr.msra.gmra.mrb[44].mxu1 %vm110_vm6, %v6732_v44  ;;  %v6931_v3 = vld [vmem:[#allocation6 + $0x2] sm:$0xff] }
 0x7df   :  { %10840 = vmatpush3.bf16.msra.mxu1 %v12563_v28  ;;  %v6734_v40 = vld [vmem:[#allocation6 + $0x19] sm:$0x1f] }
 0x7e0   :  { %v6733_v38 = vld [vmem:[#allocation6 + $0x11] sm:$0xff]  ;;  %10842 = vmatprep.subr.bf16.mxu1 %v12598_v36  ;;  %v6934_v60 = vld [vmem:[#allocation6 + $0x1a] sm:$0x1f] }
 0x7e1   :  { %10536 = vmatprep.mubr.msk.f32.mxu1 %vm110_vm6, %v6733_v38  ;;  %v6727_v6 = vld [vmem:[#allocation6 + $0x10] sm:$0xff]  ;;  %v6728_v9 = vld [vmem:[#allocation6 + $0x18] sm:$0x1f] }
 0x7e2   :  { %10537 = vmatmul.mubr.msk.f32.gmra.mrb[46].mxu1 %vm110_vm6, %v6734_v40  ;;  %v6932_v23 = vld [vmem:[#allocation6 + $0xa] sm:$0xff]  ;;  %v6933_v7 = vld [vmem:[#allocation6 + $0x12] sm:$0xff] }
 0x7e3   :  { %10543 = vmatprep.mubr.msk.f32.mxu1 %vm110_vm6, %v6725_v53 }
 0x7e6   :  { %10544 = vmatmul.mubr.msk.f32.vlgmr.msra.gmra.mrb[44].mxu1 %vm110_vm6, %v6726_v41  ;;  %v7544_v41 = vld [vmem:[#allocation9 + $0x91] sm:$0xff] }
 0x7e7   :  { %10546 = vmatprep.mubr.msk.f32.mxu1 %vm110_vm6, %v6727_v6  ;;  %10844 = vmatpush3.bf16.msra.mxu1 %v12598_v36  ;;  %v7545_v6 = vld [vmem:[#allocation9 + $0x99] sm:$0xff] }
 0x7ea   :  { %10547 = vmatmul.mubr.msk.f32.gmra.mrb[46].mxu1 %vm110_vm6, %v6728_v9 }
 0x7eb   :  { %10553 = vmatprep.mubr.msk.f32.mxu1 %vm110_vm6, %v6931_v3 }
 0x7ee   :  { %10554 = vmatmul.mubr.msk.f32.vlgmr.msra.gmra.mrb[44].mxu1 %vm110_vm6, %v6932_v23  ;;  %v10877_v23 = vpack.c.bf16 %v7545_v6, %v7544_v41  ;;  %v9244_v6 = vld [vmem:[%s12786_s2 + $0x6] ss:$0 sm:$0xff] }
 0x7ef   :  { %10556 = vmatprep.mubr.msk.f32.mxu1 %vm110_vm6, %v6933_v7  ;;  %v7540_v7 = vld [vmem:[#allocation9 + $0x81] sm:$0xff] }
 0x7f2   :  { %10557 = vmatmul.mubr.msk.f32.gmra.mrb[46].mxu1 %vm110_vm6, %v6934_v60  ;;  %v7541_v60 = vld [vmem:[#allocation9 + $0x89] sm:$0xff] }
 0x7f3   :  { %10608 = vmatprep.mubr.msk.f32.mxu1 %vm7050_vm1, %v12394_v42 }
 0x8a5   :  { %v10525_v26 = vpop.f32.mrb[50].mxu0 }
 0x8a6   :  { %v6712_v45 = vadd.f32 %v10525_v26, %v12583_v2  ;;  %v6688_v50 = vpop.f32.mrb[51].mxu0  ;;  %v10881_v26 = vpack.c.bf16 %v7541_v60, %v7540_v7 }
 0x8a7   :  { %v6711_v25 = vadd.f32 %v12583_v2, %v6688_v50  ;;  %v7711_v50 = vld [vmem:[#allocation9 + $0xa9] sm:$0xff] }
 0x8a8   :  { %v6716_v19 = vmax.f32 %v6712_v45, 0.0  ;;  %v7710_v45 = vld [vmem:[#allocation9 + $0xa1] sm:$0xff] }
 0x8a9   :  { %v6715_v11 = vmax.f32 %v6711_v25, 0.0  ;;  %v10528_v54 = vpop.f32.mrb[52].mxu0 }
 0x8aa   :  { %6721 = vst.msk [vmem:[#allocation6 + $0x29] sm:$0xff] %vm110_vm6, %v6716_v19  ;;  %v6714_v12 = vadd.f32 %v10528_v54, %v12583_v2  ;;  %v6698_v16 = vpop.f32.mrb[53].mxu0  ;;  %v10885_v19 = vpack.c.bf16 %v7711_v50, %v7710_v45 }
 0x8ab   :  { %6720 = vst.msk [vmem:[#allocation6 + $0x21] sm:$0xff] %vm110_vm6, %v6715_v11  ;;  %v6713_v52 = vadd.f32 %v12583_v2, %v6698_v16 }
 0x8ac   :  { %v6718_v10 = vmax.f32 %v6714_v12, 0.0 }
 0x8ad   :  { %v6717_v24 = vmax.f32 %v6713_v52, 0.0  ;;  %v8079_v52 = vld [vmem:[#allocation9 + $0xd1] sm:$0xff] }
 0x8ae   :  { %6723 = vst.msk [vmem:[#allocation6 + $0x39] sm:$0x1f] %vm6399_vm14, %v6718_v10  ;;  %v8080_v10 = vld [vmem:[#allocation9 + $0xd9] sm:$0xff] }
 0x8af   :  { %6722 = vst.msk [vmem:[#allocation6 + $0x31] sm:$0xff] %vm110_vm6, %v6717_v24  ;;  %v8081_v24 = vld [vmem:[#allocation9 + $0xe1] sm:$0xff] }
 0x8b1   :  { %v7142_v37 = vld [vmem:[#allocation6 + $0x29] sm:$0xff] }
 0x8b2   :  { %v7141_v32 = vld [vmem:[#allocation6 + $0x21] sm:$0xff] }
 0x8b3   :  { %v7135_v46 = vld [vmem:[#allocation6 + $0x20] sm:$0xff] }
 0x8b5   :  { %v7144_v15 = vld [vmem:[#allocation6 + $0x39] sm:$0x1f] }
 0x8b6   :  { %v7143_v18 = vld [vmem:[#allocation6 + $0x31] sm:$0xff]  ;;  %v7344_v22 = vld [vmem:[#allocation6 + $0x3a] sm:$0x1f] }
 0x8b7   :  { %v7137_v17 = vld [vmem:[#allocation6 + $0x30] sm:$0xff]  ;;  %v7138_v29 = vld [vmem:[#allocation6 + $0x38] sm:$0x1f] }
 0x8b8   :  { %v7342_v20 = vld [vmem:[#allocation6 + $0x2a] sm:$0xff]  ;;  %v7343_v8 = vld [vmem:[#allocation6 + $0x32] sm:$0xff] }
 0x8c1   :  { %v10555_v21 = vpop.f32.mrb[44].mxu1 }
 0x8c2   :  { %v7043_v1 = vadd.f32 %v10555_v21, %v12630_v57  ;;  %v7015_v61 = vpop.f32.mrb[45].mxu1  ;;  %v8082_v21 = vld [vmem:[#allocation9 + $0xe9] sm:$0xff] }
 0x8c3   :  { %v7042_v4 = vadd.f32 %v12630_v57, %v7015_v61  ;;  %v8073_v61 = vld [vmem:[#allocation9 + $0xb1] sm:$0xff] }
 0x8c4   :  { %v7047_v5 = vmax.f32 %v7043_v1, 0.0  ;;  %v12696_v1 = vpack.c.bf16 %v8082_v21, %v8081_v24 }
 0x8c5   :  { %v7046_v39 = vmax.f32 %v7042_v4, 0.0  ;;  %v10558_v51 = vpop.f32.mrb[46].mxu1  ;;  %v8074_v4 = vld [vmem:[#allocation9 + $0xb9] sm:$0xff] }
 0x8c6   :  { %v7045_v59 = vadd.f32 %v10558_v51, %v12630_v57  ;;  %v7025_v62 = vpop.f32.mrb[47].mxu1 }
 0x8c7   :  { %v10845_v48 = vpack.c.bf16 %v7047_v5, %v7046_v39  ;;  %v7044_v47 = vadd.f32 %v12630_v57, %v7025_v62  ;;  %v12702_v5 = vpack.c.bf16 %v8074_v4, %v8073_v61 }
 0x8c8   :  { %v7049_v63 = vmax.f32 %v7045_v59, 0.0 }
 0x8c9   :  { %v7048_v27 = vmax.f32 %v7044_v47, 0.0  ;;  %10846 = vmatprep.subr.bf16.mxu0 %v10845_v48 }
 0x8ca   :  { %10848 = vmatpush3.bf16.msra.mxu0 %v10845_v48 }
 0x8cb   :  { %v10849_v2 = vpack.c.bf16 %v7049_v63, %v7048_v27  ;;  %v9231_v63 = vld [vmem:[%s12786_s2 + $0x5] ss:$0 sm:$0xff]  ;;  %s11329_s2 = smov [#allocation12]  }
 0x8cc   :  { %s8783_s21 = sshll.u32 %s11329_s2, 4  ;;  %s8784_s21 = int_to_ptr.vmem [resolvable:$true] %s8783_s21 }
 0x8cd   :  { %10851 = vmatprep.subr.msk.bf16.mxu0 %vm12638_vm12, %v10849_v2  ;;  %s11295_s22 = scalar_lea.vmem %s8784_s21, 32  ;;  %p11300_p9 = scmp.lt.s32.totalorder %s8784_s21, %s8784_s21 }
 0x8ce   :  { %10854 = vmatpush3.bf16.msk.msra.mxu0 %vm12638_vm12, %v10849_v2  ;;  %p11296_p8 = scmp.ne.s32.totalorder %s8784_s21, %s11295_s22  ;;  %p11301_p10 = scmp.lt.s32.totalorder %s11295_s22, %s11295_s22 }
 0x8cf   :  { %10856 = vmatprep.subr.bf16.mxu0 %v12535_v58 }
 0x8d0   :  { %p11302_p11 = por %p11301_p10, %p11300_p9 }
 0x8d1   :  { %10568 = vmatmul.mubr.msk.f32.vlgmr.msra.gmra.mrb[54].mxu0 %vm7050_vm1, %v12440_v49 }
 0x8d2   :  { %10858 = vmatpush3.bf16.msra.mxu0 %v12535_v58  ;;  %10574 = vmatprep.mubr.msk.f32.mxu0 %vm110_vm6, %v7141_v32  ;;  %v7136_v58 = vld [vmem:[#allocation6 + $0x28] sm:$0xff]  ;;  %p11303_p12 = pnand %p11302_p11, %p11296_p8 }
 0x8d3   :  { %10860 = vmatprep.subr.bf16.mxu0 %v12563_v28 }
 0x8d5   :  { %10575 = vmatmul.mubr.msk.f32.vlgmr.msra.gmra.mrb[56].mxu0 %vm110_vm6, %v7142_v37 }
 0x8d6   :  { %10577 = vmatprep.mubr.msk.f32.mxu0 %vm110_vm6, %v7143_v18  ;;  %10862 = vmatpush3.bf16.msra.mxu0 %v12563_v28  ;;  %v7341_v28 = vld [vmem:[#allocation6 + $0x22] sm:$0xff] }
 0x8d7   :  { %10864 = vmatprep.subr.bf16.mxu0 %v12598_v36 }
 0x8d9   :  { %10578 = vmatmul.mubr.msk.f32.gmra.mrb[58].mxu0 %vm110_vm6, %v7144_v15 }
 0x8da   :  { %10584 = vmatprep.mubr.msk.f32.mxu0 %vm110_vm6, %v7135_v46 }
 0x8dd   :  { %10585 = vmatmul.mubr.msk.f32.vlgmr.msra.gmra.mrb[56].mxu0 %vm110_vm6, %v7136_v58  ;;  %v8075_v58 = vld [vmem:[#allocation9 + $0xc1] sm:$0xff] }
 0x8de   :  { %10587 = vmatprep.mubr.msk.f32.mxu0 %vm110_vm6, %v7137_v17  ;;  %10866 = vmatpush3.bf16.msra.mxu0 %v12598_v36  ;;  %v8076_v17 = vld [vmem:[#allocation9 + $0xc9] sm:$0xff] }
 0x8e1   :  { %10588 = vmatmul.mubr.msk.f32.gmra.mrb[58].mxu0 %vm110_vm6, %v7138_v29 }
 0x8e2   :  { %10594 = vmatprep.mubr.msk.f32.mxu0 %vm110_vm6, %v7341_v28  ;;  %v12722_v28 = vpack.c.bf16 %v8076_v17, %v8075_v58 }
 0x8e5   :  { %10595 = vmatmul.mubr.msk.f32.vlgmr.msra.gmra.mrb[56].mxu0 %vm110_vm6, %v7342_v20 }
 0x8e6   :  { %10597 = vmatprep.mubr.msk.f32.mxu0 %vm110_vm6, %v7343_v8  ;;  %v8247_v8 = vld [vmem:[#allocation9 + $0xf1] sm:$0xff] }
 0x8e9   :  { %10598 = vmatmul.mubr.msk.f32.gmra.mrb[58].mxu0 %vm110_vm6, %v7344_v22  ;;  %v8248_v22 = vld [vmem:[#allocation9 + $0xf9] sm:$0xff] }
 0x9a4   :  { %v10569_v43 = vpop.f32.mrb[54].mxu0 }
 0x9a5   :  { %7134 = vst.msk [vmem:[#allocation7 + $0x9] sm:$0x7f] %vm114_vm11, %v10569_v43  ;;  %v7124_v55 = vpop.f32.mrb[55].mxu0 }
 0x9a6   :  { %7133 = vst.msk [vmem:[#allocation7 + $0x1] sm:$0xff] %vm110_vm6, %v7124_v55  ;;  %v10917_v55 = vpack.c.bf16 %v8248_v22, %v8247_v8 }
 0x9ac   :  { %v7543_v11 = vld [vmem:[#allocation7 + $0x9] sm:$0x7f] }
 0x9ad   :  { %v7542_v25 = vld [vmem:[#allocation7 + $0x1] sm:$0xff] }
 0x9ae   :  { %v7538_v54 = vld [vmem:[#allocation7] sm:$0xff]  ;;  %v7539_v12 = vld [vmem:[#allocation7 + $0x8] sm:$0x7f] }
 0x9af   :  { %v7708_v16 = vld [vmem:[#allocation7 + $0x2] sm:$0xff] }
 0x9b8   :  { %v10596_v34 = vpop.f32.mrb[56].mxu0 }
 0x9b9   :  { %v7449_v30 = vadd.f32 %v10596_v34, %v12630_v57  ;;  %v7425_v14 = vpop.f32.mrb[57].mxu0  ;;  %v8249_v34 = vld [vmem:[#allocation9 + $0x101] sm:$0xff] }
 0x9ba   :  { %v7448_v56 = vadd.f32 %v12630_v57, %v7425_v14 }
 0x9bb   :  { %v7453_v35 = vmax.f32 %v7449_v30, 0.0  ;;  %v8250_v30 = vld [vmem:[#allocation9 + $0x109] sm:$0xff] }
 0x9bc   :  { %v7452_v13 = vmax.f32 %v7448_v56, 0.0  ;;  %v10599_v31 = vpop.f32.mrb[58].mxu0  ;;  %v10921_v14 = vpack.c.bf16 %v8250_v30, %v8249_v34 }
 0x9bd   :  { %v7451_v36 = vadd.f32 %v10599_v31, %v12630_v57  ;;  %v7435_v44 = vpop.f32.mrb[59].mxu0  ;;  %v11327_v31 = vmov 0.0|0.0  }
 0x9be   :  { %v10867_v38 = vpack.c.bf16 %v7453_v35, %v7452_v13  ;;  %v7450_v40 = vadd.f32 %v12630_v57, %v7435_v44  ;;  %v12694_v57 = vpack.c.bf16 %v8080_v10, %v8079_v52 }
 0x9bf   :  { %v7455_v53 = vmax.f32 %v7451_v36, 0.0 }
 0x9c0   :  { %v7454_v9 = vmax.f32 %v7450_v40, 0.0  ;;  %10868 = vmatprep.subr.bf16.mxu1 %v10867_v38  ;;  %10902 = vmatprep.subr.bf16.mxu0 %v12694_v57 }
 0x9c1   :  { %10870 = vmatpush3.bf16.msra.mxu1 %v10867_v38  ;;  %10904 = vmatpush3.bf16.msra.mxu0 %v12694_v57 }
 0x9c2   :  { %v10871_v3 = vpack.c.bf16 %v7455_v53, %v7454_v9  ;;  %10906 = vmatprep.subr.bf16.mxu0 %v12696_v1 }
 0x9c4   :  { %10873 = vmatprep.subr.msk.bf16.mxu1 %vm12638_vm12, %v10871_v3 }
 0x9c5   :  { %10876 = vmatpush3.bf16.msk.msra.mxu1 %vm12638_vm12, %v10871_v3  ;;  %10908 = vmatpush3.bf16.msra.mxu0 %v12696_v1 }
 0x9c6   :  { %10878 = vmatprep.subr.bf16.mxu1 %v10877_v23  ;;  %10910 = vmatprep.subr.bf16.mxu0 %v12702_v5 }
 0x9c8   :  { %10609 = vmatmul.mubr.msk.f32.vlgmr.msra.gmra.mrb[48].mxu1 %vm7050_vm1, %v12440_v49  ;;  %v7709_v49 = vld [vmem:[#allocation7 + $0xa] sm:$0x7f] }
 0x9c9   :  { %10880 = vmatpush3.bf16.msra.mxu1 %v10877_v23  ;;  %10615 = vmatprep.mubr.msk.f32.mxu1 %vm110_vm6, %v7542_v25 }
 0x9ca   :  { %10882 = vmatprep.subr.bf16.mxu1 %v10881_v26 }
 0x9cc   :  { %10616 = vmatmul.mubr.msk.f32.vlgmr.msra.gmra.mrb[50].mxu1 %vm110_vm6, %v7543_v11 }
 0x9cd   :  { %10884 = vmatpush3.bf16.msra.mxu1 %v10881_v26  ;;  %10622 = vmatprep.mubr.msk.f32.mxu1 %vm110_vm6, %v7538_v54 }
 0x9ce   :  { %10886 = vmatprep.subr.bf16.mxu1 %v10885_v19 }
 0x9d4   :  { %10623 = vmatmul.mubr.msk.f32.vlgmr.msra.gmra.mrb[50].mxu1 %vm110_vm6, %v7539_v12 }
 0x9d5   :  { %10888 = vmatpush3.bf16.msra.mxu1 %v10885_v19  ;;  %10629 = vmatprep.mubr.msk.f32.mxu1 %vm110_vm6, %v7708_v16 }
 0x9d6   :  { %10890 = vmatprep.subr.bf16.mxu1 %v10877_v23 }
 0x9dc   :  { %10630 = vmatmul.mubr.msk.f32.vlgmr.msra.gmra.mrb[50].mxu1 %vm110_vm6, %v7709_v49 }
 0x9dd   :  { %10892 = vmatpush3.bf16.msra.mxu1 %v10877_v23 }
 0x9de   :  { %10894 = vmatprep.subr.bf16.mxu1 %v10881_v26 }
 0xa9b   :  { %v10610_v39 = vpop.f32.mrb[48].mxu1 }
 0xa9c   :  { %7536 = vst.msk [vmem:[#allocation7 + $0x21] sm:$0x7f] %vm114_vm11, %v10610_v39  ;;  %v7525_v51 = vpop.f32.mrb[49].mxu1 }
 0xa9d   :  { %7535 = vst.msk [vmem:[#allocation7 + $0x19] sm:$0xff] %vm110_vm6, %v7525_v51 }
 0xaa3   :  { %v7811_v62 = vld [vmem:[#allocation7 + $0x21] sm:$0x7f] }
 0xaa4   :  { %v7810_v59 = vld [vmem:[#allocation7 + $0x19] sm:$0xff]  ;;  %v7977_v46 = vld [vmem:[#allocation7 + $0x22] sm:$0x7f] }
 0xaa5   :  { %10636 = vmatprep.mubr.msk.f32.mxu1 %vm110_vm6, %v7810_v59  ;;  %v7806_v48 = vld [vmem:[#allocation7 + $0x18] sm:$0xff]  ;;  %v7807_v47 = vld [vmem:[#allocation7 + $0x20] sm:$0x7f] }
 0xaa6   :  { %10637 = vmatmul.mubr.msk.f32.vlgmr.msra.gmra.mrb[52].mxu1 %vm110_vm6, %v7811_v62  ;;  %v7976_v27 = vld [vmem:[#allocation7 + $0x1a] sm:$0xff] }
 0xaa7   :  { %10643 = vmatprep.mubr.msk.f32.mxu1 %vm110_vm6, %v7806_v48  ;;  %10896 = vmatpush3.bf16.msra.mxu1 %v10881_v26 }
 0xaa8   :  { %10898 = vmatprep.subr.bf16.mxu1 %v10885_v19 }
 0xaae   :  { %10644 = vmatmul.mubr.msk.f32.vlgmr.msra.gmra.mrb[52].mxu1 %vm110_vm6, %v7807_v47 }
 0xaaf   :  { %v10631_v33 = vpop.f32.mrb[50].mxu1  ;;  %10650 = vmatprep.mubr.msk.f32.mxu1 %vm110_vm6, %v7976_v27  ;;  %10900 = vmatpush3.bf16.msra.mxu1 %v10885_v19 }
 0xab0   :  { %v7800_v2 = vadd.f32 %v10631_v33, %v9231_v63  ;;  %v7784_v32 = vpop.f32.mrb[51].mxu1  ;;  %10925 = vmatprep.subr.bf16.mxu1 %v11327_v31 }
 0xab1   :  { %v7799_v37 = vadd.f32 %v9231_v63, %v7784_v32 }
 0xab2   :  { %v7802_v18 = vmax.f32 %v7800_v2, 0.0 }
 0xab3   :  { %v7801_v15 = vmax.f32 %v7799_v37, 0.0 }
 0xab4   :  { %7805 = vst.msk [vmem:[#allocation8 + $0x9] sm:$0x7f] %vm7804_vm8, %v7802_v18 }
 0xab5   :  { %7803 = vst.msk [vmem:[#allocation8 + $0x1] sm:$0xff] %vm127_vm0, %v7801_v15 }
 0xab6   :  { %10651 = vmatmul.mubr.msk.f32.vlgmr.msra.gmra.mrb[52].mxu1 %vm110_vm6, %v7977_v46 }
 0xab7   :  { %10690 = vmatprep.mubr.msk.f32.mxu1 %vm11328_vm2, %v11324_v0 }
 0xabb   :  { %v8078_v20 = vld [vmem:[#allocation8 + $0x9] sm:$0x7f] }
 0xabc   :  { %v8077_v29 = vld [vmem:[#allocation8 + $0x1] sm:$0xff]  ;;  %v8246_v13 = vld [vmem:[#allocation8 + $0xa] sm:$0x7f] }
 0xabd   :  { %10661 = vmatprep.mubr.msk.f32.mxu0 %vm127_vm0, %v8077_v29  ;;  %v8071_v43 = vld [vmem:[#allocation8] sm:$0xff]  ;;  %v8072_v56 = vld [vmem:[#allocation8 + $0x8] sm:$0x7f] }
 0xabe   :  { %10662 = vmatmul.mubr.msk.f32.vlgmr.msra.gmra.mrb[60].mxu0 %vm127_vm0, %v8078_v20  ;;  %v8245_v35 = vld [vmem:[#allocation8 + $0x2] sm:$0xff] }
 0xabf   :  { %10912 = vmatpush3.bf16.msra.mxu0 %v12702_v5  ;;  %10672 = vmatprep.mubr.msk.f32.mxu0 %vm127_vm0, %v8071_v43 }
 0xac0   :  { %10914 = vmatprep.subr.bf16.mxu0 %v12722_v28 }
 0xac3   :  { %10916 = vmatpush3.bf16.msra.mxu0 %v12722_v28 }
 0xac4   :  { %10918 = vmatprep.subr.bf16.mxu0 %v10917_v55 }
 0xac6   :  { %10673 = vmatmul.mubr.msk.f32.vlgmr.msra.gmra.mrb[60].mxu0 %vm127_vm0, %v8072_v56 }
 0xac7   :  { %10920 = vmatpush3.bf16.msra.mxu0 %v10917_v55  ;;  %10683 = vmatprep.mubr.msk.f32.mxu0 %vm127_vm0, %v8245_v35 }
 0xac8   :  { %10922 = vmatprep.subr.bf16.mxu0 %v10921_v14 }
 0xacb   :  { %10924 = vmatpush3.bf16.msra.mxu0 %v10921_v14 }
 0xacc   :  { %10953 = vmatprep.subr.bf16.mxu0 %v11327_v31 }
 0xace   :  { %10684 = vmatmul.mubr.msk.f32.vlgmr.msra.gmra.mrb[60].mxu0 %vm127_vm0, %v8246_v13 }
 0xacf   :  { %10730 = vmatprep.mubr.msk.f32.mxu0 %vm11328_vm2, %v11324_v0 }
 0xb89   :  { %v10652_v36 = vpop.f32.mrb[52].mxu1 }
 0xb8a   :  { %v8064_v44 = vadd.f32 %v10652_v36, %v9231_v63  ;;  %v8052_v38 = vpop.f32.mrb[53].mxu1 }
 0xb8b   :  { %v8063_v40 = vadd.f32 %v9231_v63, %v8052_v38 }
 0xb8c   :  { %v8066_v53 = vmax.f32 %v8064_v44, 0.0 }
 0xb8d   :  { %v8065_v41 = vmax.f32 %v8063_v40, 0.0 }
 0xb8e   :  { %8069 = vst.msk [vmem:[#allocation8 + $0x21] sm:$0x7f] %vm7804_vm8, %v8066_v53 }
 0xb8f   :  { %8068 = vst.msk [vmem:[#allocation8 + $0x19] sm:$0xff] %vm127_vm0, %v8065_v41 }
 0xb95   :  { %v8435_v25 = vld [vmem:[#allocation8 + $0x21] sm:$0x7f] }
 0xb96   :  { %v8434_v50 = vld [vmem:[#allocation8 + $0x19] sm:$0xff]  ;;  %v8603_v12 = vld [vmem:[#allocation8 + $0x22] sm:$0x7f] }
 0xb97   :  { %v8428_v19 = vld [vmem:[#allocation8 + $0x18] sm:$0xff]  ;;  %v8429_v11 = vld [vmem:[#allocation8 + $0x20] sm:$0x7f] }
 0xb98   :  { %v8602_v54 = vld [vmem:[#allocation8 + $0x1a] sm:$0xff] }
 0xba1   :  { %v10685_v9 = vpop.f32.mrb[60].mxu0 }
 0xba2   :  { %v8339_v3 = vadd.f32 %v10685_v9, %v9244_v6  ;;  %v8323_v23 = vpop.f32.mrb[61].mxu0 }
 0xba3   :  { %v8338_v7 = vadd.f32 %v9244_v6, %v8323_v23 }
 0xba4   :  { %v8341_v60 = vmax.f32 %v8339_v3, 0.0 }
 0xba5   :  { %v8340_v0 = vmax.f32 %v8338_v7, 0.0 }
 0xba7   :  { %v10926_v45 = vpack.c.bf16 %v8341_v60, %v8340_v0 }
 0xba9   :  { %10928 = vmatpush3.bf16.msk.msra.mxu1 %vm12742_vm9, %v10926_v45 }
 0xbaa   :  { %10930 = vmatprep.subr.bf16.mxu1 %v12694_v57 }
 0xbac   :  { %10691 = vmatmul.mubr.msk.f32.vlgmr.msra.gmra.mrb[54].mxu1 %vm8342_vm10, %v12394_v42 }
 0xbad   :  { %10932 = vmatpush3.bf16.msra.mxu1 %v12694_v57  ;;  %10701 = vmatprep.mubr.msk.f32.mxu1 %vm127_vm0, %v8434_v50 }
 0xbae   :  { %10934 = vmatprep.subr.bf16.mxu1 %v12696_v1 }
 0xbb1   :  { %10936 = vmatpush3.bf16.msra.mxu1 %v12696_v1 }
 0xbb2   :  { %10938 = vmatprep.subr.bf16.mxu1 %v12702_v5 }
 0xbb4   :  { %10702 = vmatmul.mubr.msk.f32.vlgmr.msra.gmra.mrb[56].mxu1 %vm127_vm0, %v8435_v25 }
 0xbb5   :  { %10940 = vmatpush3.bf16.msra.mxu1 %v12702_v5  ;;  %10712 = vmatprep.mubr.msk.f32.mxu1 %vm127_vm0, %v8428_v19 }
 0xbb6   :  { %10942 = vmatprep.subr.bf16.mxu1 %v12722_v28 }
 0xbb9   :  { %10944 = vmatpush3.bf16.msra.mxu1 %v12722_v28 }
 0xbba   :  { %10946 = vmatprep.subr.bf16.mxu1 %v10917_v55 }
 0xbbc   :  { %10713 = vmatmul.mubr.msk.f32.vlgmr.msra.gmra.mrb[56].mxu1 %vm127_vm0, %v8429_v11 }
 0xbbd   :  { %10948 = vmatpush3.bf16.msra.mxu1 %v10917_v55  ;;  %10723 = vmatprep.mubr.msk.f32.mxu1 %vm127_vm0, %v8602_v54 }
 0xbbe   :  { %10950 = vmatprep.subr.bf16.mxu1 %v10921_v14 }
 0xbc1   :  { %10952 = vmatpush3.bf16.msra.mxu1 %v10921_v14 }
 0xbc4   :  { %10724 = vmatmul.mubr.msk.f32.vlgmr.msra.gmra.mrb[56].mxu1 %vm127_vm0, %v8603_v12 }
 0xc7f   :  { %v8414_v16 = vpop.f32.mrb[54].mxu1 }
 0xc80   :  { %v8418_v49 = vsel %vm127_vm0, %v8414_v16, 0.0  ;;  %v10692_v52 = vpop.f32.mrb[55].mxu1 }
 0xc81   :  { %v8419_v10 = vrot.slane %v8418_v49, 4 }
 0xc83   :  { %v8420_v24 = vadd.f32 %v8419_v10, %v8418_v49 }
 0xc85   :  { %v8421_v57 = vrot.slane %v8420_v24, 2 }
 0xc87   :  { %v8422_v21 = vadd.f32 %v8421_v57, %v8420_v24 }
 0xc89   :  { %v8423_v1 = vrot.slane %v8422_v21, 1 }
 0xc8b   :  { %v8424_v61 = vadd.f32 %v8423_v1, %v8422_v21 }
 0xc8d   :  { %v8426_v4 = vmul.f32 0.125, %v8424_v61 }
 0xc8f   :  { %8427 = vst.msk [vmem:[#allocation12] sm:$0x1] %vm130_vm7, %v8426_v4 }
 0xc97   :  { %v10725_v5 = vpop.f32.mrb[56].mxu1 }
 0xc98   :  { %v8692_v39 = vadd.f32 %v10725_v5, %v9244_v6  ;;  %v8680_v51 = vpop.f32.mrb[57].mxu1 }
 0xc99   :  { %v8691_v59 = vadd.f32 %v9244_v6, %v8680_v51 }
 0xc9a   :  { %v8694_v62 = vmax.f32 %v8692_v39, 0.0 }
 0xc9b   :  { %v8693_v48 = vmax.f32 %v8691_v59, 0.0 }
 0xc9d   :  { %v10954_v47 = vpack.c.bf16 %v8694_v62, %v8693_v48 }
 0xc9f   :  { %10956 = vmatpush3.bf16.msk.msra.mxu0 %vm12742_vm9, %v10954_v47 }
 0xca2   :  { %10731 = vmatmul.mubr.msk.f32.vlgmr.msra.gmra.mrb[62].mxu0 %vm8342_vm10, %v12394_v42 }
 0xd75   :  { %v8764_v63 = vpop.f32.mrb[62].mxu0 }
 0xd76   :  { %v8768_v27 = vsel %vm127_vm0, %v8764_v63, 0.0  ;;  %v10732_v33 = vpop.f32.mrb[63].mxu0 }
 0xd77   :  { %v8769_v2 = vrot.slane %v8768_v27, 4 }
 0xd79   :  { %v8770_v32 = vadd.f32 %v8769_v2, %v8768_v27 }
 0xd7b   :  { %v8771_v37 = vrot.slane %v8770_v32, 2 }
 0xd7d   :  { %v8772_v18 = vadd.f32 %v8771_v37, %v8770_v32 }
 0xd7f   :  { %v8773_v15 = vrot.slane %v8772_v18, 1 }
 0xd81   :  { %v8774_v46 = vadd.f32 %v8773_v15, %v8772_v18 }
 0xd83   :  { %v8775_v58 = vmul.f32 0.125, %v8774_v46 }
 0xd85   :  { %8776 = vst.msk [vmem:[#allocation12 + $0x1] sm:$0x1] %vm130_vm7, %v8775_v58 }
 0xd86   :  { %11306 = shalt.err (!%p11303_p12)
}
 0xd87   :  { %s11307_s25 = scalar_lea.hbm %s12787_s3, 32 }
 0xd88   :  { %p11308_p13 = scmp.ne.s32.totalorder %s12787_s3, %s11307_s25  ;;  %p11311_p0 = scmp.lt.u32.totalorder %s11307_s25, %s12787_s3 }
 0xd8a   :  { %p11313_p1 = pnand %p11311_p0, %p11308_p13 }
 0xd8c   :  { %11316 = shalt.err (!%p11313_p1)
}
 0xd8d   :  { %8786 = dma.vmem_to_hbm [thread:$0]  %s8784_s21, 32, %s12787_s3, [#allocation11]  }
 0xd8e   :  { %11319 = dma.done.wait [#allocation11], 32  }
 0xd8f   :  { %11320 = vsyncadd [#allocation11], 4294967264 }
 0xd90   :  { %8790 = vsyncpa [#allocation10], 1 }
 0xd91   :  { %8791 = vsyncpa [#allocation11], 1 }

</bundles_post_ra>
